<compile_context>
chip_gen: v6e
topology: v6e:2x2x1
jax: 0.10.0
libtpu: 0.0.40
codegen_flags: <defaults>
</compile_context>

<pallas_src>
import jax
import jax.numpy as jnp
import numpy as np
from jax import lax
from jax.experimental import pallas as pl
from jax.experimental.pallas import tpu as pltpu

EPS = 1e-5
NUM_GROUPS = 32  # GroupNorm(32, out_channels)


def _fused_midscope_kernel(xp_ref, w1_ref, w2_ref, vec_ref, out_ref, ypad_ref):
    # xp_ref  : (1, H+2, W+2, Cin)  bf16  zero-padded input (pad=1 for conv1)
    # w1_ref  : (9*Cin, Cout)       bf16  conv1 weights, rows ordered (kh, kw, cin)
    # w2_ref  : (9*Cout, Cout)      bf16  conv2 weights, rows ordered (kh, kw, cin)
    # vec_ref : (4, Cout)           f32   rows = [b1, gamma, beta, b2]
    # out_ref : (1, H, W, Cout)     f32
    # ypad_ref: (H+4, W+4, Cout)    bf16  VMEM scratch: SiLU output, pad=2 for dilated conv
    H, W, Cout = out_ref.shape[1], out_ref.shape[2], out_ref.shape[3]
    Cin = xp_ref.shape[3]
    G = NUM_GROUPS
    gsz = Cout // G

    # ---- conv1 (3x3, stride 1, pad 1) as one im2col matmul on the MXU ---------------
    taps1 = [xp_ref[0, kh:kh + H, kw:kw + W, :] for kh in range(3) for kw in range(3)]
    patch1 = jnp.concatenate(taps1, axis=-1).reshape(H * W, 9 * Cin)        # bf16
    acc = jnp.dot(patch1, w1_ref[...], preferred_element_type=jnp.float32)  # (H*W, Cout) f32
    acc = acc + vec_ref[0:1, :]                                             # + b1

    # ---- GroupNorm(32, Cout): two-pass stats (no E[x^2]-E[x]^2 cancellation) --------
    if gsz == 1:  # one channel per group (Cout == 32): pure per-channel column stats
        inv_cnt = 1.0 / (H * W)
        mean_c = jnp.sum(acc, axis=0, keepdims=True) * inv_cnt              # (1, Cout)
        centered = acc - mean_c
        var_c = jnp.sum(centered * centered, axis=0, keepdims=True) * inv_cnt
    else:         # general case (only traced when Cout > 32): fold channel stats per group
        inv_cnt = 1.0 / (H * W * gsz)
        ch_sum = jnp.sum(acc, axis=0, keepdims=True)
        g_mean = jnp.sum(ch_sum.reshape(G, gsz), axis=1, keepdims=True) * inv_cnt
        mean_c = jnp.repeat(g_mean, gsz, axis=1).reshape(1, Cout)
        centered = acc - mean_c
        ch_sq = jnp.sum(centered * centered, axis=0, keepdims=True)
        g_var = jnp.sum(ch_sq.reshape(G, gsz), axis=1, keepdims=True) * inv_cnt
        var_c = jnp.repeat(g_var, gsz, axis=1).reshape(1, Cout)
    var_c = jnp.maximum(var_c, 0.0)
    y = centered * lax.rsqrt(var_c + EPS)
    y = y * vec_ref[1:2, :] + vec_ref[2:3, :]                               # gamma, beta
    y = y * jax.nn.sigmoid(y)                                               # SiLU (f32)

    # ---- stash SiLU output in the zero-padded VMEM scratch (pad=2, border stays 0) --
    ypad_ref[...] = jnp.zeros_like(ypad_ref)
    ypad_ref[2:2 + H, 2:2 + W, :] = y.reshape(H, W, Cout).astype(ypad_ref.dtype)

    # ---- conv2 (3x3, dilation=2, pad=2) as one im2col matmul (K = 9*Cout) -----------
    taps2 = [ypad_ref[2 * kh:2 * kh + H, 2 * kw:2 * kw + W, :]
             for kh in range(3) for kw in range(3)]
    patch2 = jnp.concatenate(taps2, axis=-1).reshape(H * W, 9 * Cout)       # bf16
    acc2 = jnp.dot(patch2, w2_ref[...], preferred_element_type=jnp.float32)
    acc2 = acc2 + vec_ref[3:4, :]                                           # + b2
    out_ref[...] = acc2.reshape(1, H, W, Cout)


def midscope_conv2d_block(x_nchw, params):
    """Pallas forward. x_nchw: (N, Cin, H, W) f32. Returns (N, Cout, H, W) f32."""
    w1, b1, gamma, beta, w2, b2 = params   # conv weights in PyTorch OIHW layout
    N, Cin, H, W = x_nchw.shape
    Cout = w1.shape[0]
    assert Cout % NUM_GROUPS == 0

    # NHWC (channels-last) + bf16 activations; pad=1 for conv1 (glue, not compute).
    x = jnp.transpose(x_nchw, (0, 2, 3, 1)).astype(jnp.bfloat16)
    xp = jnp.pad(x, ((0, 0), (1, 1), (1, 1), (0, 0)))

    # Pre-reshape weights to 2-D im2col layout: rows ordered (kh, kw, cin), bf16.
    w1_2d = jnp.transpose(w1, (2, 3, 1, 0)).reshape(9 * Cin, Cout).astype(jnp.bfloat16)
    w2_2d = jnp.transpose(w2, (2, 3, 1, 0)).reshape(9 * Cout, Cout).astype(jnp.bfloat16)
    vec = jnp.stack([b1, gamma, beta, b2], axis=0).astype(jnp.float32)      # (4, Cout)

    out_nhwc = pl.pallas_call(
        _fused_midscope_kernel,
        out_shape=jax.ShapeDtypeStruct((N, H, W, Cout), jnp.float32),
        grid=(N,),
        in_specs=[
            pl.BlockSpec((1, H + 2, W + 2, Cin), lambda n: (n, 0, 0, 0)),
            pl.BlockSpec((9 * Cin, Cout), lambda n: (0, 0)),
            pl.BlockSpec((9 * Cout, Cout), lambda n: (0, 0)),
            pl.BlockSpec((4, Cout), lambda n: (0, 0)),
        ],
        out_specs=pl.BlockSpec((1, H, W, Cout), lambda n: (n, 0, 0, 0)),
        scratch_shapes=[pltpu.VMEM((H + 4, W + 4, Cout), jnp.bfloat16)],
        compiler_params=pltpu.CompilerParams(dimension_semantics=("parallel",)),
    )(xp, w1_2d, w2_2d, vec)

    # For large H*W (>= ~128x128) add an H-row grid axis with a halo + explicit
    # vmem_limit_bytes (v7x: 64 MiB VMEM); unnecessary at these block sizes.
    return jnp.transpose(out_nhwc, (0, 3, 1, 2))                            # back to NCHW


def reference(x_nchw, params):
    """Pure-JAX f32 reference matching the PyTorch module semantics."""
    w1, b1, gamma, beta, w2, b2 = params
    dn = ('NCHW', 'OIHW', 'NCHW')
    y = lax.conv_general_dilated(x_nchw, w1, (1, 1), ((1, 1), (1, 1)),
                                 dimension_numbers=dn) + b1.reshape(1, -1, 1, 1)
    N, C, H, W = y.shape
    yg = y.reshape(N, NUM_GROUPS, (C // NUM_GROUPS) * H * W)
    mean = jnp.mean(yg, axis=-1, keepdims=True)
    var = jnp.var(yg, axis=-1, keepdims=True)
    yn = ((yg - mean) / jnp.sqrt(var + EPS)).reshape(N, C, H, W)
    yn = yn * gamma.reshape(1, -1, 1, 1) + beta.reshape(1, -1, 1, 1)
    s = yn * jax.nn.sigmoid(yn)
    out = lax.conv_general_dilated(s, w2, (1, 1), ((2, 2), (2, 2)),
                                   rhs_dilation=(2, 2),
                                   dimension_numbers=dn) + b2.reshape(1, -1, 1, 1)
    return out


def init_params(key, in_channels, out_channels):
    k1, k2, k3, k4, k5, k6 = jax.random.split(key, 6)
    fan1 = in_channels * 9
    fan2 = out_channels * 9
    w1 = jax.random.uniform(k1, (out_channels, in_channels, 3, 3), jnp.float32,
                            -1.0 / np.sqrt(fan1), 1.0 / np.sqrt(fan1))
    b1 = jax.random.uniform(k2, (out_channels,), jnp.float32,
                            -1.0 / np.sqrt(fan1), 1.0 / np.sqrt(fan1))
    w2 = jax.random.uniform(k3, (out_channels, out_channels, 3, 3), jnp.float32,
                            -1.0 / np.sqrt(fan2), 1.0 / np.sqrt(fan2))
    b2 = jax.random.uniform(k4, (out_channels,), jnp.float32,
                            -1.0 / np.sqrt(fan2), 1.0 / np.sqrt(fan2))
    gamma = 1.0 + 0.1 * jax.random.normal(k5, (out_channels,), jnp.float32)
    beta = 0.1 * jax.random.normal(k6, (out_channels,), jnp.float32)
    return (w1, b1, gamma, beta, w2, b2)


if __name__ == "__main__":
    key = jax.random.PRNGKey(0)
    kx, kp = jax.random.split(key)

    N, Cin, H, W = 2, 4, 16, 16
    Cout = 32  # must be divisible by 32 (GroupNorm(32, out_channels))

    x = jax.random.normal(kx, (N, Cin, H, W), jnp.float32)
    params = init_params(kp, Cin, Cout)

    out = midscope_conv2d_block(x, params)
    out = jax.block_until_ready(out)

    ref = jax.block_until_ready(reference(x, params))
    # bf16 matmul inputs (f32 accumulation) vs. the f32 reference -> relaxed tolerance.
    np.testing.assert_allclose(np.asarray(out), np.asarray(ref), rtol=2e-2, atol=2e-2)

    print("KERNEL_OK")
</pallas_src>

<mosaic_0001>
module attributes {stable_mosaic.version = 11 : i64} {
  func.func @_fused_midscope_kernel(%arg0: i32, %arg1: memref<1x18x18x4xbf16, #tpu.memory_space<vmem>>, %arg2: memref<36x32xbf16, #tpu.memory_space<vmem>>, %arg3: memref<288x32xbf16, #tpu.memory_space<vmem>>, %arg4: memref<4x32xf32, #tpu.memory_space<vmem>>, %arg5: memref<1x16x16x32xf32, #tpu.memory_space<vmem>>, %arg6: memref<20x20x32xbf16, #tpu.memory_space<vmem>>) attributes {dimension_semantics = [#tpu.dimension_semantics<parallel>], iteration_bounds = array<i64: 2>, scalar_prefetch = 0 : i64, scratch_operands = 1 : i64, tpu.core_type = #tpu.core_type<tc>, window_params = [{transform_indices = @transform_0, window_bounds = array<i64: 1, 18, 18, 4>}, {pipeline_mode = #tpu.pipeline_mode<synchronous>, transform_indices = @transform_1, window_bounds = array<i64: 36, 32>}, {pipeline_mode = #tpu.pipeline_mode<synchronous>, transform_indices = @transform_2, window_bounds = array<i64: 288, 32>}, {pipeline_mode = #tpu.pipeline_mode<synchronous>, transform_indices = @transform_3, window_bounds = array<i64: 4, 32>}, {transform_indices = @transform_4, window_bounds = array<i64: 1, 16, 16, 32>}]} {
    %c0 = arith.constant 0 : index
    %c0_0 = arith.constant 0 : index
    %c0_1 = arith.constant 0 : index
    %c0_2 = arith.constant 0 : index
    %0 = vector.load %arg1[%c0, %c0_0, %c0_1, %c0_2] : memref<1x18x18x4xbf16, #tpu.memory_space<vmem>>, vector<1x16x16x4xbf16>
    %1 = vector.shape_cast %0 : vector<1x16x16x4xbf16> to vector<16x16x4xbf16>
    %c0_3 = arith.constant 0 : index
    %c0_4 = arith.constant 0 : index
    %c1 = arith.constant 1 : index
    %c0_5 = arith.constant 0 : index
    %2 = vector.load %arg1[%c0_3, %c0_4, %c1, %c0_5] : memref<1x18x18x4xbf16, #tpu.memory_space<vmem>>, vector<1x16x16x4xbf16>
    %3 = vector.shape_cast %2 : vector<1x16x16x4xbf16> to vector<16x16x4xbf16>
    %c0_6 = arith.constant 0 : index
    %c0_7 = arith.constant 0 : index
    %c2 = arith.constant 2 : index
    %c0_8 = arith.constant 0 : index
    %4 = vector.load %arg1[%c0_6, %c0_7, %c2, %c0_8] : memref<1x18x18x4xbf16, #tpu.memory_space<vmem>>, vector<1x16x16x4xbf16>
    %5 = vector.shape_cast %4 : vector<1x16x16x4xbf16> to vector<16x16x4xbf16>
    %c0_9 = arith.constant 0 : index
    %c1_10 = arith.constant 1 : index
    %c0_11 = arith.constant 0 : index
    %c0_12 = arith.constant 0 : index
    %6 = vector.load %arg1[%c0_9, %c1_10, %c0_11, %c0_12] : memref<1x18x18x4xbf16, #tpu.memory_space<vmem>>, vector<1x16x16x4xbf16>
    %7 = vector.shape_cast %6 : vector<1x16x16x4xbf16> to vector<16x16x4xbf16>
    %c0_13 = arith.constant 0 : index
    %c1_14 = arith.constant 1 : index
    %c1_15 = arith.constant 1 : index
    %c0_16 = arith.constant 0 : index
    %8 = vector.load %arg1[%c0_13, %c1_14, %c1_15, %c0_16] : memref<1x18x18x4xbf16, #tpu.memory_space<vmem>>, vector<1x16x16x4xbf16>
    %9 = vector.shape_cast %8 : vector<1x16x16x4xbf16> to vector<16x16x4xbf16>
    %c0_17 = arith.constant 0 : index
    %c1_18 = arith.constant 1 : index
    %c2_19 = arith.constant 2 : index
    %c0_20 = arith.constant 0 : index
    %10 = vector.load %arg1[%c0_17, %c1_18, %c2_19, %c0_20] : memref<1x18x18x4xbf16, #tpu.memory_space<vmem>>, vector<1x16x16x4xbf16>
    %11 = vector.shape_cast %10 : vector<1x16x16x4xbf16> to vector<16x16x4xbf16>
    %c0_21 = arith.constant 0 : index
    %c2_22 = arith.constant 2 : index
    %c0_23 = arith.constant 0 : index
    %c0_24 = arith.constant 0 : index
    %12 = vector.load %arg1[%c0_21, %c2_22, %c0_23, %c0_24] : memref<1x18x18x4xbf16, #tpu.memory_space<vmem>>, vector<1x16x16x4xbf16>
    %13 = vector.shape_cast %12 : vector<1x16x16x4xbf16> to vector<16x16x4xbf16>
    %c0_25 = arith.constant 0 : index
    %c2_26 = arith.constant 2 : index
    %c1_27 = arith.constant 1 : index
    %c0_28 = arith.constant 0 : index
    %14 = vector.load %arg1[%c0_25, %c2_26, %c1_27, %c0_28] : memref<1x18x18x4xbf16, #tpu.memory_space<vmem>>, vector<1x16x16x4xbf16>
    %15 = vector.shape_cast %14 : vector<1x16x16x4xbf16> to vector<16x16x4xbf16>
    %c0_29 = arith.constant 0 : index
    %c2_30 = arith.constant 2 : index
    %c2_31 = arith.constant 2 : index
    %c0_32 = arith.constant 0 : index
    %16 = vector.load %arg1[%c0_29, %c2_30, %c2_31, %c0_32] : memref<1x18x18x4xbf16, #tpu.memory_space<vmem>>, vector<1x16x16x4xbf16>
    %17 = vector.shape_cast %16 : vector<1x16x16x4xbf16> to vector<16x16x4xbf16>
    %18 = tpu.concatenate %1, %3, %5, %7, %9, %11, %13, %15, %17 in 2 : vector<16x16x4xbf16>, vector<16x16x4xbf16>, vector<16x16x4xbf16>, vector<16x16x4xbf16>, vector<16x16x4xbf16>, vector<16x16x4xbf16>, vector<16x16x4xbf16>, vector<16x16x4xbf16>, vector<16x16x4xbf16> -> vector<16x16x36xbf16>
    %19 = vector.shape_cast %18 : vector<16x16x36xbf16> to vector<256x36xbf16>
    %c0_33 = arith.constant 0 : index
    %c0_34 = arith.constant 0 : index
    %20 = vector.load %arg2[%c0_33, %c0_34] : memref<36x32xbf16, #tpu.memory_space<vmem>>, vector<36x32xbf16>
    %cst = arith.constant dense<0.000000e+00> : vector<256x32xf32>
    %21 = tpu.matmul %19, %20, %cst {dimension_numbers = #tpu.dot_dimension_numbers<[1], [0], [0], [1], [0, 0, 1, 1], [], []>} : vector<256x36xbf16>, vector<36x32xbf16>, vector<256x32xf32> -> vector<256x32xf32>
    %c0_35 = arith.constant 0 : index
    %c0_36 = arith.constant 0 : index
    %22 = vector.load %arg4[%c0_35, %c0_36] : memref<4x32xf32, #tpu.memory_space<vmem>>, vector<1x32xf32>
    %23 = vector.broadcast %22 : vector<1x32xf32> to vector<256x32xf32>
    %24 = arith.addf %21, %23 : vector<256x32xf32>
    %cst_37 = arith.constant dense<0.000000e+00> : vector<32xf32>
    %25 = vector.multi_reduction <add>, %24, %cst_37 [0] : vector<256x32xf32> to vector<32xf32>
    %26 = vector.shape_cast %25 : vector<32xf32> to vector<1x32xf32>
    %cst_38 = arith.constant 3.906250e-03 : f32
    %27 = vector.broadcast %cst_38 : f32 to vector<1x32xf32>
    %28 = arith.mulf %26, %27 : vector<1x32xf32>
    %29 = vector.broadcast %28 : vector<1x32xf32> to vector<256x32xf32>
    %30 = arith.subf %24, %29 : vector<256x32xf32>
    %31 = arith.mulf %30, %30 : vector<256x32xf32>
    %cst_39 = arith.constant dense<0.000000e+00> : vector<32xf32>
    %32 = vector.multi_reduction <add>, %31, %cst_39 [0] : vector<256x32xf32> to vector<32xf32>
    %33 = vector.shape_cast %32 : vector<32xf32> to vector<1x32xf32>
    %cst_40 = arith.constant 3.906250e-03 : f32
    %34 = vector.broadcast %cst_40 : f32 to vector<1x32xf32>
    %35 = arith.mulf %33, %34 : vector<1x32xf32>
    %cst_41 = arith.constant 0.000000e+00 : f32
    %36 = vector.broadcast %cst_41 : f32 to vector<1x32xf32>
    %37 = arith.maximumf %35, %36 : vector<1x32xf32>
    %cst_42 = arith.constant 9.99999974E-6 : f32
    %38 = vector.broadcast %cst_42 : f32 to vector<1x32xf32>
    %39 = arith.addf %37, %38 : vector<1x32xf32>
    %40 = math.rsqrt %39 : vector<1x32xf32>
    %41 = vector.broadcast %40 : vector<1x32xf32> to vector<256x32xf32>
    %42 = arith.mulf %30, %41 : vector<256x32xf32>
    %c1_43 = arith.constant 1 : index
    %c0_44 = arith.constant 0 : index
    %43 = vector.load %arg4[%c1_43, %c0_44] : memref<4x32xf32, #tpu.memory_space<vmem>>, vector<1x32xf32>
    %44 = vector.broadcast %43 : vector<1x32xf32> to vector<256x32xf32>
    %45 = arith.mulf %42, %44 : vector<256x32xf32>
    %c2_45 = arith.constant 2 : index
    %c0_46 = arith.constant 0 : index
    %46 = vector.load %arg4[%c2_45, %c0_46] : memref<4x32xf32, #tpu.memory_space<vmem>>, vector<1x32xf32>
    %47 = vector.broadcast %46 : vector<1x32xf32> to vector<256x32xf32>
    %48 = arith.addf %45, %47 : vector<256x32xf32>
    %49 = arith.negf %48 : vector<256x32xf32>
    %50 = math.exp %49 : vector<256x32xf32>
    %cst_47 = arith.constant 1.000000e+00 : f32
    %51 = vector.broadcast %cst_47 : f32 to vector<256x32xf32>
    %52 = arith.addf %51, %50 : vector<256x32xf32>
    %53 = arith.divf %51, %52 : vector<256x32xf32>
    %54 = arith.mulf %48, %53 : vector<256x32xf32>
    %cst_48 = arith.constant 0.000000e+00 : bf16
    %55 = vector.broadcast %cst_48 : bf16 to vector<20x20x32xbf16>
    %c0_49 = arith.constant 0 : index
    %c0_50 = arith.constant 0 : index
    %c0_51 = arith.constant 0 : index
    %56 = vector.load %arg6[%c0_49, %c0_50, %c0_51] : memref<20x20x32xbf16, #tpu.memory_space<vmem>>, vector<20x20x32xbf16>
    tpu.vector_store %arg6[%c0_49, %c0_50, %c0_51], %55 {strides = array<i32>} : memref<20x20x32xbf16, #tpu.memory_space<vmem>>, vector<20x20x32xbf16>,
    %57 = vector.shape_cast %54 : vector<256x32xf32> to vector<16x16x32xf32>
    %58 = arith.truncf %57 : vector<16x16x32xf32> to vector<16x16x32xbf16>
    %c2_52 = arith.constant 2 : index
    %c2_53 = arith.constant 2 : index
    %c0_54 = arith.constant 0 : index
    %59 = vector.load %arg6[%c2_52, %c2_53, %c0_54] : memref<20x20x32xbf16, #tpu.memory_space<vmem>>, vector<16x16x32xbf16>
    tpu.vector_store %arg6[%c2_52, %c2_53, %c0_54], %58 {strides = array<i32>} : memref<20x20x32xbf16, #tpu.memory_space<vmem>>, vector<16x16x32xbf16>,
    %c0_55 = arith.constant 0 : index
    %c0_56 = arith.constant 0 : index
    %c0_57 = arith.constant 0 : index
    %60 = vector.load %arg6[%c0_55, %c0_56, %c0_57] : memref<20x20x32xbf16, #tpu.memory_space<vmem>>, vector<16x16x32xbf16>
    %c0_58 = arith.constant 0 : index
    %c2_59 = arith.constant 2 : index
    %c0_60 = arith.constant 0 : index
    %61 = vector.load %arg6[%c0_58, %c2_59, %c0_60] : memref<20x20x32xbf16, #tpu.memory_space<vmem>>, vector<16x16x32xbf16>
    %c0_61 = arith.constant 0 : index
    %c4 = arith.constant 4 : index
    %c0_62 = arith.constant 0 : index
    %62 = vector.load %arg6[%c0_61, %c4, %c0_62] : memref<20x20x32xbf16, #tpu.memory_space<vmem>>, vector<16x16x32xbf16>
    %c2_63 = arith.constant 2 : index
    %c0_64 = arith.constant 0 : index
    %c0_65 = arith.constant 0 : index
    %63 = vector.load %arg6[%c2_63, %c0_64, %c0_65] : memref<20x20x32xbf16, #tpu.memory_space<vmem>>, vector<16x16x32xbf16>
    %c2_66 = arith.constant 2 : index
    %c2_67 = arith.constant 2 : index
    %c0_68 = arith.constant 0 : index
    %64 = vector.load %arg6[%c2_66, %c2_67, %c0_68] : memref<20x20x32xbf16, #tpu.memory_space<vmem>>, vector<16x16x32xbf16>
    %c2_69 = arith.constant 2 : index
    %c4_70 = arith.constant 4 : index
    %c0_71 = arith.constant 0 : index
    %65 = vector.load %arg6[%c2_69, %c4_70, %c0_71] : memref<20x20x32xbf16, #tpu.memory_space<vmem>>, vector<16x16x32xbf16>
    %c4_72 = arith.constant 4 : index
    %c0_73 = arith.constant 0 : index
    %c0_74 = arith.constant 0 : index
    %66 = vector.load %arg6[%c4_72, %c0_73, %c0_74] : memref<20x20x32xbf16, #tpu.memory_space<vmem>>, vector<16x16x32xbf16>
    %c4_75 = arith.constant 4 : index
    %c2_76 = arith.constant 2 : index
    %c0_77 = arith.constant 0 : index
    %67 = vector.load %arg6[%c4_75, %c2_76, %c0_77] : memref<20x20x32xbf16, #tpu.memory_space<vmem>>, vector<16x16x32xbf16>
    %c4_78 = arith.constant 4 : index
    %c4_79 = arith.constant 4 : index
    %c0_80 = arith.constant 0 : index
    %68 = vector.load %arg6[%c4_78, %c4_79, %c0_80] : memref<20x20x32xbf16, #tpu.memory_space<vmem>>, vector<16x16x32xbf16>
    %69 = tpu.concatenate %60, %61, %62, %63, %64, %65, %66, %67, %68 in 2 : vector<16x16x32xbf16>, vector<16x16x32xbf16>, vector<16x16x32xbf16>, vector<16x16x32xbf16>, vector<16x16x32xbf16>, vector<16x16x32xbf16>, vector<16x16x32xbf16>, vector<16x16x32xbf16>, vector<16x16x32xbf16> -> vector<16x16x288xbf16>
    %70 = vector.shape_cast %69 : vector<16x16x288xbf16> to vector<256x288xbf16>
    %c0_81 = arith.constant 0 : index
    %c0_82 = arith.constant 0 : index
    %71 = vector.load %arg3[%c0_81, %c0_82] : memref<288x32xbf16, #tpu.memory_space<vmem>>, vector<288x32xbf16>
    %cst_83 = arith.constant dense<0.000000e+00> : vector<256x32xf32>
    %72 = tpu.matmul %70, %71, %cst_83 {dimension_numbers = #tpu.dot_dimension_numbers<[1], [0], [0], [1], [0, 0, 1, 1], [], []>} : vector<256x288xbf16>, vector<288x32xbf16>, vector<256x32xf32> -> vector<256x32xf32>
    %c3 = arith.constant 3 : index
    %c0_84 = arith.constant 0 : index
    %73 = vector.load %arg4[%c3, %c0_84] : memref<4x32xf32, #tpu.memory_space<vmem>>, vector<1x32xf32>
    %74 = vector.broadcast %73 : vector<1x32xf32> to vector<256x32xf32>
    %75 = arith.addf %72, %74 : vector<256x32xf32>
    %76 = vector.shape_cast %75 : vector<256x32xf32> to vector<1x16x16x32xf32>
    %c0_85 = arith.constant 0 : index
    %c0_86 = arith.constant 0 : index
    %c0_87 = arith.constant 0 : index
    %c0_88 = arith.constant 0 : index
    %77 = vector.load %arg5[%c0_85, %c0_86, %c0_87, %c0_88] : memref<1x16x16x32xf32, #tpu.memory_space<vmem>>, vector<1x16x16x32xf32>
    tpu.vector_store %arg5[%c0_85, %c0_86, %c0_87, %c0_88], %76 {strides = array<i32>} : memref<1x16x16x32xf32, #tpu.memory_space<vmem>>, vector<1x16x16x32xf32>,
    return
  }
  func.func @transform_0(%arg0: i32) -> (i32, i32, i32, i32) {
    %c0_i32 = arith.constant 0 : i32
    %c0_i32_0 = arith.constant 0 : i32
    %c0_i32_1 = arith.constant 0 : i32
    %c0_i32_2 = arith.constant 0 : i32
    return %arg0, %c0_i32, %c0_i32_0, %c0_i32_1 : i32, i32, i32, i32
  }
  func.func @transform_1(%arg0: i32) -> (i32, i32) {
    %c0_i32 = arith.constant 0 : i32
    %c0_i32_0 = arith.constant 0 : i32
    %c0_i32_1 = arith.constant 0 : i32
    return %c0_i32, %c0_i32_0 : i32, i32
  }
  func.func @transform_2(%arg0: i32) -> (i32, i32) {
    %c0_i32 = arith.constant 0 : i32
    %c0_i32_0 = arith.constant 0 : i32
    %c0_i32_1 = arith.constant 0 : i32
    return %c0_i32, %c0_i32_0 : i32, i32
  }
  func.func @transform_3(%arg0: i32) -> (i32, i32) {
    %c0_i32 = arith.constant 0 : i32
    %c0_i32_0 = arith.constant 0 : i32
    %c0_i32_1 = arith.constant 0 : i32
    return %c0_i32, %c0_i32_0 : i32, i32
  }
  func.func @transform_4(%arg0: i32) -> (i32, i32, i32, i32) {
    %c0_i32 = arith.constant 0 : i32
    %c0_i32_0 = arith.constant 0 : i32
    %c0_i32_1 = arith.constant 0 : i32
    %c0_i32_2 = arith.constant 0 : i32
    return %arg0, %c0_i32, %c0_i32_0, %c0_i32_1 : i32, i32, i32, i32
  }
}

</mosaic_0001>

<bundles_post_ra>
// kernel: tpu_custom_call.1
= control target key start
LH: loop header
LB: loop body
LE: loop exit
PB: predicated region body
PF: predicated region fallthrough
CT: control target
= control target key end

     0   :  { %9 = vsyncpa [#allocation4], 0  ;;  %s10282_s0 = inlined_call_operand.vmem [shape: bf16[2,18,18,4], index: 0, kind: input, shape index: {}]   ;;  %s10283_s1 = inlined_call_operand.vmem [shape: bf16[36,32], index: 1, kind: input, shape index: {}]   ;;  %s10284_s2 = inlined_call_operand.vmem [shape: bf16[288,32], index: 2, kind: input, shape index: {}]   ;;  %s10285_s3 = inlined_call_operand.vmem [shape: f32[4,32], index: 3, kind: input, shape index: {}]   ;;  %s10286_s4 = inlined_call_operand.hbm [shape: f32[2,16,16,32], index: 4, kind: output, shape index: {}]  }
   0x1   :  { %11 = vsyncpa [#allocation4 + $0x1], 0  ;;  %s7362_s15 = smov 0   ;;  %s7364_s16 = smov 0  }
   0x2   :  { %s7366_s17 = smov 0   ;;  %s7368_s18 = smov 0  }
   0x3 LB: > { %s7383_s19 = sadd.s32 4294967295, %s7322_s18   ;;  %s5732_s20 = sadd.s32 4294967294, %s7322_s18   ;;  %s7322_s18 = sphi %s7368_s18, %s10297_s18   ;;  %s7318_s17 = sphi %s7366_s17, %s10296_s17   ;;  %s7314_s16 = sphi %s7364_s16, %s10295_s16   ;;  %s7310_s15 = sphi %s7362_s15, %s10294_s15  }
   0x4   : > { %s7387_s21 = sadd.s32 1, %s7322_s18   ;;  %s113_s22 = sadd.s32 1, %s7318_s17 }
   0x5   : > { %s110_s23 = ssub.s32 %s7322_s18, %s7387_s21  ;;  %p123_p0 = scmp.ne.s32.totalorder %s7318_s17, %s7314_s16 }
   0x6   : > { %p111_p1 = scmp.eq.s32.totalorder %s110_s23, 0  ;;  %p124_p2 = scmp.eq.s32.totalorder %s7383_s19, 1 }
   0x7   : > { %p129_p3 = scmp.ne.s32.totalorder %s7314_s16, %s7310_s15  ;;  %p130_p4 = scmp.eq.s32.totalorder %s5732_s20, 1 }
   0x8   : > { %s7398_s24 = scalar_select %p111_p1, %s7318_s17, %s113_s22  }
   0x9   : > { %p7400_p5 = por %p124_p2, %p123_p0  ;;  %p7404_p6 = por %p130_p4, %p129_p3 }
   0xa   : > { %p5735_p7 = scmp.ge.s32.totalorder %s7322_s18, 1  ;;  %p165_p8 = scmp.lt.s32.totalorder %s7322_s18, 3 }
   0xc   : > { %p166_p9 = pnand %p5735_p7, %p165_p8 }
   0xe   : > { %169 = sbr.rel (%p166_p9) target bundleno = 1351 (0x547), region = 36 }
  0x13   : > { %p191_p10 = scmp.lt.s32.totalorder %s7383_s19, 1  ;;  %vm792_vm0 = vcmask 1046528   ;;  %s7324_s6 = smov 12   ;;  %vm519_vm1 = vsmask.f32 7424  ;;  %vm2219_vm2 = vcmask 1041408  }
  0x14   : > { %s7325_s7 = smov 20   ;;  %s7326_s8 = smov 8   ;;  %vm1897_vm3 = vcmask 31744   ;;  %vm1930_vm4 = vcmask 64512   ;;  %vm1963_vm5 = vcmask 97280   ;;  %vm1996_vm6 = vcmask 130048  }
  0x15   : > { %s192_s27 = scalar_select %p191_p10, %s7383_s19, 1  ;;  %vm2029_vm7 = vcmask 162816   ;;  %vm2062_vm8 = vcmask 195584   ;;  %vm2095_vm9 = vcmask 228352   ;;  %vm2128_vm10 = vcmask 261120  }
  0x16   : > { %s7327_s9 = smov 4   ;;  %s7328_s10 = smov 16   ;;  %vm2186_vm11 = vcmask 293888   ;;  %vm2921_vm12 = vcmask 257024   ;;  %vm2924_vm13 = vcmask 254976   ;;  %vm3902_vm14 = vcmask 1045504  }
  0x17   : > { %s6649_s28 = smul.u32 216, %s192_s27  ;;  %s7329_s11 = smov 24   ;;  %vm3079_vm15 = vcmask 1040384  }
  0x18   : > { %s7330_s12 = smov 28   ;;  %s7331_s13 = smov 32  }
  0x19   : > { %s7415_s5 = scalar_lea.vmem %s10282_s0, %s6649_s28  ;;  %s7335_s27 = smov [#allocation3]  }
  0x1a   : > { %v5740_v0 = vld [vmem:[%s7415_s5 + $0x18] sm:$0xf]  ;;  %v5741_v1 = vld [vmem:[%s7415_s5 + $0x1c] sm:$0xf]  ;;  %v5738_v5 = vld [vmem:[%s7415_s5 + $0xc] sm:$0xf] }
  0x1b   : > { %v5787_v2 = vld [vmem:[%s7415_s5 + $0x18] sm:$0xe]  ;;  %v7420_v3 = vcombine.low %v5740_v0, %v5741_v1  ;;  %v5739_v6 = vld [vmem:[%s7415_s5 + $0x10] sm:$0xf]  ;;  %v5786_v7 = vld [vmem:[%s7415_s5 + $0xc] sm:$0xe] }
  0x1c   : > { %v5947_v4 = vcombine.low %v5787_v2, %v5741_v1  ;;  %v7425_v8 = vcombine.low %v5738_v5, %v5739_v6  ;;  %v5946_v9 = vcombine.low %v5786_v7, %v5739_v6  ;;  %v7428_v10 = vld [vmem:[%s7415_s5 + $0x14] ss:$0 sps:$4 sm:$0x11]   ;;  %v198_v12 = vld [vmem:[%s7415_s5 + $0x4] sm:$0xf]  ;;  %s7266_s28 = sshll.u32 %s7335_s27, 4  ;;  %s7267_s28 = int_to_ptr.vmem [resolvable:$false] %s7266_s28 }
  0x1d   : > { %955 = vrot.lane.b32.xlu1 %v7420_v3, %s7324_s6  ;;  %v1048_v11 = vshll.u32 %v7420_v3, 16  ;;  %v1306_v15 = vrot.slane %v7428_v10, 1  ;;  %v245_v16 = vld [vmem:[%s7415_s5] sm:$0xe]  ;;  %v1046_v21 = vshrl.u32 %v7420_v3, 16  ;;  %v1041_v59 = vshll.u32 %v7428_v10, 16 }
  0x1e   : > { %953 = vrot.lane.b32.xlu0 %v7425_v8, %s7324_s6  ;;  %v1036_v13 = vshll.u32 %v7425_v8, 16  ;;  %v1305_v14 = vrot.slane %v5946_v9, 1  ;;  %v1308_v17 = vrot.slane %v5947_v4, 1  ;;  %v6706_v18 = vld [vmem:[%s7415_s5 + $0x8] ss:$0 sps:$4 sm:$0x11]   ;;  %v5898_v19 = vcombine.low %v245_v16, %v198_v12 }
  0x1f   : > { %v197_v20 = vld [vmem:[%s7415_s5] sm:$0xf]  ;;  %v199_v24 = vld [vmem:[%s7415_s5 + $0xc] sm:$0xf]  ;;  %v200_v25 = vld [vmem:[%s7415_s5 + $0x10] sm:$0xf] }
  0x20   : > { %v1307_v22 = vsel %vm792_vm0, %v1305_v14, %v1306_v15  ;;  %v7443_v23 = vcombine.low %v197_v20, %v198_v12  ;;  %v793_v26 = vrot.slane %v5898_v19, 1  ;;  %v794_v27 = vrot.slane %v6706_v18, 1  ;;  %v246_v28 = vld [vmem:[%s7415_s5 + $0xc] sm:$0xe]  ;;  %v5804_v43 = vld [vmem:[%s7415_s5 + $0x24] sm:$0xf] }
  0x21   : > { %v7448_v29 = vcombine.low %v199_v24, %v200_v25  ;;  %v528_v30 = vshll.u32 %v6706_v18, 16  ;;  %v6710_v31 = vld [vmem:[%s7415_s5 + $0x14] ss:$0 sps:$4 sm:$0x11]   ;;  %v5899_v32 = vcombine.low %v246_v28, %v200_v25  ;;  %v1050_v35 = vrot.slane %v1048_v11, 1  ;;  %s7268_s29 = scalar_lea.vmem %s7267_s28, 8192 }
  0x22   : > { %1353 = vrot.lane.b32.xlu0 %v1307_v22, %s7325_s7  ;;  %v521_v33 = vshrl.u32 %v7443_v23, 16  ;;  %v523_v34 = vshll.u32 %v7443_v23, 16  ;;  %v795_v36 = vsel %vm792_vm0, %v793_v26, %v794_v27  ;;  %v6712_v38 = vld [vmem:[%s7415_s5 + $0x20] ss:$0 sps:$4 sm:$0x11]   ;;  %v797_v40 = vrot.slane %v6710_v31, 1 }
  0x23   : > { %v530_v37 = vrot.slane %v528_v30, 1  ;;  %841 = vrot.lane.b32.xlu1 %v795_v36, %s7326_s8  ;;  %v796_v39 = vrot.slane %v5899_v32, 1  ;;  %v533_v42 = vshrl.u32 %v7448_v29, 16  ;;  %v1309_v44 = vrot.slane %v6712_v38, 1  ;;  %v7461_v48 = vld [vmem:[%s7415_s5 + $0x28] sm:$0xf] }
  0x24   : > { %v525_v41 = vrot.slane %v523_v34, 1  ;;  %v535_v45 = vshll.u32 %v7448_v29, 16  ;;  %v540_v46 = vshll.u32 %v6710_v31, 16  ;;  %v1053_v47 = vshll.u32 %v6712_v38, 16  ;;  %v5802_v53 = vld [vmem:[%s7415_s5 + $0x18] sm:$0xf] }
  0x25   : > { %v798_v49 = vsel %vm792_vm0, %v796_v39, %v797_v40  ;;  %v1034_v51 = vshrl.u32 %v7425_v8, 16  ;;  %v1038_v52 = vrot.slane %v1036_v13, 1  ;;  %v5803_v56 = vld [vmem:[%s7415_s5 + $0x1c] sm:$0xf]  ;;  %v1051_v58 = vor.u32 %v1050_v35, %v1046_v21  ;;  %v5850_v7 = vld [vmem:[%s7415_s5 + $0x18] sm:$0xe] }
  0x26   : > { %v526_v50 = vor.u32 %v525_v41, %v521_v33  ;;  %v537_v54 = vrot.slane %v535_v45, 1  ;;  %v542_v55 = vrot.slane %v540_v46, 1  ;;  %v5963_v60 = vcombine.low %v5804_v43, %v7461_v48  ;;  %v7474_v1 = vld [vmem:[%s7415_s5 + $0x2c] ss:$0 sps:$4 sm:$0x11]  }
  0x27   : > { %843 = vrot.lane.b32.xlu1 %v798_v49, %s7326_s8  ;;  %v1310_v61 = vsel %vm792_vm0, %v1308_v17, %v1309_v44  ;;  %v1055_v63 = vrot.slane %v1053_v47, 1  ;;  %v5962_v0 = vcombine.low %v5802_v53, %v5803_v56  ;;  %v1039_v2 = vor.u32 %v1038_v52, %v1034_v51  ;;  %v6718_v5 = vld [vmem:[%s7415_s5 + $0x20] ss:$0 sps:$4 sm:$0x11]   ;;  %v201_v10 = vld [vmem:[%s7415_s5 + $0x18] sm:$0xf] }
  0x28   : > { %v531_v57 = vsel %vm519_vm1, %v526_v50, %v530_v37  ;;  %v538_v62 = vor.u32 %v537_v54, %v533_v42  ;;  %v1043_v3 = vrot.slane %v1041_v59, 1  ;;  %v1560_v4 = vshll.u32 %v5963_v60, 16  ;;  %v7483_v13 = vld [vmem:[%s7415_s5 + $0x1c] sm:$0xf]  ;;  %v203_v21 = vld [vmem:[%s7415_s5 + $0x24] sm:$0xf] }
  0x29   : > { %712 = vrot.lane.b32.xlu0 %v531_v57, %s7327_s9  ;;  %v1548_v8 = vshll.u32 %v5962_v0, 16  ;;  %v1558_v9 = vshrl.u32 %v5963_v60, 16  ;;  %v1565_v12 = vshll.u32 %v7474_v1, 16  ;;  %v1056_v14 = vsel %vm519_vm1, %v1051_v58, %v1055_v63  ;;  %v7491_v17 = vld [vmem:[%s7415_s5 + $0x20] ss:$0 sps:$4 sm:$0x11]  }
  0x2a   : > { %v543_v6 = vsel %vm519_vm1, %v538_v62, %v542_v55  ;;  %v1562_v11 = vrot.slane %v1560_v4, 1  ;;  %v1546_v15 = vshrl.u32 %v5962_v0, 16  ;;  %v7488_v16 = vcombine.low %v201_v10, %v7483_v13  ;;  %v204_v22 = vld [vmem:[%s7415_s5 + $0x28] sm:$0xf]  ;;  %v5851_v37 = vld [vmem:[%s7415_s5 + $0x24] sm:$0xe] }
  0x2b   : > { %1355 = vrot.lane.b32.xlu1 %v1310_v61, %s7325_s7  ;;  %v1044_v18 = vsel %vm519_vm1, %v1039_v2, %v1043_v3  ;;  %v1550_v19 = vrot.slane %v1548_v8, 1  ;;  %v1553_v20 = vshll.u32 %v6718_v5, 16  ;;  %v5994_v24 = vcombine.low %v5850_v7, %v5803_v56  ;;  %v6722_v33 = vld [vmem:[%s7415_s5 + $0x2c] ss:$0 sps:$4 sm:$0x11]  }
  0x2c   : > { %v547_v25 = vshll.u32 %v7488_v16, 16  ;;  %v1563_v26 = vor.u32 %v1562_v11, %v1558_v9  ;;  %v1567_v27 = vrot.slane %v1565_v12, 1  ;;  %v552_v28 = vshll.u32 %v7491_v17, 16  ;;  %v248_v42 = vld [vmem:[%s7415_s5 + $0x24] sm:$0xe] }
  0x2d   : > { %714 = vrot.lane.b32.xlu0 %v543_v6, %s7327_s9  ;;  %v7499_v30 = vcombine.low %v203_v21, %v204_v22  ;;  %v545_v31 = vshrl.u32 %v7488_v16, 16  ;;  %v1551_v34 = vor.u32 %v1550_v19, %v1546_v15  ;;  %v1555_v35 = vrot.slane %v1553_v20, 1  ;;  %v247_v47 = vld [vmem:[%s7415_s5 + $0x18] sm:$0xe]  ;;  %v5744_v51 = vld [vmem:[%s7415_s5 + $0x30] sm:$0xf] }
  0x2e   : > { %v549_v32 = vrot.slane %v547_v25, 1  ;;  %v1568_v38 = vsel %vm519_vm1, %v1563_v26, %v1567_v27  ;;  %v554_v39 = vrot.slane %v552_v28, 1  ;;  %v1817_v40 = vrot.slane %v5994_v24, 1  ;;  %v5745_v52 = vld [vmem:[%s7415_s5 + $0x34] sm:$0xf] }
  0x2f   : > { %1227 = vrot.lane.b32.xlu1 %v1056_v14, %s7328_s10  ;;  %v559_v36 = vshll.u32 %v7499_v30, 16  ;;  %v1818_v41 = vrot.slane %v6718_v5, 1  ;;  %v557_v44 = vshrl.u32 %v7499_v30, 16  ;;  %v564_v46 = vshll.u32 %v6722_v33, 16  ;;  %v5742_v53 = vld [vmem:[%s7415_s5 + $0x24] sm:$0xf] }
  0x30   : > { %v550_v43 = vor.u32 %v549_v32, %v545_v31  ;;  %v5995_v49 = vcombine.low %v5851_v37, %v7461_v48  ;;  %v1556_v50 = vsel %vm519_vm1, %v1551_v34, %v1555_v35  ;;  %v5743_v54 = vld [vmem:[%s7415_s5 + $0x28] sm:$0xf]  ;;  %v5901_v56 = vcombine.low %v248_v42, %v204_v22  ;;  %v6730_v9 = vld [vmem:[%s7415_s5 + $0x2c] ss:$0 sps:$4 sm:$0x11]  }
  0x31   : > { %1225 = vrot.lane.b32.xlu0 %v1044_v18, %s7328_s10  ;;  %v561_v45 = vrot.slane %v559_v36, 1  ;;  %v1819_v55 = vsel %vm792_vm0, %v1817_v40, %v1818_v41  ;;  %v566_v59 = vrot.slane %v564_v46, 1  ;;  %v5917_v48 = vcombine.low %v5744_v51, %v5745_v52  ;;  %v5789_v10 = vld [vmem:[%s7415_s5 + $0x30] sm:$0xe]  ;;  %v5788_v11 = vld [vmem:[%s7415_s5 + $0x24] sm:$0xe] }
  0x32   : > { %v555_v57 = vsel %vm519_vm1, %v550_v43, %v554_v39  ;;  %v1821_v61 = vrot.slane %v7474_v1, 1  ;;  %v5900_v62 = vcombine.low %v247_v47, %v7483_v13  ;;  %v5916_v63 = vcombine.low %v5742_v53, %v5743_v54  ;;  %v5808_v19 = vld [vmem:[%s7415_s5 + $0x3c] sm:$0xf]  ;;  %v7541_v20 = vld [vmem:[%s7415_s5 + $0x40] sm:$0xf] }
  0x33   : > { %1467 = vrot.lane.b32.xlu1 %v5963_v60, %s7329_s11  ;;  %v562_v58 = vor.u32 %v561_v45, %v557_v44  ;;  %v1820_v60 = vrot.slane %v5995_v49, 1  ;;  %v802_v3 = vrot.slane %v5901_v56, 1  ;;  %v803_v4 = vrot.slane %v6722_v33, 1  ;;  %v5806_v24 = vld [vmem:[%s7415_s5 + $0x30] sm:$0xf] }
  0x34   : > { %v1072_v5 = vshll.u32 %v5917_v48, 16  ;;  %v799_v6 = vrot.slane %v5900_v62, 1  ;;  %v800_v7 = vrot.slane %v7491_v17, 1  ;;  %v1060_v8 = vshll.u32 %v5916_v63, 16  ;;  %v5807_v25 = vld [vmem:[%s7415_s5 + $0x34] sm:$0xf] }
  0x35   : > { %1465 = vrot.lane.b32.xlu0 %v5962_v0, %s7329_s11  ;;  %v7526_v0 = vld [vmem:[%s7415_s5 + $0x38] ss:$0 sps:$4 sm:$0x11]   ;;  %v567_v2 = vsel %vm519_vm1, %v562_v58, %v566_v59  ;;  %v1822_v1 = vsel %vm792_vm0, %v1820_v60, %v1821_v61  ;;  %v1070_v12 = vshrl.u32 %v5917_v48, 16  ;;  %v804_v14 = vsel %vm792_vm0, %v802_v3, %v803_v4  ;;  %v205_v36 = vld [vmem:[%s7415_s5 + $0x30] sm:$0xf] }
  0x36   : > { %v1077_v13 = vshll.u32 %v7526_v0, 16  ;;  %v1074_v15 = vrot.slane %v1072_v5, 1  ;;  %v1058_v18 = vshrl.u32 %v5916_v63, 16  ;;  %v801_v17 = vsel %vm792_vm0, %v799_v6, %v800_v7  ;;  %v7551_v37 = vld [vmem:[%s7415_s5 + $0x34] sm:$0xf] }
  0x37   : > { %1739 = vrot.lane.b32.xlu1 %v1568_v38, %s7330_s12  ;;  %v1062_v21 = vrot.slane %v1060_v8, 1  ;;  %v1065_v22 = vshll.u32 %v6730_v9, 16  ;;  %v5949_v26 = vcombine.low %v5789_v10, %v5745_v52  ;;  %v5948_v27 = vcombine.low %v5788_v11, %v5743_v54  ;;  %v7556_v43 = vld [vmem:[%s7415_s5 + $0x44] ss:$0 sps:$4 sm:$0x11]  }
  0x38   : > { %v5965_v28 = vcombine.low %v5808_v19, %v7541_v20  ;;  %v1075_v31 = vor.u32 %v1074_v15, %v1070_v12  ;;  %v1079_v32 = vrot.slane %v1077_v13, 1  ;;  %v5964_v33 = vcombine.low %v5806_v24, %v5807_v25  ;;  %v6736_v46 = vld [vmem:[%s7415_s5 + $0x38] ss:$0 sps:$4 sm:$0x11]   ;;  %v208_v51 = vld [vmem:[%s7415_s5 + $0x40] sm:$0xf] }
  0x39   : > { %1737 = vrot.lane.b32.xlu0 %v1556_v50, %s7330_s12  ;;  %v1063_v34 = vor.u32 %v1062_v21, %v1058_v18  ;;  %v1067_v35 = vrot.slane %v1065_v22, 1  ;;  %v1314_v38 = vrot.slane %v5949_v26, 1  ;;  %v1315_v39 = vrot.slane %v7526_v0, 1  ;;  %v207_v50 = vld [vmem:[%s7415_s5 + $0x3c] sm:$0xf] }
  0x3a   : > { %v1311_v40 = vrot.slane %v5948_v27, 1  ;;  %v1312_v41 = vrot.slane %v6730_v9, 1  ;;  %v1584_v42 = vshll.u32 %v5965_v28, 16  ;;  %v1080_v44 = vsel %vm519_vm1, %v1075_v31, %v1079_v32  ;;  %v6740_v6 = vld [vmem:[%s7415_s5 + $0x44] ss:$0 sps:$4 sm:$0x11]  }
  0x3b   : > { %716 = vrot.lane.b32.xlu1 %v555_v57, %s7327_s9  ;;  %v1572_v45 = vshll.u32 %v5964_v33, 16  ;;  %v7562_v47 = vcombine.low %v205_v36, %v7551_v37  ;;  %v1068_v49 = vsel %vm519_vm1, %v1063_v34, %v1067_v35  ;;  %v1582_v52 = vshrl.u32 %v5965_v28, 16  ;;  %v5852_v57 = vld [vmem:[%s7415_s5 + $0x30] sm:$0xe]  ;;  %v250_v21 = vld [vmem:[%s7415_s5 + $0x3c] sm:$0xe] }
  0x3c   : > { %v1586_v53 = vrot.slane %v1584_v42, 1  ;;  %v1589_v54 = vshll.u32 %v7556_v43, 16  ;;  %v1316_v56 = vsel %vm792_vm0, %v1314_v38, %v1315_v39  ;;  %v7576_v59 = vcombine.low %v207_v50, %v208_v51  ;;  %v5749_v24 = vld [vmem:[%s7415_s5 + $0x4c] sm:$0xf]  ;;  %v5746_v26 = vld [vmem:[%s7415_s5 + $0x3c] sm:$0xf] }
  0x3d   : > { %1865 = vrot.lane.b32.xlu0 %v1819_v55, %s7331_s13  ;;  %v7570_v55 = vld [vmem:[%s7415_s5 + $0x38] ss:$0 sps:$4 sm:$0x11]   ;;  %v571_v58 = vshll.u32 %v7562_v47, 16  ;;  %v1570_v60 = vshrl.u32 %v5964_v33, 16  ;;  %v1574_v61 = vrot.slane %v1572_v45, 1  ;;  %v5996_v0 = vcombine.low %v5852_v57, %v5807_v25 }
  0x3e   : > { %v1577_v62 = vshll.u32 %v6736_v46, 16  ;;  %v1591_v3 = vrot.slane %v1589_v54, 1  ;;  %v576_v4 = vshll.u32 %v7570_v55, 16  ;;  %v569_v5 = vshrl.u32 %v7562_v47, 16  ;;  %v249_v25 = vld [vmem:[%s7415_s5 + $0x30] sm:$0xe] }
  0x3f   : > { %718 = vrot.lane.b32.xlu1 %v567_v2, %s7327_s9  ;;  %v1587_v2 = vor.u32 %v1586_v53, %v1582_v52  ;;  %v583_v7 = vshll.u32 %v7576_v59, 16  ;;  %v1575_v8 = vor.u32 %v1574_v61, %v1570_v60  ;;  %v1823_v13 = vrot.slane %v5996_v0, 1  ;;  %v5747_v27 = vld [vmem:[%s7415_s5 + $0x40] sm:$0xf]  ;;  %v5791_v53 = vld [vmem:[%s7415_s5 + $0x48] sm:$0xe] }
  0x40   : > { %v1579_v9 = vrot.slane %v1577_v62, 1  ;;  %v578_v12 = vrot.slane %v576_v4, 1  ;;  %v581_v18 = vshrl.u32 %v7576_v59, 16  ;;  %v5903_v31 = vcombine.low %v250_v21, %v208_v51  ;;  %v5812_v54 = vld [vmem:[%s7415_s5 + $0x54] sm:$0xf] }
  0x41   : > { %1867 = vrot.lane.b32.xlu0 %v1822_v1, %s7331_s13  ;;  %v573_v1 = vrot.slane %v571_v58, 1  ;;  %v1592_v11 = vsel %vm519_vm1, %v1587_v2, %v1591_v3  ;;  %v585_v19 = vrot.slane %v583_v7, 1  ;;  %v1827_v38 = vrot.slane %v7556_v43, 1  ;;  %v7620_v60 = vld [vmem:[%s7415_s5 + $0x58] sm:$0xf] }
  0x42   : > { %v1580_v22 = vsel %vm519_vm1, %v1575_v8, %v1579_v9  ;;  %v5902_v39 = vcombine.low %v249_v25, %v7551_v37  ;;  %v808_v42 = vrot.slane %v5903_v31, 1  ;;  %v806_v50 = vrot.slane %v7570_v55, 1  ;;  %v5790_v61 = vld [vmem:[%s7415_s5 + $0x3c] sm:$0xe]  ;;  %v5810_v0 = vld [vmem:[%s7415_s5 + $0x48] sm:$0xf] }
  0x43   : > { %847 = vrot.lane.b32.xlu1 %v804_v14, %s7326_s8  ;;  %v1824_v14 = vrot.slane %v6736_v46, 1  ;;  %v574_v15 = vor.u32 %v573_v1, %v569_v5  ;;  %v7626_v2 = vld [vmem:[%s7415_s5 + $0x4c] sm:$0xf]  ;;  %v5951_v3 = vcombine.low %v5791_v53, %v5749_v24  ;;  %v5967_v4 = vcombine.low %v5812_v54, %v7620_v60  ;;  %v211_v25 = vld [vmem:[%s7415_s5 + $0x54] sm:$0xf] }
  0x44   : > { %v805_v37 = vrot.slane %v5902_v39, 1  ;;  %v5950_v5 = vcombine.low %v5790_v61, %v5747_v27  ;;  %v5966_v9 = vcombine.low %v5810_v0, %v7626_v2  ;;  %v252_v61 = vld [vmem:[%s7415_s5 + $0x54] sm:$0xe] }
  0x45   : > { %845 = vrot.lane.b32.xlu0 %v801_v17, %s7326_s8  ;;  %v588_v17 = vshll.u32 %v6740_v6, 16  ;;  %v579_v32 = vsel %vm519_vm1, %v574_v15, %v578_v12  ;;  %v1825_v36 = vsel %vm792_vm0, %v1823_v13, %v1824_v14  ;;  %v1320_v12 = vrot.slane %v5951_v3, 1  ;;  %v7639_v15 = vld [vmem:[%s7415_s5 + $0x5c] ss:$0 sps:$4 sm:$0x11]  }
  0x46   : > { %v807_v55 = vsel %vm792_vm0, %v805_v37, %v806_v50  ;;  %v1608_v14 = vshll.u32 %v5967_v4, 16  ;;  %v1613_v31 = vshll.u32 %v7639_v15, 16  ;;  %v1594_v39 = vshrl.u32 %v5966_v9, 16 }
  0x47   : > { %959 = vrot.lane.b32.xlu1 %v5917_v48, %s7324_s6  ;;  %v1313_v48 = vsel %vm792_vm0, %v1311_v40, %v1312_v41  ;;  %v590_v34 = vrot.slane %v588_v17, 1  ;;  %v5918_v40 = vcombine.low %v5746_v26, %v5747_v27  ;;  %v7605_v41 = vld [vmem:[%s7415_s5 + $0x50] ss:$0 sps:$4 sm:$0x11]   ;;  %v7652_v26 = vld [vmem:[%s7415_s5 + $0x58] sm:$0xf] }
  0x48   : > { %v1101_v58 = vshll.u32 %v7605_v41, 16  ;;  %v1321_v13 = vrot.slane %v7605_v41, 1  ;;  %v7644_v17 = vld [vmem:[%s7415_s5 + $0x50] ss:$0 sps:$4 sm:$0x11]   ;;  %v1606_v27 = vshrl.u32 %v5967_v4, 16 }
  0x49   : > { %957 = vrot.lane.b32.xlu0 %v5916_v63, %s7324_s6  ;;  %v5853_v63 = vld [vmem:[%s7415_s5 + $0x3c] sm:$0xe]  ;;  %v1084_v51 = vshll.u32 %v5918_v40, 16  ;;  %v1082_v62 = vshrl.u32 %v5918_v40, 16  ;;  %v1601_v41 = vshll.u32 %v7644_v17, 16 }
  0x4a   : > { %v5997_v10 = vcombine.low %v5853_v63, %v7541_v20  ;;  %v5748_v20 = vld [vmem:[%s7415_s5 + $0x48] sm:$0xf] }
  0x4b   : > { %1231 = vrot.lane.b32.xlu1 %v1080_v44, %s7328_s10  ;;  %v5919_v35 = vcombine.low %v5748_v20, %v5749_v24  ;;  %v809_v44 = vrot.slane %v6740_v6, 1  ;;  %v1086_v63 = vrot.slane %v1084_v51, 1  ;;  %v1103_v6 = vrot.slane %v1101_v58, 1  ;;  %v6787_v58 = vld [vmem:[%s10283_s1] sm:$0xff]  }
  0x4c   : > { %v1596_v24 = vshll.u32 %v5966_v9, 16 }
  0x4d   : > { %1229 = vrot.lane.b32.xlu0 %v1068_v49, %s7328_s10  ;;  %v1096_v46 = vshll.u32 %v5919_v35, 16  ;;  %v6748_v49 = vld [vmem:[%s7415_s5 + $0x44] ss:$0 sps:$4 sm:$0x11]   ;;  %v810_v52 = vsel %vm792_vm0, %v808_v42, %v809_v44  ;;  %v1087_v8 = vor.u32 %v1086_v63, %v1082_v62  ;;  %v5854_v42 = vld [vmem:[%s7415_s5 + $0x48] sm:$0xe] }
  0x4e   : > { %v1318_v20 = vrot.slane %v6748_v49, 1  ;;  %v6784_v44 = vld [vmem:[%s10283_s1 + $0x8] sm:$0xff]   ;;  %v5998_v53 = vcombine.low %v5854_v42, %v7626_v2  ;;  %v5752_v62 = vld [vmem:[%s7415_s5 + $0x60] sm:$0xf] }
  0x4f   : > { %1359 = vrot.lane.b32.xlu1 %v1316_v56, %s7325_s7  ;;  %v1094_v56 = vshrl.u32 %v5919_v35, 16  ;;  %v1098_v57 = vrot.slane %v1096_v46, 1  ;;  %v1615_v46 = vrot.slane %v1613_v31, 1 }
  0x51   : > { %1357 = vrot.lane.b32.xlu0 %v1313_v48, %s7325_s7  ;;  %v1089_v48 = vshll.u32 %v6748_v49, 16  ;;  %v1099_v1 = vor.u32 %v1098_v57, %v1094_v56  ;;  %v1603_v56 = vrot.slane %v1601_v41, 1  ;;  %v5855_v57 = vld [vmem:[%s7415_s5 + $0x54] sm:$0xe] }
  0x53   : > { %1471 = vrot.lane.b32.xlu1 %v5965_v28, %s7329_s11  ;;  %v1826_v28 = vrot.slane %v5997_v10, 1  ;;  %v1091_v7 = vrot.slane %v1089_v48, 1  ;;  %v209_v10 = vld [vmem:[%s7415_s5 + $0x48] sm:$0xf] }
  0x55   : > { %1469 = vrot.lane.b32.xlu0 %v5964_v33, %s7329_s11  ;;  %v586_v33 = vor.u32 %v585_v19, %v581_v18  ;;  %v1828_v43 = vsel %vm792_vm0, %v1826_v28, %v1827_v38  ;;  %v1104_v18 = vsel %vm519_vm1, %v1099_v1, %v1103_v6  ;;  %v1317_v19 = vrot.slane %v5950_v5, 1  ;;  %v7695_v5 = vld [vmem:[%s7415_s5 + $0x64] sm:$0xf] }
  0x56   : > { %v1610_v28 = vrot.slane %v1608_v14, 1  ;;  %v5999_v1 = vcombine.low %v5855_v57, %v7620_v60  ;;  %v1829_v6 = vrot.slane %v5998_v53, 1 }
  0x57   : > { %1743 = vrot.lane.b32.xlu1 %v1592_v11, %s7330_s12  ;;  %v591_v45 = vsel %vm519_vm1, %v586_v33, %v590_v34  ;;  %v7634_v11 = vld [vmem:[%s7415_s5 + $0x4c] sm:$0xf]  ;;  %v1322_v33 = vsel %vm792_vm0, %v1320_v12, %v1321_v13  ;;  %v1319_v38 = vsel %vm792_vm0, %v1317_v19, %v1318_v20  ;;  %v5751_v12 = vld [vmem:[%s7415_s5 + $0x58] sm:$0xf]  ;;  %v5921_v13 = vcombine.low %v5752_v62, %v7695_v5  ;;  %v7737_v62 = vld [vmem:[%s7415_s5 + $0x64] sm:$0xf] }
  0x58   : > { %v7647_v21 = vcombine.low %v209_v10, %v7634_v11  ;;  %v5750_v10 = vld [vmem:[%s7415_s5 + $0x54] sm:$0xf]  ;;  %v1833_v20 = vrot.slane %v7639_v15, 1  ;;  %v6765_v15 = vld [vmem:[%s7415_s5 + $0x68] ss:$0 sps:$4 sm:$0x11]  }
  0x59   : > { %1741 = vrot.lane.b32.xlu0 %v1580_v22, %s7330_s12  ;;  %v1092_v22 = vsel %vm519_vm1, %v1087_v8, %v1091_v7  ;;  %v1830_v7 = vrot.slane %v7644_v17, 1  ;;  %v251_v8 = vld [vmem:[%s7415_s5 + $0x48] sm:$0xe]  ;;  %v1125_v42 = vshll.u32 %v6765_v15, 16 }
  0x5a   : > { %v595_v34 = vshll.u32 %v7647_v21, 16  ;;  %v593_v37 = vshrl.u32 %v7647_v21, 16  ;;  %v5904_v19 = vcombine.low %v251_v8, %v7634_v11 }
  0x5b   : > { %720 = vrot.lane.b32.xlu1 %v579_v32, %s7327_s9  ;;  %v7657_v32 = vld [vmem:[%s7415_s5 + $0x50] ss:$0 sps:$4 sm:$0x11]   ;;  %v1831_v17 = vsel %vm792_vm0, %v1829_v6, %v1830_v7  ;;  %v1127_v57 = vrot.slane %v1125_v42, 1  ;;  %v5857_v42 = vld [vmem:[%s7415_s5 + $0x6c] sm:$0xe] }
  0x5c   : > { %v600_v49 = vshll.u32 %v7657_v32, 16  ;;  %v597_v50 = vrot.slane %v595_v34, 1  ;;  %v811_v31 = vrot.slane %v5904_v19, 1  ;;  %v6772_v7 = vld [vmem:[%s7415_s5 + $0x68] ss:$0 sps:$4 sm:$0x11]  }
  0x5d   : > { %1869 = vrot.lane.b32.xlu0 %v1825_v36, %s7331_s13  ;;  %v6779_v36 = vld [vmem:[%s10283_s1 + $0x10] ss:$0 sps:$4 sm:$0x33]  }
  0x5e   : > { %6648 = vmatprep.subr.msk.bf16.mxu0 %vm2219_vm2, %v6779_v36  ;;  %v598_v63 = vor.u32 %v597_v50, %v593_v37  ;;  %v5814_v50 = vld [vmem:[%s7415_s5 + $0x60] sm:$0xf] }
  0x5f   : > { %722 = vrot.lane.b32.xlu1 %v591_v45, %s7327_s9  ;;  %v1611_v45 = vor.u32 %v1610_v28, %v1606_v27 }
  0x61   : > { %1871 = vrot.lane.b32.xlu0 %v1828_v43, %s7331_s13  ;;  %v7677_v43 = vld [vmem:[%s7415_s5 + $0x5c] ss:$0 sps:$4 sm:$0x11]   ;;  %v1616_v48 = vsel %vm519_vm1, %v1611_v45, %v1615_v46  ;;  %v5816_v45 = vld [vmem:[%s7415_s5 + $0x6c] sm:$0xf] }
  0x62   : > { %v612_v3 = vshll.u32 %v7677_v43, 16  ;;  %v815_v28 = vrot.slane %v7677_v43, 1  ;;  %v7726_v46 = vld [vmem:[%s7415_s5 + $0x70] sm:$0xf] }
  0x63   : > { %851 = vrot.lane.b32.xlu1 %v810_v52, %s7326_s8  ;;  %v2221_v52 = vsel %vm2219_vm2, %v6779_v36, 0  ;;  %v6766_v36 = vld [vmem:[%s7415_s5 + $0x5c] ss:$0 sps:$4 sm:$0x11]   ;;  %vm3211_vm2 = vcmask 257025  }
  0x64   : > { %6559 = vmatpush3.bf16.msra.mxu0 %v2221_v52  ;;  %v1113_v37 = vshll.u32 %v6766_v36, 16 }
  0x65   : > { %849 = vrot.lane.b32.xlu0 %v807_v55, %s7326_s8  ;;  %6560 = vmatprep.subr.bf16.mxu0 %v6784_v44  ;;  %v602_v55 = vrot.slane %v600_v49, 1 }
  0x67   : > { %963 = vrot.lane.b32.xlu1 %v5919_v35, %s7324_s6  ;;  %v7663_v35 = vcombine.low %v211_v25, %v7652_v26  ;;  %v603_v60 = vsel %vm519_vm1, %v598_v63, %v602_v55  ;;  %v812_v25 = vrot.slane %v7657_v32, 1  ;;  %v5793_v32 = vld [vmem:[%s7415_s5 + $0x60] sm:$0xe]  ;;  %v1115_v55 = vrot.slane %v1113_v37, 1 }
  0x68   : > { %6561 = vmatpush3.bf16.msra.mxu0 %v6784_v44  ;;  %v5953_v52 = vcombine.low %v5793_v32, %v7695_v5  ;;  %v7741_v5 = vld [vmem:[%s7415_s5 + $0x74] ss:$0 sps:$4 sm:$0x11]  }
  0x69   : > { %961 = vrot.lane.b32.xlu0 %v5918_v40, %s7324_s6  ;;  %v1598_v40 = vrot.slane %v1596_v24, 1  ;;  %v607_v51 = vshll.u32 %v7663_v35, 16  ;;  %v605_v0 = vshrl.u32 %v7663_v35, 16  ;;  %6562 = vmatprep.subr.bf16.mxu0 %v6787_v58  ;;  %v5920_v24 = vcombine.low %v5750_v10, %v5751_v12 }
  0x6a   : > { %v813_v49 = vsel %vm792_vm0, %v811_v31, %v812_v25  ;;  %v1326_v63 = vrot.slane %v5953_v52, 1 }
  0x6b   : > { %1235 = vrot.lane.b32.xlu1 %v1104_v18, %s7328_s10  ;;  %v1599_v54 = vor.u32 %v1598_v40, %v1594_v39  ;;  %v609_v2 = vrot.slane %v607_v51, 1  ;;  %v614_v18 = vrot.slane %v612_v3, 1  ;;  %v1108_v34 = vshll.u32 %v5920_v24, 16  ;;  %v5815_v51 = vld [vmem:[%s7415_s5 + $0x64] sm:$0xf] }
  0x6c   : > { %6563 = vmatpush3.bf16.msra.mxu0 %v6787_v58  ;;  %v1118_v39 = vshrl.u32 %v5921_v13, 16  ;;  %v1106_v44 = vshrl.u32 %v5920_v24, 16  ;;  %v5968_v58 = vcombine.low %v5814_v50, %v5815_v51 }
  0x6d   : > { %1233 = vrot.lane.b32.xlu0 %v1092_v22, %s7328_s10  ;;  %v610_v14 = vor.u32 %v609_v2, %v605_v0  ;;  %v1832_v22 = vrot.slane %v5999_v1, 1  ;;  %v1110_v43 = vrot.slane %v1108_v34, 1  ;;  %v1327_v0 = vrot.slane %v6765_v15, 1 }
  0x6e   : > { %v1620_v6 = vshll.u32 %v5968_v58, 16  ;;  %v1618_v25 = vshrl.u32 %v5968_v58, 16 }
  0x6f   : > { %1363 = vrot.lane.b32.xlu1 %v1322_v33, %s7325_s7  ;;  %v615_v27 = vsel %vm519_vm1, %v610_v14, %v614_v18  ;;  %v1834_v33 = vsel %vm792_vm0, %v1832_v22, %v1833_v20  ;;  %v1637_v14 = vshll.u32 %v7741_v5, 16  ;;  %v7757_v18 = vld [vmem:[%s7415_s5 + $0x68] ss:$0 sps:$4 sm:$0x11]   ;;  %v1328_v19 = vsel %vm792_vm0, %v1326_v63, %v1327_v0  ;;  %v5757_v63 = vld [vmem:[%s7415_s5 + $0x7c] sm:$0xf] }
  0x70   : > { %v624_v34 = vshll.u32 %v7757_v18, 16  ;;  %v5754_v0 = vld [vmem:[%s7415_s5 + $0x6c] sm:$0xf] }
  0x71   : > { %1361 = vrot.lane.b32.xlu0 %v1319_v38, %s7325_s7  ;;  %v5792_v38 = vld [vmem:[%s7415_s5 + $0x54] sm:$0xe] }
  0x72   : > { %v5952_v53 = vcombine.low %v5792_v38, %v5751_v12  ;;  %v215_v12 = vld [vmem:[%s7415_s5 + $0x6c] sm:$0xf] }
  0x73   : > { %1475 = vrot.lane.b32.xlu1 %v5967_v4, %s7329_s11  ;;  %v1604_v4 = vsel %vm519_vm1, %v1599_v54, %v1603_v56  ;;  %v5969_v54 = vcombine.low %v5816_v45, %v7726_v46  ;;  %v626_v45 = vrot.slane %v624_v34, 1 }
  0x74   : > { %v1323_v2 = vrot.slane %v5952_v53, 1 }
  0x75   : > { %1473 = vrot.lane.b32.xlu0 %v5966_v9, %s7329_s11  ;;  %v5905_v9 = vcombine.low %v252_v61, %v7652_v26  ;;  %v1120_v26 = vshll.u32 %v5921_v13, 16  ;;  %v213_v61 = vld [vmem:[%s7415_s5 + $0x60] sm:$0xf]  ;;  %v1632_v3 = vshll.u32 %v5969_v54, 16 }
  0x76   : > { %v7747_v8 = vcombine.low %v213_v61, %v7737_v62  ;;  %v5756_v61 = vld [vmem:[%s7415_s5 + $0x78] sm:$0xf] }
  0x77   : > { %1747 = vrot.lane.b32.xlu1 %v1616_v48, %s7330_s12  ;;  %v814_v11 = vrot.slane %v5905_v9, 1  ;;  %v1122_v40 = vrot.slane %v1120_v26, 1  ;;  %v1111_v48 = vor.u32 %v1110_v43, %v1106_v44  ;;  %v7752_v9 = vld [vmem:[%s7415_s5 + $0x70] sm:$0xf]  ;;  %v1622_v26 = vrot.slane %v1620_v6, 1 }
  0x78   : > { %v619_v22 = vshll.u32 %v7747_v8, 16  ;;  %v7764_v20 = vcombine.low %v215_v12, %v7752_v9  ;;  %v617_v32 = vshrl.u32 %v7747_v8, 16  ;;  %v1836_v43 = vrot.slane %v6772_v7, 1 }
  0x79   : > { %1745 = vrot.lane.b32.xlu0 %v1604_v4, %s7330_s12  ;;  %v816_v41 = vsel %vm792_vm0, %v814_v11, %v815_v28  ;;  %v1123_v56 = vor.u32 %v1122_v40, %v1118_v39  ;;  %v1324_v4 = vrot.slane %v6766_v36, 1  ;;  %v1116_v10 = vsel %vm519_vm1, %v1111_v48, %v1115_v55  ;;  %v7774_v36 = vld [vmem:[%s7415_s5 + $0x74] ss:$0 sps:$4 sm:$0x11]   ;;  %v253_v55 = vld [vmem:[%s7415_s5 + $0x60] sm:$0xe] }
  0x7a   : > { %v621_v38 = vrot.slane %v619_v22, 1  ;;  %v631_v39 = vshll.u32 %v7764_v20, 16  ;;  %v1623_v40 = vor.u32 %v1622_v26, %v1618_v25  ;;  %v636_v53 = vshll.u32 %v7774_v36, 16  ;;  %v5794_v22 = vld [vmem:[%s7415_s5 + $0x6c] sm:$0xe] }
  0x7b   : > { %724 = vrot.lane.b32.xlu1 %v603_v60, %s7327_s9  ;;  %v1128_v1 = vsel %vm519_vm1, %v1123_v56, %v1127_v57  ;;  %v1634_v60 = vrot.slane %v1632_v3, 1  ;;  %v6001_v56 = vcombine.low %v5857_v42, %v7726_v46  ;;  %v7802_v6 = vcombine.low %v5756_v61, %v5757_v63  ;;  %v7821_v26 = vld [vmem:[%s7415_s5 + $0x74] ss:$0 sps:$4 sm:$0x11]  }
  0x7c   : > { %v622_v50 = vor.u32 %v621_v38, %v617_v32  ;;  %v633_v52 = vrot.slane %v631_v39, 1  ;;  %v1839_v12 = vrot.slane %v7741_v5, 1 }
  0x7d   : > { %1873 = vrot.lane.b32.xlu0 %v1831_v17, %s7331_s13  ;;  %v5856_v17 = vld [vmem:[%s7415_s5 + $0x60] sm:$0xe]  ;;  %v1144_v5 = vshll.u32 %v7802_v6, 16  ;;  %v1142_v39 = vshrl.u32 %v7802_v6, 16 }
  0x7e   : > { %v6000_v31 = vcombine.low %v5856_v17, %v5815_v51  ;;  %v629_v51 = vshrl.u32 %v7764_v20, 16  ;;  %v627_v46 = vsel %vm519_vm1, %v622_v50, %v626_v45  ;;  %v7840_v50 = vld [vmem:[%s7415_s5 + $0x88] sm:$0xf] }
  0x7f   : > { %726 = vrot.lane.b32.xlu1 %v615_v27, %s7327_s9  ;;  %v1625_v27 = vshll.u32 %v6772_v7, 16 }
  0x81   : > { %1875 = vrot.lane.b32.xlu0 %v1834_v33, %s7331_s13  ;;  %v1639_v33 = vrot.slane %v1637_v14, 1  ;;  %v821_v14 = vrot.slane %v7774_v36, 1 }
  0x83   : > { %855 = vrot.lane.b32.xlu1 %v816_v41, %s7326_s8  ;;  %v1627_v41 = vrot.slane %v1625_v27, 1 }
  0x85   : > { %853 = vrot.lane.b32.xlu0 %v813_v49, %s7326_s8  ;;  %v1835_v49 = vrot.slane %v6000_v31, 1  ;;  %v1628_v48 = vsel %vm519_vm1, %v1623_v40, %v1627_v41  ;;  %v1146_v40 = vrot.slane %v1144_v5, 1  ;;  %v1137_v41 = vshll.u32 %v7821_v26, 16 }
  0x87   : > { %967 = vrot.lane.b32.xlu1 %v5921_v13, %s7324_s6  ;;  %v1630_v13 = vshrl.u32 %v5969_v54, 16 }
  0x89   : > { %965 = vrot.lane.b32.xlu0 %v5920_v24, %s7324_s6  ;;  %v1325_v24 = vsel %vm792_vm0, %v1323_v2, %v1324_v4  ;;  %v1635_v15 = vor.u32 %v1634_v60, %v1630_v13  ;;  %v1837_v2 = vsel %vm792_vm0, %v1835_v49, %v1836_v43  ;;  %v638_v4 = vrot.slane %v636_v53, 1  ;;  %v5820_v43 = vld [vmem:[%s7415_s5 + $0x84] sm:$0xf]  ;;  %v5818_v53 = vld [vmem:[%s7415_s5 + $0x78] sm:$0xf] }
  0x8a   : > { %v5906_v13 = vcombine.low %v253_v55, %v7737_v62 }
  0x8b   : > { %1239 = vrot.lane.b32.xlu1 %v1128_v1, %s7328_s10  ;;  %v1640_v44 = vsel %vm519_vm1, %v1635_v15, %v1639_v33  ;;  %v634_v1 = vor.u32 %v633_v52, %v629_v51  ;;  %v818_v15 = vrot.slane %v7757_v18, 1 }
  0x8c   : > { %v817_v31 = vrot.slane %v5906_v13, 1  ;;  %v5858_v13 = vld [vmem:[%s7415_s5 + $0x78] sm:$0xe] }
  0x8d   : > { %1237 = vrot.lane.b32.xlu0 %v1116_v10, %s7328_s10  ;;  %v1838_v10 = vrot.slane %v6001_v56, 1  ;;  %v639_v25 = vsel %vm519_vm1, %v634_v1, %v638_v4  ;;  %v1330_v1 = vrot.slane %v7821_v26, 1 }
  0x8f   : > { %1367 = vrot.lane.b32.xlu1 %v1328_v19, %s7325_s7  ;;  %v7768_v11 = vpop.permute.xlu1 %955  ;;  %v5795_v19 = vld [vmem:[%s7415_s5 + $0x78] sm:$0xe]  ;;  %v1840_v27 = vsel %vm792_vm0, %v1838_v10, %v1839_v12  ;;  %v7866_v10 = vld [vmem:[%s7415_s5 + $0x7c] sm:$0xf] }
  0x90   : > { %v7770_v28 = vpop.permute.xlu0 %953  ;;  %v5955_v36 = vcombine.low %v5795_v19, %v5757_v63  ;;  %v1147_v63 = vor.u32 %v1146_v40, %v1142_v39  ;;  %v7880_v19 = vld [vmem:[%s7415_s5 + $0x80] ss:$0 sps:$4 sm:$0x11]  }
  0x91   : > { %1365 = vrot.lane.b32.xlu0 %v1325_v24, %s7325_s7  ;;  %v7815_v24 = vld [vmem:[%s7415_s5 + $0x80] ss:$0 sps:$4 sm:$0x11]  }
  0x92   : > { %v1149_v38 = vshll.u32 %v7815_v24, 16  ;;  %v1333_v55 = vrot.slane %v7815_v24, 1 }
  0x93   : > { %1479 = vrot.lane.b32.xlu1 %v5969_v54, %s7329_s11  ;;  %v254_v54 = vld [vmem:[%s7415_s5 + $0x6c] sm:$0xe] }
  0x94   : > { %v7783_v37 = vpop.permute.xlu0 %1353  ;;  %v5907_v3 = vcombine.low %v254_v54, %v7752_v9  ;;  %v7846_v54 = vld [vmem:[%s7415_s5 + $0x7c] sm:$0xf]  ;;  %v1151_v56 = vrot.slane %v1149_v38, 1 }
  0x95   : > { %1477 = vrot.lane.b32.xlu0 %v5968_v58, %s7329_s11  ;;  %v7789_v57 = vpop.permute.xlu1 %841  ;;  %v5755_v58 = vld [vmem:[%s7415_s5 + $0x70] sm:$0xf]  ;;  %v7862_v4 = vcombine.low %v5818_v53, %v7846_v54  ;;  %v5859_v53 = vld [vmem:[%s7415_s5 + $0x84] sm:$0xe] }
  0x96   : > { %v7808_v60 = vcombine.low %v5754_v0, %v5755_v58  ;;  %v820_v17 = vrot.slane %v5907_v3, 1  ;;  %v5954_v32 = vcombine.low %v5794_v22, %v5755_v58  ;;  %v1139_v0 = vrot.slane %v1137_v41, 1 }
  0x97   : > { %1751 = vrot.lane.b32.xlu1 %v1640_v44, %s7330_s12  ;;  %v819_v44 = vsel %vm792_vm0, %v817_v31, %v818_v15  ;;  %v7854_v58 = vcombine.low %v5820_v43, %v7840_v50  ;;  %v1152_v22 = vsel %vm519_vm1, %v1147_v63, %v1151_v56  ;;  %v7897_v31 = vld [vmem:[%s7415_s5 + $0x88] sm:$0xf]  ;;  %v1642_v38 = vshrl.u32 %v7862_v4, 16 }
  0x98   : > { %v1132_v33 = vshll.u32 %v7808_v60, 16  ;;  %v822_v18 = vsel %vm792_vm0, %v820_v17, %v821_v14  ;;  %v1130_v45 = vshrl.u32 %v7808_v60, 16  ;;  %v1329_v61 = vrot.slane %v5954_v32, 1  ;;  %v7877_v14 = vld [vmem:[%s7415_s5 + $0x80] ss:$0 sps:$4 sm:$0x11]  }
  0x99   : > { %1749 = vrot.lane.b32.xlu0 %v1628_v48, %s7330_s12  ;;  %v7804_v7 = vpop.permute.xlu1 %843  ;;  %v1332_v48 = vrot.slane %v5955_v36, 1  ;;  %v1656_v24 = vshll.u32 %v7854_v58, 16  ;;  %v1654_v32 = vshrl.u32 %v7854_v58, 16 }
  0x9a   : > { %v1134_v49 = vrot.slane %v1132_v33, 1  ;;  %v6002_v33 = vcombine.low %v5858_v13, %v7846_v54  ;;  %v1331_v36 = vsel %vm792_vm0, %v1329_v61, %v1330_v1  ;;  %v1842_v61 = vrot.slane %v7877_v14, 1  ;;  %v256_v1 = vld [vmem:[%s7415_s5 + $0x84] sm:$0xe] }
  0x9b   : > { %v713_v9 = vpop.permute.xlu0 %712  ;;  %728 = vrot.lane.b32.xlu1 %v627_v46, %s7327_s9  ;;  %v1334_v26 = vsel %vm792_vm0, %v1332_v48, %v1333_v55  ;;  %v1658_v39 = vrot.slane %v1656_v24, 1 }
  0x9c   : > { %v1899_v51 = vsel %vm1897_vm3, %v7443_v23, %v713_v9  ;;  %v1135_v46 = vor.u32 %v1134_v49, %v1130_v45  ;;  %v7870_v9 = vld [vmem:[%s7415_s5 + $0x8c] ss:$0 sps:$4 sm:$0x11]   ;;  %v1841_v56 = vrot.slane %v6002_v33, 1 }
  0x9d   : > { %1877 = vrot.lane.b32.xlu0 %v1837_v2, %s7331_s13  ;;  %v7823_v62 = vpop.permute.xlu1 %1355  ;;  %v1932_v2 = vsel %vm1930_vm4, %v1899_v51, %v7789_v57  ;;  %v648_v51 = vshll.u32 %v7880_v19, 16 }
  0x9e   : > { %v1965_v17 = vsel %vm1963_vm5, %v1932_v2, %v7770_v28  ;;  %v1140_v5 = vsel %vm519_vm1, %v1135_v46, %v1139_v0  ;;  %v219_v28 = vld [vmem:[%s7415_s5 + $0x84] sm:$0xf]  ;;  %v1659_v0 = vor.u32 %v1658_v39, %v1654_v32  ;;  %v1845_v39 = vrot.slane %v7870_v9, 1 }
  0x9f   : > { %v715_v34 = vpop.permute.xlu0 %714  ;;  %730 = vrot.lane.b32.xlu1 %v639_v25, %s7327_s9  ;;  %v7913_v41 = vcombine.low %v219_v28, %v7897_v31 }
  0xa0   : > { %v1901_v23 = vsel %vm1897_vm3, %v7448_v29, %v715_v34  ;;  %v217_v29 = vld [vmem:[%s7415_s5 + $0x78] sm:$0xf]  ;;  %v1661_v34 = vshll.u32 %v7870_v9, 16  ;;  %v6805_v9 = vld [vmem:[%s7415_s5 + $0x8c] ss:$0 sps:$4 sm:$0x11]  }
  0xa1   : > { %1879 = vrot.lane.b32.xlu0 %v1840_v27, %s7331_s13  ;;  %v7834_v42 = vpop.permute.xlu1 %1227  ;;  %v1934_v57 = vsel %vm1930_vm4, %v1901_v23, %v7804_v7  ;;  %v7889_v25 = vcombine.low %v217_v29, %v7866_v10  ;;  %v1644_v27 = vshll.u32 %v7862_v4, 16  ;;  %v7928_v23 = vld [vmem:[%s7415_s5 + $0x8c] ss:$0 sps:$4 sm:$0x11]   ;;  %v655_v46 = vshll.u32 %v7913_v41, 16 }
  0xa2   : > { %v1663_v54 = vrot.slane %v1661_v34, 1  ;;  %v255_v29 = vld [vmem:[%s7415_s5 + $0x78] sm:$0xe]  ;;  %v5909_v34 = vcombine.low %v256_v1, %v7897_v31 }
  0xa3   : > { %v1226_v52 = vpop.permute.xlu0 %1225  ;;  %859 = vrot.lane.b32.xlu1 %v822_v18, %s7326_s8  ;;  %v1649_v18 = vshll.u32 %v7877_v14, 16  ;;  %v643_v40 = vshll.u32 %v7889_v25, 16  ;;  %v1646_v43 = vrot.slane %v1644_v27, 1  ;;  %v641_v55 = vshrl.u32 %v7889_v25, 16 }
  0xa4   : > { %v1998_v7 = vsel %vm1996_vm6, %v1965_v17, %v1226_v52  ;;  %v650_v14 = vrot.slane %v648_v51, 1  ;;  %v5760_v17 = vld [vmem:[%s7415_s5 + $0x90] sm:$0xf]  ;;  %v6003_v27 = vcombine.low %v5859_v53, %v7840_v50  ;;  %v1664_v28 = vsel %vm519_vm1, %v1659_v0, %v1663_v54  ;;  %v6804_v54 = vld [vmem:[%s7415_s5 + $0x98] ss:$0 sps:$4 sm:$0x11]  }
  0xa5   : > { %857 = vrot.lane.b32.xlu0 %v819_v44, %s7326_s8  ;;  %v7858_v3 = vpop.permute.xlu1 %1467  ;;  %v645_v2 = vrot.slane %v643_v40, 1  ;;  %v824_v51 = vrot.slane %v7880_v19, 1  ;;  %v1173_v1 = vshll.u32 %v6804_v54, 16 }
  0xa7   : > { %v1466_v12 = vpop.permute.xlu0 %1465  ;;  %971 = vrot.lane.b32.xlu1 %v7802_v6, %s7324_s6 }
  0xa9   : > { %969 = vrot.lane.b32.xlu0 %v7808_v60, %s7324_s6  ;;  %v1740_v6 = vpop.permute.xlu1 %1739  ;;  %v1967_v60 = vsel %vm1963_vm5, %v1934_v57, %v7768_v11  ;;  %v2031_v11 = vsel %vm2029_vm7, %v1998_v7, %v7783_v37  ;;  %v1647_v57 = vor.u32 %v1646_v43, %v1642_v38  ;;  %v1843_v38 = vsel %vm792_vm0, %v1841_v56, %v1842_v61  ;;  %v5797_v56 = vld [vmem:[%s7415_s5 + $0x90] sm:$0xe] }
  0xaa   : > { %v2000_v44 = vsel %vm1996_vm6, %v1967_v60, %v7834_v42  ;;  %v2064_v45 = vsel %vm2062_vm8, %v2031_v11, %v1466_v12  ;;  %v1651_v42 = vrot.slane %v1649_v18, 1  ;;  %v646_v60 = vor.u32 %v645_v2, %v641_v55 }
  0xab   : > { %v1738_v15 = vpop.permute.xlu0 %1737  ;;  %1243 = vrot.lane.b32.xlu1 %v1152_v22, %s7328_s10  ;;  %v2033_v63 = vsel %vm2029_vm7, %v2000_v44, %v7823_v62  ;;  %v653_v62 = vshrl.u32 %v7913_v41, 16  ;;  %v7944_v22 = vld [vmem:[%s7415_s5 + $0x94] sm:$0xf]  ;;  %v1844_v18 = vrot.slane %v6003_v27, 1  ;;  %v826_v44 = vrot.slane %v5909_v34, 1 }
  0xac   : > { %v2097_v37 = vsel %vm2095_vm9, %v2064_v45, %v1738_v15  ;;  %v2066_v12 = vsel %vm2062_vm8, %v2033_v63, %v7858_v3  ;;  %v7953_v3 = vld [vmem:[%s7415_s5 + $0x88] sm:$0xf]  ;;  %v660_v15 = vshll.u32 %v7928_v23, 16  ;;  %v1652_v50 = vsel %vm519_vm1, %v1647_v57, %v1651_v42  ;;  %v5824_v63 = vld [vmem:[%s7415_s5 + $0x9c] sm:$0xf] }
  0xad   : > { %1241 = vrot.lane.b32.xlu0 %v1140_v5, %s7328_s10  ;;  %v7918_v49 = vpop.permute.xlu1 %716  ;;  %v2099_v24 = vsel %vm2095_vm9, %v2066_v12, %v1740_v6  ;;  %v5758_v5 = vld [vmem:[%s7415_s5 + $0x84] sm:$0xf]  ;;  %v657_v6 = vrot.slane %v655_v46, 1  ;;  %v651_v31 = vsel %vm519_vm1, %v646_v60, %v650_v14  ;;  %v827_v45 = vrot.slane %v7928_v23, 1  ;;  %v221_v34 = vld [vmem:[%s7415_s5 + $0x90] sm:$0xf] }
  0xae   : > { %v7969_v32 = vcombine.low %v5758_v5, %v7953_v3  ;;  %v662_v11 = vrot.slane %v660_v15, 1  ;;  %v1846_v55 = vsel %vm792_vm0, %v1844_v18, %v1845_v39  ;;  %v5796_v23 = vld [vmem:[%s7415_s5 + $0x84] sm:$0xe]  ;;  %v5957_v0 = vcombine.low %v5797_v56, %v7944_v22  ;;  %v5822_v5 = vld [vmem:[%s7415_s5 + $0x90] sm:$0xf] }
  0xaf   : > { %v1866_v52 = vpop.permute.xlu0 %1865  ;;  %1371 = vrot.lane.b32.xlu1 %v1334_v26, %s7325_s7  ;;  %v828_v61 = vsel %vm792_vm0, %v826_v44, %v827_v45  ;;  %v1339_v18 = vrot.slane %v6804_v54, 1  ;;  %v1903_v44 = vsel %vm1897_vm3, %v7488_v16, %v7918_v49  ;;  %v223_v16 = vld [vmem:[%s7415_s5 + $0x9c] sm:$0xf]  ;;  %v8045_v49 = vld [vmem:[%s7415_s5 + $0xa0] sm:$0xf] }
  0xb0   : > { %v2130_v48 = vsel %vm2128_vm10, %v2097_v37, %v1866_v52  ;;  %v1156_v53 = vshll.u32 %v7969_v32, 16  ;;  %v1154_v14 = vshrl.u32 %v7969_v32, 16 }
  0xb1   : > { %1369 = vrot.lane.b32.xlu0 %v1331_v36, %s7325_s7  ;;  %6564 = vmatprep.mubr.msk.bf16.mxu0 %vm2186_vm11, %v2130_v48  ;;  %v7939_v13 = vpop.permute.xlu1 %718 }
  0xb3   : > { %v1868_v7 = vpop.permute.xlu0 %1867  ;;  %1483 = vrot.lane.b32.xlu1 %v7854_v58, %s7329_s11  ;;  %v5908_v58 = vcombine.low %v255_v29, %v7866_v10  ;;  %v658_v10 = vor.u32 %v657_v6, %v653_v62  ;;  %v7997_v29 = vld [vmem:[%s7415_s5 + $0xa0] sm:$0xf]  ;;  %v1158_v62 = vrot.slane %v1156_v53, 1 }
  0xb4   : > { %v2132_v26 = vsel %vm2128_vm10, %v2099_v24, %v1868_v7  ;;  %v5956_v7 = vcombine.low %v5796_v23, %v7953_v3 }
  0xb5   : > { %1481 = vrot.lane.b32.xlu0 %v7862_v4, %s7329_s11  ;;  %6565 = vmatmul.mubr.msk.bf16.vlgmr.msra.gmra.mxu0 %vm2186_vm11, %v2132_v26  ;;  %v7960_v33 = vpop.permute.xlu1 %847  ;;  %v5925_v4 = vcombine.low %v5760_v17, %v7944_v22  ;;  %v823_v43 = vrot.slane %v5908_v58, 1  ;;  %v663_v48 = vsel %vm519_vm1, %v658_v10, %v662_v11  ;;  %v1161_v17 = vshll.u32 %v6805_v9, 16  ;;  %v8006_v22 = vld [vmem:[%s7415_s5 + $0x94] sm:$0xf] }
  0xb6   : > { %v8010_v26 = vcombine.low %v5824_v63, %v7997_v29  ;;  %v1159_v6 = vor.u32 %v1158_v62, %v1154_v14  ;;  %v8016_v3 = vcombine.low %v5822_v5, %v8006_v22  ;;  %v8020_v58 = vld [vmem:[%s7415_s5 + $0x94] sm:$0xf]  ;;  %v1336_v10 = vrot.slane %v6805_v9, 1  ;;  %v8023_v11 = vld [vmem:[%s7415_s5 + $0xa4] ss:$0 sps:$4 sm:$0x11]  }
  0xb7   : > { %v7965_v36 = vpop.permute.xlu0 %845  ;;  %1755 = vrot.lane.b32.xlu1 %v1664_v28, %s7330_s12  ;;  %v1168_v52 = vshll.u32 %v5925_v4, 16  ;;  %v1166_v2 = vshrl.u32 %v5925_v4, 16  ;;  %v825_v57 = vsel %vm792_vm0, %v823_v43, %v824_v51  ;;  %v1175_v28 = vrot.slane %v1173_v1, 1  ;;  %v8034_v43 = vld [vmem:[%s7415_s5 + $0x98] ss:$0 sps:$4 sm:$0x11]  }
  0xb8   : > { %v1163_v15 = vrot.slane %v1161_v17, 1  ;;  %v1680_v39 = vshll.u32 %v8010_v26, 16  ;;  %v8037_v51 = vcombine.low %v221_v34, %v8020_v58  ;;  %v1668_v54 = vshll.u32 %v8016_v3, 16  ;;  %v8089_v34 = vld [vmem:[%s7415_s5 + $0xa4] ss:$0 sps:$4 sm:$0x11]  }
  0xb9   : > { %1753 = vrot.lane.b32.xlu0 %v1652_v50, %s7330_s12  ;;  %v7976_v40 = vpop.permute.xlu1 %959  ;;  %v1170_v46 = vrot.slane %v1168_v52, 1  ;;  %v1338_v50 = vrot.slane %v5957_v0, 1  ;;  %v1678_v23 = vshrl.u32 %v8010_v26, 16  ;;  %v1666_v0 = vshrl.u32 %v8016_v3, 16 }
  0xba   : > { %v1164_v53 = vsel %vm519_vm1, %v1159_v6, %v1163_v15  ;;  %v1682_v63 = vrot.slane %v1680_v39, 1  ;;  %v667_v1 = vshll.u32 %v8037_v51, 16  ;;  %v1670_v17 = vrot.slane %v1668_v54, 1 }
  0xbb   : > { %v958_v37 = vpop.permute.xlu0 %957  ;;  %732 = vrot.lane.b32.xlu1 %v651_v31, %s7327_s9  ;;  %v1171_v27 = vor.u32 %v1170_v46, %v1166_v2  ;;  %v1335_v31 = vrot.slane %v5956_v7, 1  ;;  %v1340_v9 = vsel %vm792_vm0, %v1338_v50, %v1339_v18  ;;  %v8057_v2 = vld [vmem:[%s7415_s5 + $0x98] ss:$0 sps:$4 sm:$0x11]   ;;  %v1673_v7 = vshll.u32 %v8034_v43, 16 }
  0xbc   : > { %v1683_v6 = vor.u32 %v1682_v63, %v1678_v23  ;;  %v672_v15 = vshll.u32 %v8057_v2, 16  ;;  %v669_v50 = vrot.slane %v667_v1, 1  ;;  %v1848_v54 = vrot.slane %v8034_v43, 1  ;;  %v5764_v43 = vld [vmem:[%s7415_s5 + $0xa8] sm:$0xf] }
  0xbd   : > { %1881 = vrot.lane.b32.xlu0 %v1843_v38, %s7331_s13  ;;  %v7987_v42 = vpop.permute.xlu1 %1231  ;;  %v1176_v45 = vsel %vm519_vm1, %v1171_v27, %v1175_v28  ;;  %v5762_v23 = vld [vmem:[%s7415_s5 + $0x9c] sm:$0xf]  ;;  %v8122_v63 = vld [vmem:[%s7415_s5 + $0xa0] sm:$0xf] }
  0xbf   : > { %v1230_v19 = vpop.permute.xlu0 %1229  ;;  %734 = vrot.lane.b32.xlu1 %v663_v48, %s7327_s9  ;;  %v1337_v48 = vsel %vm792_vm0, %v1335_v31, %v1336_v10  ;;  %v1671_v31 = vor.u32 %v1670_v17, %v1666_v0  ;;  %v1675_v10 = vrot.slane %v1673_v7, 1  ;;  %v1851_v7 = vrot.slane %v8023_v11, 1 }
  0xc1   : > { %1883 = vrot.lane.b32.xlu0 %v1846_v55, %s7331_s13  ;;  %v7999_v12 = vpop.permute.xlu1 %1359  ;;  %v5860_v55 = vld [vmem:[%s7415_s5 + $0x90] sm:$0xe] }
  0xc2   : > { %v6004_v5 = vcombine.low %v5860_v55, %v8006_v22  ;;  %v665_v22 = vshrl.u32 %v8037_v51, 16  ;;  %v1676_v55 = vsel %vm519_vm1, %v1671_v31, %v1675_v10 }
  0xc3   : > { %v1358_v24 = vpop.permute.xlu0 %1357  ;;  %863 = vrot.lane.b32.xlu1 %v828_v61, %s7326_s8  ;;  %v1685_v61 = vshll.u32 %v8023_v11, 16 }
  0xc5   : > { %861 = vrot.lane.b32.xlu0 %v825_v57, %s7326_s8  ;;  %v8013_v60 = vpop.permute.xlu1 %1471  ;;  %v1687_v27 = vrot.slane %v1685_v61, 1  ;;  %v8115_v61 = vld [vmem:[%s7415_s5 + $0xac] sm:$0xf] }
  0xc7   : > { %v1470_v38 = vpop.permute.xlu0 %1469  ;;  %975 = vrot.lane.b32.xlu1 %v5925_v4, %s7324_s6  ;;  %v1936_v4 = vsel %vm1930_vm4, %v1903_v44, %v7965_v36  ;;  %v5861_v44 = vld [vmem:[%s7415_s5 + $0x9c] sm:$0xe] }
  0xc9   : > { %973 = vrot.lane.b32.xlu0 %v7969_v32, %s7324_s6  ;;  %v1744_v52 = vpop.permute.xlu1 %1743  ;;  %v1969_v32 = vsel %vm1963_vm5, %v1936_v4, %v958_v37  ;;  %v1905_v37 = vsel %vm1897_vm3, %v7499_v30, %v7939_v13 }
  0xca   : > { %v2002_v36 = vsel %vm1996_vm6, %v1969_v32, %v1230_v19  ;;  %v8066_v19 = vcombine.low %v223_v16, %v8045_v49  ;;  %v1938_v57 = vsel %vm1930_vm4, %v1905_v37, %v7960_v33 }
  0xcb   : > { %v1742_v56 = vpop.permute.xlu0 %1741  ;;  %1247 = vrot.lane.b32.xlu1 %v1176_v45, %s7328_s10  ;;  %v2035_v46 = vsel %vm2029_vm7, %v2002_v36, %v1358_v24  ;;  %v1971_v30 = vsel %vm1963_vm5, %v1938_v57, %v7976_v40  ;;  %v1847_v45 = vrot.slane %v6004_v5, 1  ;;  %v5927_v57 = vcombine.low %v5764_v43, %v8115_v61 }
  0xcc   : > { %v2068_v14 = vsel %vm2062_vm8, %v2035_v46, %v1470_v38  ;;  %v2004_v33 = vsel %vm1996_vm6, %v1971_v30, %v7987_v42  ;;  %v679_v42 = vshll.u32 %v8066_v19, 16  ;;  %v677_v16 = vshrl.u32 %v8066_v19, 16 }
  0xcd   : > { %1245 = vrot.lane.b32.xlu0 %v1164_v53, %s7328_s10  ;;  %v8071_v62 = vpop.permute.xlu1 %720  ;;  %v2101_v13 = vsel %vm2095_vm9, %v2068_v14, %v1742_v56  ;;  %v2037_v40 = vsel %vm2029_vm7, %v2004_v33, %v7999_v12  ;;  %v1688_v53 = vsel %vm519_vm1, %v1683_v6, %v1687_v27  ;;  %v684_v56 = vshll.u32 %v8089_v34, 16  ;;  %v8142_v33 = vld [vmem:[%s7415_s5 + $0xb0] ss:$0 sps:$4 sm:$0x11]  }
  0xce   : > { %v2070_v38 = vsel %vm2062_vm8, %v2037_v40, %v8013_v60  ;;  %v674_v60 = vrot.slane %v672_v15, 1  ;;  %v681_v32 = vrot.slane %v679_v42, 1  ;;  %v1849_v0 = vsel %vm792_vm0, %v1847_v45, %v1848_v54  ;;  %v6821_v40 = vld [vmem:[%s7415_s5 + $0xa4] ss:$0 sps:$4 sm:$0x11]  }
  0xcf   : > { %v1870_v24 = vpop.permute.xlu0 %1869  ;;  %1375 = vrot.lane.b32.xlu1 %v1340_v9, %s7325_s7  ;;  %v2103_v12 = vsel %vm2095_vm9, %v2070_v38, %v1744_v52  ;;  %v670_v52 = vor.u32 %v669_v50, %v665_v22  ;;  %v6005_v9 = vcombine.low %v5861_v44, %v7997_v29  ;;  %v686_v1 = vrot.slane %v684_v56, 1  ;;  %v5799_v38 = vld [vmem:[%s7415_s5 + $0xa8] sm:$0xe]  ;;  %v8157_v44 = vld [vmem:[%s7415_s5 + $0xb8] sm:$0xf] }
  0xd0   : > { %v2134_v28 = vsel %vm2128_vm10, %v2101_v13, %v1870_v24  ;;  %v682_v46 = vor.u32 %v681_v32, %v677_v16  ;;  %v5926_v13 = vcombine.low %v5762_v23, %v8122_v63  ;;  %v833_v27 = vrot.slane %v8089_v34, 1  ;;  %v5798_v34 = vld [vmem:[%s7415_s5 + $0x9c] sm:$0xe]  ;;  %v5826_v32 = vld [vmem:[%s7415_s5 + $0xa8] sm:$0xf] }
  0xd1   : > { %1373 = vrot.lane.b32.xlu0 %v1337_v48, %s7325_s7  ;;  %6568 = vmatprep.mubr.msk.bf16.mxu0 %vm2186_vm11, %v2134_v28  ;;  %v8094_v18 = vpop.permute.xlu1 %722  ;;  %v675_v29 = vsel %vm519_vm1, %v670_v52, %v674_v60  ;;  %v1850_v17 = vrot.slane %v6005_v9, 1  ;;  %v1192_v11 = vshll.u32 %v5927_v57, 16  ;;  %v830_v15 = vrot.slane %v8057_v2, 1  ;;  %v8166_v56 = vld [vmem:[%s7415_s5 + $0xac] sm:$0xf] }
  0xd2   : > { %v687_v24 = vsel %vm519_vm1, %v682_v46, %v686_v1  ;;  %v1180_v22 = vshll.u32 %v5926_v13, 16  ;;  %v1190_v42 = vshrl.u32 %v5927_v57, 16  ;;  %v1185_v60 = vshll.u32 %v6821_v40, 16 }
  0xd3   : > { %v1872_v39 = vpop.permute.xlu0 %1871  ;;  %1487 = vrot.lane.b32.xlu1 %v8010_v26, %s7329_s11  ;;  %v258_v26 = vld [vmem:[%s7415_s5 + $0x9c] sm:$0xe]  ;;  %v1852_v28 = vsel %vm792_vm0, %v1850_v17, %v1851_v7  ;;  %v1194_v10 = vrot.slane %v1192_v11, 1  ;;  %v5959_v52 = vcombine.low %v5799_v38, %v8115_v61  ;;  %v5958_v16 = vcombine.low %v5798_v34, %v8122_v63  ;;  %v8184_v7 = vld [vmem:[%s7415_s5 + $0xbc] ss:$0 sps:$4 sm:$0x11]  }
  0xd4   : > { %v2136_v4 = vsel %vm2128_vm10, %v2103_v12, %v1872_v39  ;;  %v5911_v37 = vcombine.low %v258_v26, %v8045_v49  ;;  %v1197_v12 = vshll.u32 %v8142_v33, 16  ;;  %v5828_v39 = vld [vmem:[%s7415_s5 + $0xb4] sm:$0xf]  ;;  %v1187_v61 = vrot.slane %v1185_v60, 1 }
  0xd5   : > { %1485 = vrot.lane.b32.xlu0 %v8016_v3, %s7329_s11  ;;  %6569 = vmatmul.mubr.msk.bf16.gmra.mxu0 %vm2186_vm11, %v2136_v4  ;;  %v8110_v48 = vpop.permute.xlu1 %851  ;;  %v257_v3 = vld [vmem:[%s7415_s5 + $0x90] sm:$0xe]  ;;  %v1178_v4 = vshrl.u32 %v5926_v13, 16  ;;  %v8170_v26 = vcombine.low %v5828_v39, %v8157_v44  ;;  %v1195_v9 = vor.u32 %v1194_v10, %v1190_v42  ;;  %v1345_v23 = vrot.slane %v8142_v33, 1 }
  0xd6   : > { %v5910_v30 = vcombine.low %v257_v3, %v8020_v58  ;;  %v832_v5 = vrot.slane %v5911_v37, 1  ;;  %v8177_v63 = vcombine.low %v5826_v32, %v8166_v56  ;;  %v8181_v37 = vld [vmem:[%s7415_s5 + $0xac] sm:$0xf]  ;;  %v1344_v46 = vrot.slane %v5959_v52, 1 }
  0xd7   : > { %v8117_v36 = vpop.permute.xlu0 %849  ;;  %1759 = vrot.lane.b32.xlu1 %v1688_v53, %s7330_s12  ;;  %v1182_v53 = vrot.slane %v1180_v22, 1  ;;  %v1341_v1 = vrot.slane %v5958_v16, 1  ;;  %v1342_v17 = vrot.slane %v6821_v40, 1  ;;  %v1709_v42 = vshll.u32 %v8184_v7, 16 }
  0xd8   : > { %v829_v6 = vrot.slane %v5910_v30, 1  ;;  %v834_v31 = vsel %vm792_vm0, %v832_v5, %v833_v27  ;;  %v1704_v30 = vshll.u32 %v8170_v26, 16  ;;  %v8194_v27 = vld [vmem:[%s7415_s5 + $0xb0] ss:$0 sps:$4 sm:$0x11]   ;;  %v1346_v40 = vsel %vm792_vm0, %v1344_v46, %v1345_v23 }
  0xd9   : > { %1757 = vrot.lane.b32.xlu0 %v1676_v55, %s7330_s12  ;;  %v8130_v14 = vpop.permute.xlu1 %963  ;;  %v1199_v55 = vrot.slane %v1197_v12, 1  ;;  %v1183_v3 = vor.u32 %v1182_v53, %v1178_v4  ;;  %v1343_v22 = vsel %vm792_vm0, %v1341_v1, %v1342_v17  ;;  %v1702_v34 = vshrl.u32 %v8170_v26, 16  ;;  %v8245_v23 = vld [vmem:[%s7415_s5 + $0xbc] ss:$0 sps:$4 sm:$0x11]  }
  0xda   : > { %v831_v45 = vsel %vm792_vm0, %v829_v6, %v830_v15  ;;  %v1692_v6 = vshll.u32 %v8177_v63, 16  ;;  %v227_v15 = vld [vmem:[%s7415_s5 + $0xb4] sm:$0xf]  ;;  %v1690_v10 = vshrl.u32 %v8177_v63, 16  ;;  %v1711_v32 = vrot.slane %v1709_v42, 1 }
  0xdb   : > { %v8135_v49 = vpop.permute.xlu0 %961  ;;  %736 = vrot.lane.b32.xlu1 %v675_v29, %s7327_s9  ;;  %v1200_v5 = vsel %vm519_vm1, %v1195_v9, %v1199_v55  ;;  %v5768_v42 = vld [vmem:[%s7415_s5 + $0xc0] sm:$0xf] }
  0xdc   : > { %v1694_v52 = vrot.slane %v1692_v6, 1  ;;  %v708_v6 = vshll.u32 %v8245_v23, 16 }
  0xdd   : > { %1885 = vrot.lane.b32.xlu0 %v1849_v0, %s7331_s13  ;;  %v8144_v58 = vpop.permute.xlu1 %1235  ;;  %v225_v0 = vld [vmem:[%s7415_s5 + $0xa8] sm:$0xf] }
  0xde   : > { %v8197_v33 = vcombine.low %v225_v0, %v8181_v37 }
  0xdf   : > { %v1234_v50 = vpop.permute.xlu0 %1233  ;;  %738 = vrot.lane.b32.xlu1 %v687_v24, %s7327_s9  ;;  %v1907_v24 = vsel %vm1897_vm3, %v7562_v47, %v8071_v62  ;;  %v8205_v47 = vld [vmem:[%s7415_s5 + $0xb8] sm:$0xf] }
  0xe0   : > { %v1940_v11 = vsel %vm1930_vm4, %v1907_v24, %v8117_v36  ;;  %v8213_v36 = vld [vmem:[%s7415_s5 + $0xb0] ss:$0 sps:$4 sm:$0x11]   ;;  %v691_v39 = vshll.u32 %v8197_v33, 16  ;;  %v689_v0 = vshrl.u32 %v8197_v33, 16 }
  0xe1   : > { %1887 = vrot.lane.b32.xlu0 %v1852_v28, %s7331_s13  ;;  %v8159_v2 = vpop.permute.xlu1 %1363  ;;  %v1188_v28 = vsel %vm519_vm1, %v1183_v3, %v1187_v61  ;;  %v1973_v62 = vsel %vm1963_vm5, %v1940_v11, %v8135_v49  ;;  %v1909_v49 = vsel %vm1897_vm3, %v7576_v59, %v8094_v18  ;;  %v1697_v59 = vshll.u32 %v8194_v27, 16 }
  0xe2   : > { %v2006_v38 = vsel %vm1996_vm6, %v1973_v62, %v1234_v50  ;;  %v8227_v50 = vcombine.low %v227_v15, %v8205_v47  ;;  %v1942_v4 = vsel %vm1930_vm4, %v1909_v49, %v8110_v48  ;;  %v696_v9 = vshll.u32 %v8213_v36, 16 }
  0xe3   : > { %v1362_v54 = vpop.permute.xlu0 %1361  ;;  %867 = vrot.lane.b32.xlu1 %v834_v31, %s7326_s8  ;;  %v1706_v31 = vrot.slane %v1704_v30, 1  ;;  %v1975_v18 = vsel %vm1963_vm5, %v1942_v4, %v8130_v14  ;;  %v1699_v17 = vrot.slane %v1697_v59, 1  ;;  %v1857_v59 = vrot.slane %v8184_v7, 1 }
  0xe4   : > { %v2039_v12 = vsel %vm2029_vm7, %v2006_v38, %v1362_v54  ;;  %v2008_v55 = vsel %vm1996_vm6, %v1975_v18, %v8144_v58  ;;  %v693_v58 = vrot.slane %v691_v39, 1  ;;  %v701_v62 = vshrl.u32 %v8227_v50, 16  ;;  %v8281_v38 = vld [vmem:[%s7415_s5 + $0xc4] sm:$0xf] }
  0xe5   : > { %865 = vrot.lane.b32.xlu0 %v831_v45, %s7326_s8  ;;  %v8173_v43 = vpop.permute.xlu1 %1475  ;;  %v5862_v45 = vld [vmem:[%s7415_s5 + $0xa8] sm:$0xe]  ;;  %v1707_v3 = vor.u32 %v1706_v31, %v1702_v34  ;;  %v2041_v14 = vsel %vm2029_vm7, %v2008_v55, %v8159_v2  ;;  %v698_v2 = vrot.slane %v696_v9, 1  ;;  %v5766_v31 = vld [vmem:[%s7415_s5 + $0xb4] sm:$0xf]  ;;  %v8299_v4 = vcombine.low %v5768_v42, %v8281_v38 }
  0xe6   : > { %v6006_v61 = vcombine.low %v5862_v45, %v8166_v56  ;;  %v2074_v46 = vsel %vm2062_vm8, %v2041_v14, %v8173_v43  ;;  %v1695_v56 = vor.u32 %v1694_v52, %v1690_v10  ;;  %v1854_v43 = vrot.slane %v8194_v27, 1  ;;  %v8286_v34 = vld [vmem:[%s7415_s5 + $0xa8] sm:$0xe]  ;;  %v8290_v10 = vld [vmem:[%s7415_s5 + $0xb8] sm:$0xf] }
  0xe7   : > { %v1474_v29 = vpop.permute.xlu0 %1473  ;;  %979 = vrot.lane.b32.xlu1 %v5927_v57, %s7324_s6  ;;  %v694_v15 = vor.u32 %v693_v58, %v689_v0  ;;  %v5912_v18 = vcombine.low %v8286_v34, %v8181_v37  ;;  %v839_v7 = vrot.slane %v8245_v23, 1  ;;  %v836_v23 = vrot.slane %v8213_v36, 1  ;;  %v6839_v14 = vld [vmem:[%s7415_s5 + $0xbc] ss:$0 sps:$4 sm:$0x11]  }
  0xe8   : > { %v2072_v53 = vsel %vm2062_vm8, %v2039_v12, %v1474_v29  ;;  %v703_v29 = vshll.u32 %v8227_v50, 16  ;;  %v710_v12 = vrot.slane %v708_v6, 1  ;;  %v5800_v36 = vld [vmem:[%s7415_s5 + $0xb4] sm:$0xe]  ;;  %v8458_v6 = vld [vmem:[%s7415_s5 + $0xd0] sm:$0xf] }
  0xe9   : > { %977 = vrot.lane.b32.xlu0 %v5926_v13, %s7324_s6  ;;  %v1748_v57 = vpop.permute.xlu1 %1747 }
  0xea   : > { %v2107_v30 = vsel %vm2095_vm9, %v2074_v46, %v1748_v57  ;;  %v1712_v57 = vsel %vm519_vm1, %v1707_v3, %v1711_v32  ;;  %v8392_v32 = vld [vmem:[%s7415_s5 + $0xc8] ss:$0 sps:$4 sm:$0x11]   ;;  %v5801_v46 = vld [vmem:[%s7415_s5 + $0xc0] sm:$0xe] }
  0xeb   : > { %v1746_v13 = vpop.permute.xlu0 %1745  ;;  %1251 = vrot.lane.b32.xlu1 %v1200_v5, %s7328_s10  ;;  %v8259_v5 = vld [vmem:[%s7415_s5 + $0xb4] sm:$0xe] }
  0xec   : > { %v2105_v54 = vsel %vm2095_vm9, %v2072_v53, %v1746_v13  ;;  %v705_v13 = vrot.slane %v703_v29, 1  ;;  %v6007_v27 = vcombine.low %v8259_v5, %v8157_v44  ;;  %v699_v44 = vsel %vm519_vm1, %v694_v15, %v698_v2 }
  0xed   : > { %1249 = vrot.lane.b32.xlu0 %v1188_v28, %s7328_s10  ;;  %v8232_v60 = vpop.permute.xlu1 %724  ;;  %v1853_v28 = vrot.slane %v6006_v61, 1  ;;  %v7332_v53 = vmov 0   ;;  %v835_v61 = vrot.slane %v5912_v18, 1  ;;  %v1221_v29 = vshll.u32 %v8392_v32, 16 }
  0xee   : > { %v706_v39 = vor.u32 %v705_v13, %v701_v62  ;;  %2932 = vst.msk [vmem:[#allocation2 + $0x24] sm:$0xf] %vm2921_vm12, %v7332_v53  ;;  %2922 = vst.msk [vmem:[#allocation2] sm:$0xf] %vm2921_vm12, %v7332_v53  ;;  %v1856_v52 = vrot.slane %v6007_v27, 1  ;;  %v5960_v27 = vcombine.low %v5800_v36, %v8290_v10 }
  0xef   : > { %v1874_v16 = vpop.permute.xlu0 %1873  ;;  %1379 = vrot.lane.b32.xlu1 %v1346_v40, %s7325_s7  ;;  %v1700_v40 = vsel %vm519_vm1, %v1695_v56, %v1699_v17  ;;  %v1855_v49 = vsel %vm792_vm0, %v1853_v28, %v1854_v43  ;;  %2923 = vst.msk [vmem:[#allocation2 + $0x4] sm:$0xf] %vm2921_vm12, %v7332_v53  ;;  %2926 = vst.msk [vmem:[#allocation2 + $0xc] sm:$0xf] %vm2921_vm12, %v7332_v53  ;;  %v1214_v17 = vshrl.u32 %v8299_v4, 16  ;;  %v1209_v43 = vshll.u32 %v6839_v14, 16 }
  0xf0   : > { %v2138_v48 = vsel %vm2128_vm10, %v2105_v54, %v1874_v16  ;;  %2927 = vst.msk [vmem:[#allocation2 + $0x10] sm:$0xf] %vm2921_vm12, %v7332_v53  ;;  %2929 = vst.msk [vmem:[#allocation2 + $0x18] sm:$0xf] %vm2921_vm12, %v7332_v53  ;;  %v8387_v54 = vcombine.low %v5766_v31, %v8290_v10  ;;  %v711_v9 = vsel %vm519_vm1, %v706_v39, %v710_v12  ;;  %v1223_v15 = vrot.slane %v1221_v29, 1 }
  0xf1   : > { %1377 = vrot.lane.b32.xlu0 %v1343_v22, %s7325_s7  ;;  %6572 = vmatprep.mubr.msk.bf16.mxu0 %vm2186_vm11, %v2138_v48  ;;  %v8255_v1 = vpop.permute.xlu1 %726  ;;  %v8277_v22 = vld [vmem:[%s7415_s5 + $0xb4] sm:$0xe]  ;;  %2930 = vst.msk [vmem:[#allocation2 + $0x1c] sm:$0xf] %vm2921_vm12, %v7332_v53  ;;  %2933 = vst.msk [vmem:[#allocation2 + $0x28] sm:$0xf] %vm2921_vm12, %v7332_v53  ;;  %v1858_v3 = vsel %vm792_vm0, %v1856_v52, %v1857_v59  ;;  %v837_v5 = vsel %vm792_vm0, %v835_v61, %v836_v23 }
  0xf2   : > { %v5913_v45 = vcombine.low %v8277_v22, %v8205_v47  ;;  %2935 = vst.msk [vmem:[#allocation2 + $0x30] sm:$0xf] %vm2921_vm12, %v7332_v53  ;;  %2936 = vst.msk [vmem:[#allocation2 + $0x34] sm:$0xf] %vm2921_vm12, %v7332_v53  ;;  %v1216_v48 = vshll.u32 %v8299_v4, 16  ;;  %v1204_v0 = vshll.u32 %v8387_v54, 16  ;;  %v1911_v52 = vsel %vm1897_vm3, %v7647_v21, %v8232_v60 }
  0xf3   : > { %v1876_v24 = vpop.permute.xlu0 %1875  ;;  %1491 = vrot.lane.b32.xlu1 %v8170_v26, %s7329_s11  ;;  %2938 = vst.msk [vmem:[#allocation2 + $0x3c] sm:$0xf] %vm2921_vm12, %v7332_v53  ;;  %2939 = vst.msk [vmem:[#allocation2 + $0x40] sm:$0xf] %vm2921_vm12, %v7332_v53  ;;  %v5830_v62 = vld [vmem:[%s7415_s5 + $0xc0] sm:$0xf]  ;;  %v1913_v23 = vsel %vm1897_vm3, %v7663_v35, %v8255_v1 }
  0xf4   : > { %v2140_v11 = vsel %vm2128_vm10, %v2107_v30, %v1876_v24  ;;  %2941 = vst.msk [vmem:[#allocation2 + $0x48] sm:$0xf] %vm2921_vm12, %v7332_v53  ;;  %2942 = vst.msk [vmem:[#allocation2 + $0x4c] sm:$0xf] %vm2921_vm12, %v7332_v53  ;;  %v838_v55 = vrot.slane %v5913_v45, 1  ;;  %v1218_v30 = vrot.slane %v1216_v48, 1 }
  0xf5   : > { %1489 = vrot.lane.b32.xlu0 %v8177_v63, %s7329_s11  ;;  %6573 = vmatmul.mubr.msk.bf16.gmra.mxu0 %vm2186_vm11, %v2140_v11  ;;  %v8271_v26 = vpop.permute.xlu1 %855  ;;  %2944 = vst.msk [vmem:[#allocation2 + $0x54] sm:$0xf] %vm2921_vm12, %v7332_v53  ;;  %2945 = vst.msk [vmem:[#allocation2 + $0x58] sm:$0xf] %vm2921_vm12, %v7332_v53  ;;  %v5832_v24 = vld [vmem:[%s7415_s5 + $0xcc] sm:$0xf] }
  0xf6   : > { %2947 = vst.msk [vmem:[#allocation2 + $0x60] sm:$0xf] %vm2921_vm12, %v7332_v53  ;;  %2948 = vst.msk [vmem:[#allocation2 + $0x64] sm:$0xf] %vm2921_vm12, %v7332_v53  ;;  %v840_v56 = vsel %vm792_vm0, %v838_v55, %v839_v7  ;;  %v1202_v11 = vshrl.u32 %v8387_v54, 16  ;;  %v1206_v28 = vrot.slane %v1204_v0, 1  ;;  %v1219_v22 = vor.u32 %v1218_v30, %v1214_v17 }
  0xf7   : > { %v8283_v63 = vpop.permute.xlu0 %853  ;;  %1763 = vrot.lane.b32.xlu1 %v1712_v57, %s7330_s12  ;;  %2950 = vst.msk [vmem:[#allocation2 + $0x6c] sm:$0xf] %vm2921_vm12, %v7332_v53  ;;  %2951 = vst.msk [vmem:[#allocation2 + $0x70] sm:$0xf] %vm2921_vm12, %v7332_v53  ;;  %v8462_v13 = vld [vmem:[%s7415_s5 + $0xc4] sm:$0xf]  ;;  %v5977_v42 = vcombine.low %v5832_v24, %v8458_v6 }
  0xf8   : > { %2953 = vst.msk [vmem:[#allocation2 + $0x78] sm:$0xf] %vm2921_vm12, %v7332_v53  ;;  %2954 = vst.msk [vmem:[#allocation2 + $0x7c] sm:$0xf] %vm2921_vm12, %v7332_v53  ;;  %v1207_v31 = vor.u32 %v1206_v28, %v1202_v11  ;;  %v5976_v12 = vcombine.low %v5830_v62, %v8462_v13  ;;  %v1351_v10 = vrot.slane %v8392_v32, 1  ;;  %v1347_v45 = vrot.slane %v5960_v27, 1 }
  0xf9   : > { %1761 = vrot.lane.b32.xlu0 %v1700_v40, %s7330_s12  ;;  %2956 = vst.msk [vmem:[#allocation2 + $0x84] sm:$0xf] %vm2921_vm12, %v7332_v53  ;;  %2957 = vst.msk [vmem:[#allocation2 + $0x88] sm:$0xf] %vm2921_vm12, %v7332_v53  ;;  %v8381_v47 = vpop.permute.xlu1 %967  ;;  %v5961_v40 = vcombine.low %v5801_v46, %v8281_v38  ;;  %v1224_v59 = vsel %vm519_vm1, %v1219_v22, %v1223_v15  ;;  %v1728_v18 = vshll.u32 %v5977_v42, 16  ;;  %v1726_v61 = vshrl.u32 %v5977_v42, 16 }
  0xfa   : > { %2959 = vst.msk [vmem:[#allocation2 + $0x90] sm:$0xf] %vm2921_vm12, %v7332_v53  ;;  %2960 = vst.msk [vmem:[#allocation2 + $0x94] sm:$0xf] %vm2921_vm12, %v7332_v53  ;;  %v1716_v32 = vshll.u32 %v5976_v12, 16  ;;  %v1714_v0 = vshrl.u32 %v5976_v12, 16 }
  0xfb   : > { %2962 = vst.msk [vmem:[#allocation2 + $0x9c] sm:$0xf] %vm2921_vm12, %v7332_v53  ;;  %2963 = vst.msk [vmem:[#allocation2 + $0xa0] sm:$0xf] %vm2921_vm12, %v7332_v53  ;;  %v8389_v16 = vpop.permute.xlu0 %965  ;;  %740 = vrot.lane.b32.xlu1 %v699_v44, %s7327_s9  ;;  %v1350_v38 = vrot.slane %v5961_v40, 1 }
  0xfc   : > { %2965 = vst.msk [vmem:[#allocation2 + $0xa8] sm:$0xf] %vm2921_vm12, %v7332_v53  ;;  %2966 = vst.msk [vmem:[#allocation2 + $0xac] sm:$0xf] %vm2921_vm12, %v7332_v53  ;;  %v5865_v30 = vld [vmem:[%s7415_s5 + $0xcc] sm:$0xe] }
  0xfd   : > { %2968 = vst.msk [vmem:[#allocation2 + $0xb4] sm:$0xf] %vm2921_vm12, %v7332_v53  ;;  %2969 = vst.msk [vmem:[#allocation2 + $0xb8] sm:$0xf] %vm2921_vm12, %v7332_v53  ;;  %1889 = vrot.lane.b32.xlu0 %v1855_v49, %s7331_s13  ;;  %v8439_v37 = vpop.permute.xlu1 %1239  ;;  %v1211_v49 = vrot.slane %v1209_v43, 1  ;;  %v1352_v60 = vsel %vm792_vm0, %v1350_v38, %v1351_v10  ;;  %v6009_v43 = vcombine.low %v5865_v30, %v8458_v6 }
  0xfe   : > { %2971 = vst.msk [vmem:[#allocation2 + $0xc0] sm:$0xf] %vm2921_vm12, %v7332_v53  ;;  %2972 = vst.msk [vmem:[#allocation2 + $0xc4] sm:$0xf] %vm2921_vm12, %v7332_v53  ;;  %v5864_v24 = vld [vmem:[%s7415_s5 + $0xc0] sm:$0xe] }
  0xff   : > { %2974 = vst.msk [vmem:[#allocation2 + $0xcc] sm:$0xf] %vm2921_vm12, %v7332_v53  ;;  %2975 = vst.msk [vmem:[#allocation2 + $0xd0] sm:$0xf] %vm2921_vm12, %v7332_v53  ;;  %v1238_v58 = vpop.permute.xlu0 %1237  ;;  %742 = vrot.lane.b32.xlu1 %v711_v9, %s7327_s9  ;;  %v1944_v9 = vsel %vm1930_vm4, %v1911_v52, %v8283_v63  ;;  %v6008_v40 = vcombine.low %v5864_v24, %v8462_v13 }
 0x100   : > { %2977 = vst.msk [vmem:[#allocation2 + $0xd8] sm:$0xf] %vm2921_vm12, %v7332_v53  ;;  %2978 = vst.msk [vmem:[#allocation2 + $0xdc] sm:$0xf] %vm2921_vm12, %v7332_v53  ;;  %v1977_v48 = vsel %vm1963_vm5, %v1944_v9, %v8389_v16 }
 0x101   : > { %2980 = vst.msk [vmem:[#allocation2 + $0xe4] sm:$0xf] %vm2921_vm12, %v7332_v53  ;;  %2981 = vst.msk [vmem:[#allocation2 + $0xe8] sm:$0xf] %vm2921_vm12, %v7332_v53  ;;  %1891 = vrot.lane.b32.xlu0 %v1858_v3, %s7331_s13  ;;  %v8453_v2 = vpop.permute.xlu1 %1367  ;;  %v2010_v21 = vsel %vm1996_vm6, %v1977_v48, %v1238_v58  ;;  %v1946_v58 = vsel %vm1930_vm4, %v1913_v23, %v8271_v26  ;;  %v1859_v13 = vrot.slane %v6008_v40, 1 }
 0x102   : > { %2934 = vst.msk [vmem:[#allocation2 + $0x2c] sm:$0x3] %vm2924_vm13, %v7332_v53  ;;  %2925 = vst.msk [vmem:[#allocation2 + $0x8] sm:$0x3] %vm2924_vm13, %v7332_v53  ;;  %v1979_v36 = vsel %vm1963_vm5, %v1946_v58, %v8381_v47 }
 0x103   : > { %2928 = vst.msk [vmem:[#allocation2 + $0x14] sm:$0x3] %vm2924_vm13, %v7332_v53  ;;  %2931 = vst.msk [vmem:[#allocation2 + $0x20] sm:$0x3] %vm2924_vm13, %v7332_v53  ;;  %v1366_v57 = vpop.permute.xlu0 %1365  ;;  %871 = vrot.lane.b32.xlu1 %v840_v56, %s7326_s8  ;;  %v1718_v56 = vrot.slane %v1716_v32, 1 }
 0x104   : > { %2937 = vst.msk [vmem:[#allocation2 + $0x38] sm:$0x3] %vm2924_vm13, %v7332_v53  ;;  %2940 = vst.msk [vmem:[#allocation2 + $0x44] sm:$0x3] %vm2924_vm13, %v7332_v53  ;;  %v2043_v16 = vsel %vm2029_vm7, %v2010_v21, %v1366_v57 }
 0x105   : > { %2943 = vst.msk [vmem:[#allocation2 + $0x50] sm:$0x3] %vm2924_vm13, %v7332_v53  ;;  %2946 = vst.msk [vmem:[#allocation2 + $0x5c] sm:$0x3] %vm2924_vm13, %v7332_v53  ;;  %869 = vrot.lane.b32.xlu0 %v837_v5, %s7326_s8  ;;  %v1480_v34 = vpop.permute.xlu1 %1479  ;;  %v2012_v5 = vsel %vm1996_vm6, %v1979_v36, %v8439_v37  ;;  %v1719_v62 = vor.u32 %v1718_v56, %v1714_v0 }
 0x106   : > { %2949 = vst.msk [vmem:[#allocation2 + $0x68] sm:$0x3] %vm2924_vm13, %v7332_v53  ;;  %2952 = vst.msk [vmem:[#allocation2 + $0x74] sm:$0x3] %vm2924_vm13, %v7332_v53  ;;  %v2045_v26 = vsel %vm2029_vm7, %v2012_v5, %v8453_v2 }
 0x107   : > { %2955 = vst.msk [vmem:[#allocation2 + $0x80] sm:$0x3] %vm2924_vm13, %v7332_v53  ;;  %2958 = vst.msk [vmem:[#allocation2 + $0x8c] sm:$0x3] %vm2924_vm13, %v7332_v53  ;;  %v1478_v44 = vpop.permute.xlu0 %1477  ;;  %983 = vrot.lane.b32.xlu1 %v8299_v4, %s7324_s6  ;;  %v1212_v4 = vsel %vm519_vm1, %v1207_v31, %v1211_v49  ;;  %v2078_v57 = vsel %vm2062_vm8, %v2045_v26, %v1480_v34  ;;  %v1862_v31 = vrot.slane %v6009_v43, 1 }
 0x108   : > { %2961 = vst.msk [vmem:[#allocation2 + $0x98] sm:$0x3] %vm2924_vm13, %v7332_v53  ;;  %2964 = vst.msk [vmem:[#allocation2 + $0xa4] sm:$0x3] %vm2924_vm13, %v7332_v53  ;;  %v2076_v29 = vsel %vm2062_vm8, %v2043_v16, %v1478_v44 }
 0x109   : > { %2967 = vst.msk [vmem:[#allocation2 + $0xb0] sm:$0x3] %vm2924_vm13, %v7332_v53  ;;  %2970 = vst.msk [vmem:[#allocation2 + $0xbc] sm:$0x3] %vm2924_vm13, %v7332_v53  ;;  %981 = vrot.lane.b32.xlu0 %v8387_v54, %s7324_s6  ;;  %v1752_v55 = vpop.permute.xlu1 %1751  ;;  %s7334_s6 = smov 96  }
 0x10a   : > { %2973 = vst.msk [vmem:[#allocation2 + $0xc8] sm:$0x3] %vm2924_vm13, %v7332_v53  ;;  %2976 = vst.msk [vmem:[#allocation2 + $0xd4] sm:$0x3] %vm2924_vm13, %v7332_v53  ;;  %v2111_v27 = vsel %vm2095_vm9, %v2078_v57, %v1752_v55 }
 0x10b   : > { %2979 = vst.msk [vmem:[#allocation2 + $0xe0] sm:$0x3] %vm2924_vm13, %v7332_v53  ;;  %2982 = vst.msk [vmem:[#allocation2 + $0xec] sm:$0x3] %vm2924_vm13, %v7332_v53  ;;  %v1348_v53 = vrot.slane %v6839_v14, 1  ;;  %v1750_v3 = vpop.permute.xlu0 %1749  ;;  %1255 = vrot.lane.b32.xlu1 %v1224_v59, %s7328_s10  ;;  %v1730_v14 = vrot.slane %v1728_v18, 1 }
 0x10c   : > { %v8471_v39 = vld [vmem:[%s7415_s5 + $0xd4] ss:$0 sps:$4 sm:$0x11]   ;;  %v6845_v7 = vld [vmem:[%s7415_s5 + $0xc8] ss:$0 sps:$4 sm:$0x11]   ;;  %v2109_v35 = vsel %vm2095_vm9, %v2076_v29, %v1750_v3 }
 0x10d   : > { %v1349_v54 = vsel %vm792_vm0, %v1347_v45, %v1348_v53  ;;  %v1733_v63 = vshll.u32 %v8471_v39, 16  ;;  %1253 = vrot.lane.b32.xlu0 %v1212_v4, %s7328_s10  ;;  %v729_v46 = vpop.permute.xlu1 %728  ;;  %v1721_v17 = vshll.u32 %v6845_v7, 16  ;;  %v1731_v28 = vor.u32 %v1730_v14, %v1726_v61  ;;  %s7333_s5 = smov 64  }
 0x10e   : > { %v1863_v34 = vrot.slane %v8471_v39, 1  ;;  %v1860_v38 = vrot.slane %v6845_v7, 1  ;;  %v1915_v4 = vsel %vm1897_vm3, %v7747_v8, %v729_v46 }
 0x10f   : > { %v1878_v1 = vpop.permute.xlu0 %1877  ;;  %1383 = vrot.lane.b32.xlu1 %v1352_v60, %s7325_s7  ;;  %v1735_v47 = vrot.slane %v1733_v63, 1  ;;  %v1723_v37 = vrot.slane %v1721_v17, 1 }
 0x110   : > { %v2142_v11 = vsel %vm2128_vm10, %v2109_v35, %v1878_v1  ;;  %v1861_v45 = vsel %vm792_vm0, %v1859_v13, %v1860_v38 }
 0x111   : > { %1381 = vrot.lane.b32.xlu0 %v1349_v54, %s7325_s7  ;;  %6576 = vmatprep.mubr.msk.bf16.mxu0 %vm2186_vm11, %v2142_v11  ;;  %v731_v15 = vpop.permute.xlu1 %730  ;;  %v1736_v6 = vsel %vm519_vm1, %v1731_v28, %v1735_v47  ;;  %v1724_v44 = vsel %vm519_vm1, %v1719_v62, %v1723_v37  ;;  %vm3080_vm1 = vcmask 1044484  }
 0x112   : > { %v1917_v21 = vsel %vm1897_vm3, %v7764_v20, %v731_v15 }
 0x113   : > { %v1880_v22 = vpop.permute.xlu0 %1879  ;;  %1495 = vrot.lane.b32.xlu1 %v5977_v42, %s7329_s11  ;;  %v1864_v42 = vsel %vm792_vm0, %v1862_v31, %v1863_v34 }
 0x114   : > { %v2144_v2 = vsel %vm2128_vm10, %v2111_v27, %v1880_v22 }
 0x115   : > { %1493 = vrot.lane.b32.xlu0 %v5976_v12, %s7329_s11  ;;  %6577 = vmatmul.mubr.msk.bf16.gmra.mxu0 %vm2186_vm11, %v2144_v2  ;;  %v860_v49 = vpop.permute.xlu1 %859  ;;  %s6408_s11 = sshll.u32 %s7383_s19, 12 }
 0x116   : > { %v1950_v54 = vsel %vm1930_vm4, %v1917_v21, %v860_v49  ;;  %s10233_s22 = scalar_lea.hbm %s10286_s4, %s6408_s11 }
 0x117   : > { %v858_v10 = vpop.permute.xlu0 %857  ;;  %1767 = vrot.lane.b32.xlu1 %v1736_v6, %s7330_s12 }
 0x118   : > { %v1948_v7 = vsel %vm1930_vm4, %v1915_v4, %v858_v10 }
 0x119   : > { %1765 = vrot.lane.b32.xlu0 %v1724_v44, %s7330_s12  ;;  %v972_v12 = vpop.permute.xlu1 %971 }
 0x11a   : > { %v1983_v8 = vsel %vm1963_vm5, %v1950_v54, %v972_v12 }
 0x11b   : > { %v970_v53 = vpop.permute.xlu0 %969  ;;  %1895 = vrot.lane.b32.xlu1 %v1864_v42, %s7331_s13 }
 0x11c   : > { %v1981_v48 = vsel %vm1963_vm5, %v1948_v7, %v970_v53 }
 0x11d   : > { %1893 = vrot.lane.b32.xlu0 %v1861_v45, %s7331_s13  ;;  %v1244_v39 = vpop.permute.xlu1 %1243 }
 0x11e   : > { %v2016_v0 = vsel %vm1996_vm6, %v1983_v8, %v1244_v39 }
 0x11f   : > { %v1242_v52 = vpop.permute.xlu0 %1241 }
 0x120   : > { %v2014_v61 = vsel %vm1996_vm6, %v1981_v48, %v1242_v52 }
 0x121   : > { %v1372_v59 = vpop.permute.xlu1 %1371 }
 0x122   : > { %v2049_v29 = vsel %vm2029_vm7, %v2016_v0, %v1372_v59 }
 0x123   : > { %v1370_v18 = vpop.permute.xlu0 %1369 }
 0x124   : > { %v2047_v60 = vsel %vm2029_vm7, %v2014_v61, %v1370_v18 }
 0x125   : > { %v1484_v9 = vpop.permute.xlu1 %1483 }
 0x126   : > { %v2082_v20 = vsel %vm2062_vm8, %v2049_v29, %v1484_v9 }
 0x127   : > { %v1482_v55 = vpop.permute.xlu0 %1481 }
 0x128   : > { %v2080_v63 = vsel %vm2062_vm8, %v2047_v60, %v1482_v55 }
 0x129   : > { %v1756_v32 = vpop.permute.xlu1 %1755 }
 0x12a   : > { %v2115_v56 = vsel %vm2095_vm9, %v2082_v20, %v1756_v32 }
 0x12b   : > { %v1754_v3 = vpop.permute.xlu0 %1753 }
 0x12c   : > { %v2113_v16 = vsel %vm2095_vm9, %v2080_v63, %v1754_v3 }
 0x12d   : > { %v733_v23 = vpop.permute.xlu1 %732 }
 0x12e   : > { %v1919_v57 = vsel %vm1897_vm3, %v7889_v25, %v733_v23 }
 0x12f   : > { %v1882_v14 = vpop.permute.xlu0 %1881 }
 0x130   : > { %v2146_v58 = vsel %vm2128_vm10, %v2113_v16, %v1882_v14 }
 0x131   : > { %6580 = vmatprep.mubr.msk.bf16.mxu0 %vm2186_vm11, %v2146_v58  ;;  %v735_v46 = vpop.permute.xlu1 %734 }
 0x132   : > { %v1921_v22 = vsel %vm1897_vm3, %v7913_v41, %v735_v46 }
 0x133   : > { %v1884_v17 = vpop.permute.xlu0 %1883 }
 0x134   : > { %v2148_v30 = vsel %vm2128_vm10, %v2115_v56, %v1884_v17 }
 0x135   : > { %6581 = vmatmul.mubr.msk.bf16.gmra.mxu0 %vm2186_vm11, %v2148_v30  ;;  %v864_v36 = vpop.permute.xlu1 %863 }
 0x136   : > { %v1954_v6 = vsel %vm1930_vm4, %v1921_v22, %v864_v36 }
 0x137   : > { %v862_v35 = vpop.permute.xlu0 %861 }
 0x138   : > { %v1952_v15 = vsel %vm1930_vm4, %v1919_v57, %v862_v35 }
 0x139   : > { %v976_v1 = vpop.permute.xlu1 %975 }
 0x13a   : > { %v1987_v25 = vsel %vm1963_vm5, %v1954_v6, %v976_v1 }
 0x13b   : > { %v974_v24 = vpop.permute.xlu0 %973 }
 0x13c   : > { %v1985_v37 = vsel %vm1963_vm5, %v1952_v15, %v974_v24 }
 0x13d   : > { %v1248_v5 = vpop.permute.xlu1 %1247 }
 0x13e   : > { %v2020_v13 = vsel %vm1996_vm6, %v1987_v25, %v1248_v5 }
 0x13f   : > { %v1246_v11 = vpop.permute.xlu0 %1245 }
 0x140   : > { %v2018_v27 = vsel %vm1996_vm6, %v1985_v37, %v1246_v11 }
 0x141   : > { %v1376_v26 = vpop.permute.xlu1 %1375 }
 0x142   : > { %v2053_v10 = vsel %vm2029_vm7, %v2020_v13, %v1376_v26 }
 0x143   : > { %v1374_v28 = vpop.permute.xlu0 %1373 }
 0x144   : > { %v2051_v2 = vsel %vm2029_vm7, %v2018_v27, %v1374_v28 }
 0x145   : > { %v1488_v47 = vpop.permute.xlu1 %1487 }
 0x146   : > { %v2086_v41 = vsel %vm2062_vm8, %v2053_v10, %v1488_v47 }
 0x147   : > { %v1486_v43 = vpop.permute.xlu0 %1485 }
 0x148   : > { %v2084_v31 = vsel %vm2062_vm8, %v2051_v2, %v1486_v43 }
 0x149   : > { %v1760_v62 = vpop.permute.xlu1 %1759 }
 0x14a   : > { %v2119_v12 = vsel %vm2095_vm9, %v2086_v41, %v1760_v62 }
 0x14b   : > { %v1758_v40 = vpop.permute.xlu0 %1757 }
 0x14c   : > { %v2117_v49 = vsel %vm2095_vm9, %v2084_v31, %v1758_v40 }
 0x14d   : > { %v737_v34 = vpop.permute.xlu1 %736 }
 0x14e   : > { %v1923_v3 = vsel %vm1897_vm3, %v8037_v51, %v737_v34 }
 0x14f   : > { %v1886_v44 = vpop.permute.xlu0 %1885 }
 0x150   : > { %v2150_v38 = vsel %vm2128_vm10, %v2117_v49, %v1886_v44 }
 0x151   : > { %6584 = vmatprep.mubr.msk.bf16.mxu0 %vm2186_vm11, %v2150_v38  ;;  %v739_v42 = vpop.permute.xlu1 %738 }
 0x152   : > { %v1925_v23 = vsel %vm1897_vm3, %v8066_v19, %v739_v42 }
 0x153   : > { %v1888_v45 = vpop.permute.xlu0 %1887 }
 0x154   : > { %v2152_v53 = vsel %vm2128_vm10, %v2119_v12, %v1888_v45 }
 0x155   : > { %6585 = vmatmul.mubr.msk.bf16.gmra.mxu0 %vm2186_vm11, %v2152_v53  ;;  %v868_v39 = vpop.permute.xlu1 %867 }
 0x156   : > { %v1958_v16 = vsel %vm1930_vm4, %v1925_v23, %v868_v39 }
 0x157   : > { %v866_v52 = vpop.permute.xlu0 %865 }
 0x158   : > { %v1956_v61 = vsel %vm1930_vm4, %v1923_v3, %v866_v52 }
 0x159   : > { %v980_v59 = vpop.permute.xlu1 %979 }
 0x15a   : > { %v1991_v51 = vsel %vm1963_vm5, %v1958_v16, %v980_v59 }
 0x15b   : > { %v978_v18 = vpop.permute.xlu0 %977 }
 0x15c   : > { %v1989_v60 = vsel %vm1963_vm5, %v1956_v61, %v978_v18 }
 0x15d   : > { %v1252_v9 = vpop.permute.xlu1 %1251 }
 0x15e   : > { %v2024_v20 = vsel %vm1996_vm6, %v1991_v51, %v1252_v9 }
 0x15f   : > { %v1250_v55 = vpop.permute.xlu0 %1249 }
 0x160   : > { %v2022_v63 = vsel %vm1996_vm6, %v1989_v60, %v1250_v55  ;;  %v8614_v55 = vld [vmem:[%s10285_s3] ss:$0 sm:$0xff] }
 0x161   : > { %v1380_v4 = vpop.permute.xlu1 %1379 }
 0x162   : > { %v2057_v56 = vsel %vm2029_vm7, %v2024_v20, %v1380_v4 }
 0x163   : > { %v1378_v7 = vpop.permute.xlu0 %1377 }
 0x164   : > { %v2055_v8 = vsel %vm2029_vm7, %v2022_v63, %v1378_v7 }
 0x165   : > { %v1492_v32 = vpop.permute.xlu1 %1491 }
 0x166   : > { %v2090_v19 = vsel %vm2062_vm8, %v2057_v56, %v1492_v32 }
 0x167   : > { %v1490_v48 = vpop.permute.xlu0 %1489 }
 0x168   : > { %v2088_v14 = vsel %vm2062_vm8, %v2055_v8, %v1490_v48 }
 0x169   : > { %v1764_v21 = vpop.permute.xlu1 %1763 }
 0x16a   : > { %v2123_v30 = vsel %vm2095_vm9, %v2090_v19, %v1764_v21 }
 0x16b   : > { %v1762_v54 = vpop.permute.xlu0 %1761 }
 0x16c   : > { %v2121_v58 = vsel %vm2095_vm9, %v2088_v14, %v1762_v54 }
 0x16d   : > { %v741_v0 = vpop.permute.xlu1 %740 }
 0x16e   : > { %v1927_v37 = vsel %vm1897_vm3, %v8197_v33, %v741_v0 }
 0x16f   : > { %v1890_v29 = vpop.permute.xlu0 %1889 }
 0x170   : > { %v2154_v46 = vsel %vm2128_vm10, %v2121_v58, %v1890_v29 }
 0x171   : > { %6588 = vmatprep.mubr.msk.bf16.mxu0 %vm2186_vm11, %v2154_v46  ;;  %v743_v17 = vpop.permute.xlu1 %742 }
 0x172   : > { %v1929_v62 = vsel %vm1897_vm3, %v8227_v50, %v743_v17  ;;  %vm3214_vm3 = vcmask 253952  }
 0x173   : > { %v1892_v36 = vpop.permute.xlu0 %1891 }
 0x174   : > { %v2156_v35 = vsel %vm2128_vm10, %v2123_v30, %v1892_v36 }
 0x175   : > { %6589 = vmatmul.mubr.msk.bf16.gmra.mxu0 %vm2186_vm11, %v2156_v35  ;;  %v872_v1 = vpop.permute.xlu1 %871  ;;  %v6566_v45 = vpop.f32.mrf.mxu0 }
 0x176   : > { %v1962_v40 = vsel %vm1930_vm4, %v1929_v62, %v872_v1  ;;  %v8625_v21 = vadd.f32 %v6566_v45, %v8614_v55 }
 0x177   : > { %v870_v24 = vpop.permute.xlu0 %869  ;;  %v2257_v53 = vpop.f32.mrf.mxu0 }
 0x178   : > { %v1960_v27 = vsel %vm1930_vm4, %v1927_v37, %v870_v24  ;;  %v8620_v48 = vadd.f32 %v8614_v55, %v2257_v53  ;;  %v2387_v23 = vsel %vm2128_vm10, %v8625_v21, 0.0  ;;  %vm9203_vm4 = vmor %vm3079_vm15, %vm3080_vm1 }
 0x179   : > { %v984_v5 = vpop.permute.xlu1 %983  ;;  %v6567_v39 = vpop.f32.mrf.mxu0 }
 0x17a   : > { %v1995_v22 = vsel %vm1963_vm5, %v1962_v40, %v984_v5  ;;  %v2384_v60 = vsel %vm2128_vm10, %v8620_v48, 0.0  ;;  %v8632_v8 = vadd.f32 %v6567_v39, %v8614_v55 }
 0x17b   : > { %v982_v11 = vpop.permute.xlu0 %981  ;;  %v2260_v52 = vpop.f32.mrf.mxu0 }
 0x17c   : > { %v1993_v6 = vsel %vm1963_vm5, %v1960_v27, %v982_v11  ;;  %v8617_v7 = vadd.f32 %v8614_v55, %v2260_v52  ;;  %v2389_v58 = vsel %vm2128_vm10, %v8632_v8, 0.0  ;;  %vm4895_vm5 = vcmask 523264  }
 0x17d   : > { %v1256_v26 = vpop.permute.xlu1 %1255 }
 0x17e   : > { %v2028_v31 = vsel %vm1996_vm6, %v1995_v22, %v1256_v26  ;;  %v2385_v3 = vsel %vm2128_vm10, %v8617_v7, 0.0 }
 0x17f   : > { %v1254_v28 = vpop.permute.xlu0 %1253  ;;  %v2386_v54 = vadd.f32 %v2385_v3, %v2384_v60 }
 0x180   : > { %v2026_v25 = vsel %vm1996_vm6, %v1993_v6, %v1254_v28  ;;  %vm4928_vm6 = vcmask 785408  }
 0x181   : > { %v1384_v47 = vpop.permute.xlu1 %1383  ;;  %v2388_v14 = vadd.f32 %v2387_v23, %v2386_v54 }
 0x182   : > { %v2061_v49 = vsel %vm2029_vm7, %v2028_v31, %v1384_v47 }
 0x183   : > { %v1382_v43 = vpop.permute.xlu0 %1381  ;;  %v2390_v20 = vadd.f32 %v2389_v58, %v2388_v14 }
 0x184   : > { %v2059_v50 = vsel %vm2029_vm7, %v2026_v25, %v1382_v43 }
 0x185   : > { %v1496_v57 = vpop.permute.xlu1 %1495 }
 0x186   : > { %v2094_v33 = vsel %vm2062_vm8, %v2061_v49, %v1496_v57 }
 0x187   : > { %v1494_v15 = vpop.permute.xlu0 %1493 }
 0x188   : > { %v2092_v44 = vsel %vm2062_vm8, %v2059_v50, %v1494_v15 }
 0x189   : > { %v1768_v2 = vpop.permute.xlu1 %1767 }
 0x18a   : > { %v2127_v13 = vsel %vm2095_vm9, %v2094_v33, %v1768_v2 }
 0x18b   : > { %v1766_v34 = vpop.permute.xlu0 %1765 }
 0x18c   : > { %v2125_v10 = vsel %vm2095_vm9, %v2092_v44, %v1766_v34 }
 0x18d   : > { %v1896_v38 = vpop.permute.xlu1 %1895 }
 0x18e   : > { %v2160_v41 = vsel %vm2128_vm10, %v2127_v13, %v1896_v38 }
 0x18f   : > { %v1894_v42 = vpop.permute.xlu0 %1893 }
 0x190   : > { %v2158_v12 = vsel %vm2128_vm10, %v2125_v10, %v1894_v42 }
 0x191   : > { %6592 = vmatprep.mubr.msk.bf16.mxu0 %vm2186_vm11, %v2158_v12 }
 0x192   : > { %6593 = vmatmul.mubr.msk.bf16.gmra.mxu0 %vm2186_vm11, %v2160_v41 }
 0x195   : > { %v6570_v59 = vpop.f32.mrf.mxu0 }
 0x196   : > { %v8647_v17 = vadd.f32 %v6570_v59, %v8614_v55 }
 0x197   : > { %v2273_v18 = vpop.f32.mrf.mxu0 }
 0x198   : > { %v8635_v16 = vadd.f32 %v8614_v55, %v2273_v18  ;;  %v2395_v35 = vsel %vm2128_vm10, %v8647_v17, 0.0 }
 0x199   : > { %v6571_v9 = vpop.f32.mrf.mxu0 }
 0x19a   : > { %v2391_v29 = vsel %vm2128_vm10, %v8635_v16, 0.0  ;;  %v8652_v1 = vadd.f32 %v6571_v9, %v8614_v55 }
 0x19b   : > { %v2276_v4 = vpop.f32.mrf.mxu0  ;;  %v2392_v19 = vadd.f32 %v2391_v29, %v2390_v20 }
 0x19c   : > { %v8638_v0 = vadd.f32 %v8614_v55, %v2276_v4  ;;  %v2397_v28 = vsel %vm2128_vm10, %v8652_v1, 0.0 }
 0x19e   : > { %v2393_v56 = vsel %vm2128_vm10, %v8638_v0, 0.0 }
 0x19f   : > { %v2394_v30 = vadd.f32 %v2393_v56, %v2392_v19 }
 0x1a1   : > { %v2396_v5 = vadd.f32 %v2395_v35, %v2394_v30 }
 0x1a3   : > { %v2398_v43 = vadd.f32 %v2397_v28, %v2396_v5 }
 0x1b5   : > { %v6574_v32 = vpop.f32.mrf.mxu0 }
 0x1b6   : > { %v8667_v40 = vadd.f32 %v6574_v32, %v8614_v55 }
 0x1b7   : > { %v2289_v61 = vpop.f32.mrf.mxu0 }
 0x1b8   : > { %v8655_v24 = vadd.f32 %v8614_v55, %v2289_v61  ;;  %v2403_v2 = vsel %vm2128_vm10, %v8667_v40, 0.0 }
 0x1b9   : > { %v6575_v63 = vpop.f32.mrf.mxu0 }
 0x1ba   : > { %v2399_v47 = vsel %vm2128_vm10, %v8655_v24, 0.0  ;;  %v8672_v6 = vadd.f32 %v6575_v63, %v8614_v55 }
 0x1bb   : > { %v2292_v51 = vpop.f32.mrf.mxu0  ;;  %v2400_v62 = vadd.f32 %v2399_v47, %v2398_v43 }
 0x1bc   : > { %v8658_v26 = vadd.f32 %v8614_v55, %v2292_v51  ;;  %v2405_v50 = vsel %vm2128_vm10, %v8672_v6, 0.0 }
 0x1be   : > { %v2401_v15 = vsel %vm2128_vm10, %v8658_v26, 0.0 }
 0x1bf   : > { %v2402_v27 = vadd.f32 %v2401_v15, %v2400_v62 }
 0x1c1   : > { %v2404_v34 = vadd.f32 %v2403_v2, %v2402_v27 }
 0x1c3   : > { %v2406_v44 = vadd.f32 %v2405_v50, %v2404_v34 }
 0x1d5   : > { %v6578_v46 = vpop.f32.mrf.mxu0 }
 0x1d6   : > { %v8687_v41 = vadd.f32 %v6578_v46, %v8614_v55 }
 0x1d7   : > { %v2305_v36 = vpop.f32.mrf.mxu0 }
 0x1d8   : > { %v8675_v31 = vadd.f32 %v8614_v55, %v2305_v36  ;;  %v2411_v45 = vsel %vm2128_vm10, %v8687_v41, 0.0 }
 0x1d9   : > { %v6579_v11 = vpop.f32.mrf.mxu0 }
 0x1da   : > { %v2407_v33 = vsel %vm2128_vm10, %v8675_v31, 0.0  ;;  %v8692_v53 = vadd.f32 %v6579_v11, %v8614_v55 }
 0x1db   : > { %v2308_v57 = vpop.f32.mrf.mxu0  ;;  %v2408_v38 = vadd.f32 %v2407_v33, %v2406_v44 }
 0x1dc   : > { %v8678_v25 = vadd.f32 %v8614_v55, %v2308_v57  ;;  %v2413_v9 = vsel %vm2128_vm10, %v8692_v53, 0.0 }
 0x1de   : > { %v2409_v13 = vsel %vm2128_vm10, %v8678_v25, 0.0 }
 0x1df   : > { %v2410_v42 = vadd.f32 %v2409_v13, %v2408_v38 }
 0x1e1   : > { %v2412_v52 = vadd.f32 %v2411_v45, %v2410_v42 }
 0x1e3   : > { %v2414_v32 = vadd.f32 %v2413_v9, %v2412_v52 }
 0x1f5   : > { %v6582_v37 = vpop.f32.mrf.mxu0 }
 0x1f6   : > { %v8707_v54 = vadd.f32 %v6582_v37, %v8614_v55 }
 0x1f7   : > { %v2321_v22 = vpop.f32.mrf.mxu0 }
 0x1f8   : > { %v8695_v39 = vadd.f32 %v8614_v55, %v2321_v22  ;;  %v2419_v51 = vsel %vm2128_vm10, %v8707_v54, 0.0 }
 0x1f9   : > { %v6583_v49 = vpop.f32.mrf.mxu0 }
 0x1fa   : > { %v2415_v4 = vsel %vm2128_vm10, %v8695_v39, 0.0  ;;  %v8712_v58 = vadd.f32 %v6583_v49, %v8614_v55 }
 0x1fb   : > { %v2324_v10 = vpop.f32.mrf.mxu0  ;;  %v2416_v60 = vadd.f32 %v2415_v4, %v2414_v32 }
 0x1fc   : > { %v8698_v18 = vadd.f32 %v8614_v55, %v2324_v10  ;;  %v2421_v19 = vsel %vm2128_vm10, %v8712_v58, 0.0 }
 0x1fe   : > { %v2417_v61 = vsel %vm2128_vm10, %v8698_v18, 0.0 }
 0x1ff   : > { %v2418_v63 = vadd.f32 %v2417_v61, %v2416_v60 }
 0x201   : > { %v2420_v20 = vadd.f32 %v2419_v51, %v2418_v63 }
 0x203   : > { %v2422_v36 = vadd.f32 %v2421_v19, %v2420_v20 }
 0x215   : > { %v6586_v12 = vpop.f32.mrf.mxu0 }
 0x216   : > { %v8727_v28 = vadd.f32 %v6586_v12, %v8614_v55 }
 0x217   : > { %v2337_v59 = vpop.f32.mrf.mxu0 }
 0x218   : > { %v8715_v29 = vadd.f32 %v8614_v55, %v2337_v59  ;;  %v2427_v57 = vsel %vm2128_vm10, %v8727_v28, 0.0 }
 0x219   : > { %v6587_v3 = vpop.f32.mrf.mxu0 }
 0x21a   : > { %v2423_v30 = vsel %vm2128_vm10, %v8715_v29, 0.0  ;;  %v8732_v15 = vadd.f32 %v6587_v3, %v8614_v55 }
 0x21b   : > { %v2340_v23 = vpop.f32.mrf.mxu0  ;;  %v2424_v5 = vadd.f32 %v2423_v30, %v2422_v36 }
 0x21c   : > { %v8718_v46 = vadd.f32 %v8614_v55, %v2340_v23  ;;  %v2429_v22 = vsel %vm2128_vm10, %v8732_v15, 0.0 }
 0x21e   : > { %v2425_v35 = vsel %vm2128_vm10, %v8718_v46, 0.0 }
 0x21f   : > { %v2426_v47 = vadd.f32 %v2425_v35, %v2424_v5 }
 0x221   : > { %v2428_v37 = vadd.f32 %v2427_v57, %v2426_v47 }
 0x223   : > { %v2430_v34 = vadd.f32 %v2429_v22, %v2428_v37 }
 0x235   : > { %v6590_v14 = vpop.f32.mrf.mxu0 }
 0x236   : > { %v8747_v33 = vadd.f32 %v6590_v14, %v8614_v55 }
 0x237   : > { %v2353_v56 = vpop.f32.mrf.mxu0 }
 0x238   : > { %v8735_v62 = vadd.f32 %v8614_v55, %v2353_v56  ;;  %v2435_v38 = vsel %vm2128_vm10, %v8747_v33, 0.0 }
 0x239   : > { %v6591_v11 = vpop.f32.mrf.mxu0 }
 0x23a   : > { %v2431_v2 = vsel %vm2128_vm10, %v8735_v62, 0.0  ;;  %v8752_v10 = vadd.f32 %v6591_v11, %v8614_v55 }
 0x23b   : > { %v2356_v43 = vpop.f32.mrf.mxu0  ;;  %v2432_v50 = vadd.f32 %v2431_v2, %v2430_v34 }
 0x23c   : > { %v8738_v27 = vadd.f32 %v8614_v55, %v2356_v43  ;;  %v2437_v59 = vsel %vm2128_vm10, %v8752_v10, 0.0 }
 0x23e   : > { %v2433_v49 = vsel %vm2128_vm10, %v8738_v27, 0.0 }
 0x23f   : > { %v2434_v44 = vadd.f32 %v2433_v49, %v2432_v50 }
 0x241   : > { %v2436_v42 = vadd.f32 %v2435_v38, %v2434_v44 }
 0x243   : > { %v2438_v4 = vadd.f32 %v2437_v59, %v2436_v42 }
 0x252   : > { %v6594_v13 = vpop.f32.mrf.mxu0 }
 0x253   : > { %v8762_v3 = vadd.f32 %v6594_v13, %v8614_v55 }
 0x254   : > { %v2369_v12 = vpop.f32.mrf.mxu0 }
 0x255   : > { %v8755_v45 = vadd.f32 %v8614_v55, %v2369_v12  ;;  %v2443_v51 = vsel %vm2128_vm10, %v8762_v3, 0.0 }
 0x256   : > { %v6595_v52 = vpop.f32.mrf.mxu0 }
 0x257   : > { %v2439_v9 = vsel %vm2128_vm10, %v8755_v45, 0.0  ;;  %v8768_v63 = vadd.f32 %v6595_v52, %v8614_v55 }
 0x258   : > { %v2372_v32 = vpop.f32.mrf.mxu0  ;;  %v2440_v60 = vadd.f32 %v2439_v9, %v2438_v4 }
 0x259   : > { %v8765_v61 = vadd.f32 %v8614_v55, %v2372_v32  ;;  %v2445_v56 = vsel %vm2128_vm10, %v8768_v63, 0.0 }
 0x25b   : > { %v2441_v23 = vsel %vm2128_vm10, %v8765_v61, 0.0 }
 0x25c   : > { %v2442_v14 = vadd.f32 %v2441_v23, %v2440_v60 }
 0x25e   : > { %v2444_v20 = vadd.f32 %v2443_v51, %v2442_v14 }
 0x260   : > { %v2446_v19 = vadd.f32 %v2445_v56, %v2444_v20 }
 0x262   : > { %v2447_v30 = vrot.slane %v2446_v19, 4 }
 0x264   : > { %v2448_v36 = vadd.f32 %v2447_v30, %v2446_v19  ;;  %v3264_v19 = vld [vmem:[#allocation2 + $0x10] sm:$0xf]  ;;  %v3295_v30 = vld [vmem:[#allocation2 + $0xc] sm:$0xe] }
 0x266   : > { %v2449_v35 = vrot.slane %v2448_v36, 2 }
 0x268   : > { %v2450_v5 = vadd.f32 %v2449_v35, %v2448_v36 }
 0x26a   : > { %v2451_v11 = vrot.slane %v2450_v5, 1 }
 0x26c   : > { %v2452_v47 = vadd.f32 %v2451_v11, %v2450_v5  ;;  %v6114_v5 = vcombine.low %v3295_v30, %v3264_v19 }
 0x26e   : > { %v8776_v55 = vmul.f32 0.00390625, %v2452_v47 }
 0x270   : > { %v8780_v43 = vsub.f32 %v8620_v48, %v8776_v55  ;;  %v8784_v57 = vsub.f32 %v8617_v7, %v8776_v55  ;;  %v8788_v37 = vsub.f32 %v8625_v21, %v8776_v55  ;;  %v8792_v22 = vsub.f32 %v8632_v8, %v8776_v55 }
 0x271   : > { %v8800_v48 = vsub.f32 %v8635_v16, %v8776_v55  ;;  %v8806_v21 = vsub.f32 %v8638_v0, %v8776_v55  ;;  %v8814_v13 = vsub.f32 %v8647_v17, %v8776_v55  ;;  %v8821_v0 = vsub.f32 %v8652_v1, %v8776_v55 }
 0x272   : > { %v2486_v2 = vmul.f32 %v8780_v43, %v8780_v43  ;;  %v2487_v34 = vmul.f32 %v8784_v57, %v8784_v57  ;;  %v2488_v7 = vmul.f32 %v8788_v37, %v8788_v37  ;;  %v2489_v8 = vmul.f32 %v8792_v22, %v8792_v22 }
 0x273   : > { %v2490_v16 = vmul.f32 %v8800_v48, %v8800_v48  ;;  %v2491_v12 = vmul.f32 %v8806_v21, %v8806_v21  ;;  %v8828_v17 = vsub.f32 %v8655_v24, %v8776_v55  ;;  %v2492_v9 = vmul.f32 %v8814_v13, %v8814_v13 }
 0x274   : > { %v2518_v49 = vsel %vm2128_vm10, %v2486_v2, 0.0  ;;  %v2519_v50 = vsel %vm2128_vm10, %v2487_v34, 0.0  ;;  %v2521_v38 = vsel %vm2128_vm10, %v2488_v7, 0.0  ;;  %v2523_v52 = vsel %vm2128_vm10, %v2489_v8, 0.0 }
 0x275   : > { %v2520_v44 = vadd.f32 %v2519_v50, %v2518_v49  ;;  %v2525_v4 = vsel %vm2128_vm10, %v2490_v16, 0.0  ;;  %v8835_v32 = vsub.f32 %v8658_v26, %v8776_v55  ;;  %v2493_v60 = vmul.f32 %v8821_v0, %v8821_v0  ;;  %v3327_v49 = vld [vmem:[#allocation2 + $0xc] sm:$0xc] }
 0x276   : > { %v2527_v23 = vsel %vm2128_vm10, %v2491_v12, 0.0  ;;  %v8842_v24 = vsub.f32 %v8667_v40, %v8776_v55  ;;  %v2494_v51 = vmul.f32 %v8828_v17, %v8828_v17  ;;  %v2529_v20 = vsel %vm2128_vm10, %v2492_v9, 0.0  ;;  %v6849_v40 = vld [vmem:[#allocation2 + $0x14] ss:$0 sps:$4 sm:$0x11]  }
 0x277   : > { %v2522_v42 = vadd.f32 %v2521_v38, %v2520_v44  ;;  %v2495_v26 = vmul.f32 %v8835_v32, %v8835_v32  ;;  %v8851_v36 = vsub.f32 %v8672_v6, %v8776_v55  ;;  %v2531_v35 = vsel %vm2128_vm10, %v2493_v60, 0.0  ;;  %v6851_v38 = vld [vmem:[#allocation2 + $0x14] ss:$0 sps:$4 sm:$0x33]  }
 0x278   : > { %v8856_v11 = vsub.f32 %v8675_v31, %v8776_v55  ;;  %v2496_v2 = vmul.f32 %v8842_v24, %v8842_v24  ;;  %v2533_v34 = vsel %vm2128_vm10, %v2494_v51, 0.0  ;;  %v3729_v7 = vrot.slane %v6114_v5, 1  ;;  %v3262_v31 = vld [vmem:[#allocation2 + $0x4] sm:$0xf] }
 0x279   : > { %v2524_v59 = vadd.f32 %v2523_v52, %v2522_v42  ;;  %v3730_v8 = vrot.slane %v6849_v40, 1  ;;  %v8863_v6 = vsub.f32 %v8678_v25, %v8776_v55  ;;  %v2535_v44 = vsel %vm2128_vm10, %v2495_v26, 0.0  ;;  %v6853_v9 = vld [vmem:[#allocation2 + $0x8] ss:$0 sps:$4 sm:$0x11]  }
 0x27a   : > { %v6146_v16 = vcombine.low %v3327_v49, %v3264_v19  ;;  %v8868_v42 = vsub.f32 %v8687_v41, %v8776_v55  ;;  %v2497_v12 = vmul.f32 %v8851_v36, %v8851_v36  ;;  %v2498_v41 = vmul.f32 %v8856_v11, %v8856_v11 }
 0x27b   : > { %v2526_v1 = vadd.f32 %v2525_v4, %v2524_v59  ;;  %v3731_v52 = vsel %vm792_vm0, %v3729_v7, %v3730_v8  ;;  %v3293_v59 = vld [vmem:[#allocation2] sm:$0xe]  ;;  %v2537_v51 = vsel %vm2128_vm10, %v2496_v2, 0.0  ;;  %v2499_v5 = vmul.f32 %v8863_v6, %v8863_v6 }
 0x27c   : > { %3776 = vrot.lane.b32.xlu1 %v3731_v52, %s7331_s13  ;;  %v3906_v4 = vrot.slane %v6146_v16, 2  ;;  %v6112_v60 = vcombine.low %v3293_v59, %v3262_v31  ;;  %v2539_v40 = vsel %vm2128_vm10, %v2497_v12, 0.0  ;;  %v8892_v2 = vsub.f32 %v8695_v39, %v8776_v55  ;;  %v3325_v16 = vld [vmem:[#allocation2] sm:$0xc] }
 0x27d   : > { %v2528_v14 = vadd.f32 %v2527_v23, %v2526_v1  ;;  %v3907_v1 = vrot.slane %v6851_v38, 2  ;;  %v3482_v23 = vld [vmem:[#allocation2 + $0xd8] sm:$0xf]  ;;  %v8900_v49 = vsub.f32 %v8698_v18, %v8776_v55  ;;  %v6856_v39 = vld [vmem:[#allocation2 + $0x8] ss:$0 sps:$4 sm:$0x33]   ;;  %v6144_v12 = vcombine.low %v3325_v16, %v3262_v31 }
 0x27e   : > { %v3726_v30 = vrot.slane %v6112_v60, 1  ;;  %v8908_v52 = vsub.f32 %v8707_v54, %v8776_v55  ;;  %v2502_v59 = vmul.f32 %v8892_v2, %v8892_v2  ;;  %v6858_v16 = vld [vmem:[#allocation2 + $0xe0] ss:$0 sps:$4 sm:$0x11]  }
 0x27f   : > { %v2530_v56 = vadd.f32 %v2529_v20, %v2528_v14  ;;  %v8874_v14 = vld [vmem:[#allocation2 + $0xdc] sm:$0xf]  ;;  %v3727_v20 = vrot.slane %v6853_v9, 1  ;;  %v3908_v19 = vsel %vm3902_vm14, %v3906_v4, %v3907_v1  ;;  %v3904_v9 = vrot.slane %v6856_v39, 2 }
 0x280   : > { %v6270_v26 = vcombine.low %v3482_v23, %v8874_v14  ;;  %3953 = vrot.lane.b32.xlu1 %v3908_v19, %s7333_s5  ;;  %v3903_v4 = vrot.slane %v6144_v12, 2  ;;  %v8915_v1 = vsub.f32 %v8712_v58, %v8776_v55  ;;  %v2503_v60 = vmul.f32 %v8900_v49, %v8900_v49 }
 0x281   : > { %v2532_v47 = vadd.f32 %v2531_v35, %v2530_v56  ;;  %v8883_v35 = vsub.f32 %v8692_v53, %v8776_v55  ;;  %v2541_v53 = vsel %vm2128_vm10, %v2498_v41, 0.0  ;;  %v3728_v7 = vsel %vm792_vm0, %v3726_v30, %v3727_v20 }
 0x282   : > { %4523 = vrot.lane.b32.xlu0 %v6270_v26, %s7333_s5  ;;  %v3905_v54 = vsel %vm3902_vm14, %v3903_v4, %v3904_v9  ;;  %v8923_v41 = vsub.f32 %v8715_v29, %v8776_v55  ;;  %v2549_v20 = vsel %vm2128_vm10, %v2502_v59, 0.0  ;;  %v8931_v26 = vsub.f32 %v8718_v46, %v8776_v55 }
 0x283   : > { %v2534_v50 = vadd.f32 %v2533_v34, %v2532_v47  ;;  %v2500_v34 = vmul.f32 %v8868_v42, %v8868_v42  ;;  %v2551_v19 = vsel %vm2128_vm10, %v2503_v60, 0.0  ;;  %v8938_v29 = vsub.f32 %v8727_v28, %v8776_v55 }
 0x284   : > { %3774 = vrot.lane.b32.xlu1 %v3728_v7, %s7331_s13  ;;  %v8945_v46 = vsub.f32 %v8732_v15, %v8776_v55  ;;  %v8952_v28 = vsub.f32 %v8735_v62, %v8776_v55  ;;  %v4666_v59 = vrot.slane %v6858_v16, 1 }
 0x285   : > { %v2536_v25 = vadd.f32 %v2535_v44, %v2534_v50  ;;  %v2501_v50 = vmul.f32 %v8883_v35, %v8883_v35  ;;  %v2543_v44 = vsel %vm2128_vm10, %v2499_v5, 0.0  ;;  %v2545_v18 = vsel %vm2128_vm10, %v2500_v34, 0.0 }
 0x286   : > { %v2506_v5 = vmul.f32 %v8923_v41, %v8923_v41  ;;  %v2507_v34 = vmul.f32 %v8931_v26, %v8931_v26  ;;  %v2509_v12 = vmul.f32 %v8945_v46, %v8945_v46  ;;  %v2510_v4 = vmul.f32 %v8952_v28, %v8952_v28 }
 0x287   : > { %v2538_v56 = vadd.f32 %v2537_v51, %v2536_v25  ;;  %v2547_v31 = vsel %vm2128_vm10, %v2501_v50, 0.0  ;;  %v2504_v51 = vmul.f32 %v8908_v52, %v8908_v52 }
 0x288   : > { %3951 = vrot.lane.b32.xlu1 %v3905_v54, %s7333_s5  ;;  %v2557_v50 = vsel %vm2128_vm10, %v2506_v5, 0.0  ;;  %v2559_v62 = vsel %vm2128_vm10, %v2507_v34, 0.0  ;;  %v2563_v54 = vsel %vm2128_vm10, %v2509_v12, 0.0 }
 0x289   : > { %v2540_v47 = vadd.f32 %v2539_v40, %v2538_v56  ;;  %v2505_v56 = vmul.f32 %v8915_v1, %v8915_v1  ;;  %v2553_v40 = vsel %vm2128_vm10, %v2504_v51, 0.0  ;;  %v2482_v51 = vsub.f32 %v8755_v45, %v8776_v55 }
 0x28b   : > { %v2542_v8 = vadd.f32 %v2541_v53, %v2540_v47  ;;  %v2555_v53 = vsel %vm2128_vm10, %v2505_v56, 0.0  ;;  %v2514_v45 = vmul.f32 %v2482_v51, %v2482_v51 }
 0x28d   : > { %v2544_v38 = vadd.f32 %v2543_v44, %v2542_v8  ;;  %v2508_v8 = vmul.f32 %v8938_v29, %v8938_v29  ;;  %v3514_v44 = vld [vmem:[#allocation2 + $0xd8] sm:$0xe] }
 0x28e   : > { %v6300_v15 = vcombine.low %v3514_v44, %v8874_v14  ;;  %v2573_v44 = vsel %vm2128_vm10, %v2514_v45, 0.0 }
 0x28f   : > { %v2546_v25 = vadd.f32 %v2545_v18, %v2544_v38  ;;  %v8960_v38 = vsub.f32 %v8738_v27, %v8776_v55  ;;  %v2561_v14 = vsel %vm2128_vm10, %v2508_v8, 0.0 }
 0x290   : > { %v4665_v9 = vrot.slane %v6300_v15, 1 }
 0x291   : > { %v2548_v23 = vadd.f32 %v2547_v31, %v2546_v25  ;;  %v8967_v25 = vsub.f32 %v8747_v33, %v8776_v55  ;;  %v8975_v31 = vsub.f32 %v8752_v10, %v8776_v55  ;;  %v2483_v10 = vsub.f32 %v8765_v61, %v8776_v55 }
 0x292   : > { %v4667_v27 = vsel %vm792_vm0, %v4665_v9, %v4666_v59 }
 0x293   : > { %v2550_v58 = vadd.f32 %v2549_v20, %v2548_v23  ;;  %v2511_v23 = vmul.f32 %v8960_v38, %v8960_v38  ;;  %4699 = vrot.lane.b32.xlu0 %v4667_v27, %s7334_s6  ;;  %v2512_v20 = vmul.f32 %v8967_v25, %v8967_v25 }
 0x295   : > { %v2552_v30 = vadd.f32 %v2551_v19, %v2550_v58  ;;  %v2565_v58 = vsel %vm2128_vm10, %v2510_v4, 0.0  ;;  %v2513_v19 = vmul.f32 %v8975_v31, %v8975_v31 }
 0x297   : > { %v2554_v47 = vadd.f32 %v2553_v40, %v2552_v30  ;;  %v2567_v30 = vsel %vm2128_vm10, %v2511_v23, 0.0  ;;  %v8993_v40 = vsub.f32 %v8762_v3, %v8776_v55  ;;  %v2571_v61 = vsel %vm2128_vm10, %v2513_v19, 0.0  ;;  %v9013_v19 = vld [vmem:[%s10285_s3 + $0x2] ss:$0 sm:$0xff] }
 0x299   : > { %v2556_v7 = vadd.f32 %v2555_v53, %v2554_v47  ;;  %v2569_v47 = vsel %vm2128_vm10, %v2512_v20, 0.0  ;;  %v2485_v53 = vsub.f32 %v8768_v63, %v8776_v55  ;;  %v9008_v20 = vld [vmem:[%s10285_s3 + $0x1] ss:$0 sm:$0xff] }
 0x29b   : > { %v2558_v39 = vadd.f32 %v2557_v50, %v2556_v7  ;;  %v2515_v7 = vmul.f32 %v2483_v10, %v2483_v10  ;;  %v2516_v50 = vmul.f32 %v8993_v40, %v8993_v40 }
 0x29d   : > { %v2560_v18 = vadd.f32 %v2559_v62, %v2558_v39  ;;  %v2517_v39 = vmul.f32 %v2485_v53, %v2485_v53  ;;  %v2575_v3 = vsel %vm2128_vm10, %v2515_v7, 0.0  ;;  %v2577_v12 = vsel %vm2128_vm10, %v2516_v50, 0.0 }
 0x29f   : > { %v2562_v60 = vadd.f32 %v2561_v14, %v2560_v18  ;;  %v2579_v59 = vsel %vm2128_vm10, %v2517_v39, 0.0 }
 0x2a1   : > { %v2564_v33 = vadd.f32 %v2563_v54, %v2562_v60 }
 0x2a3   : > { %v2566_v56 = vadd.f32 %v2565_v58, %v2564_v33 }
 0x2a5   : > { %v2568_v5 = vadd.f32 %v2567_v30, %v2566_v56 }
 0x2a7   : > { %v2570_v34 = vadd.f32 %v2569_v47, %v2568_v5 }
 0x2a9   : > { %v2572_v8 = vadd.f32 %v2571_v61, %v2570_v34 }
 0x2ab   : > { %v2574_v16 = vadd.f32 %v2573_v44, %v2572_v8 }
 0x2ad   : > { %v2576_v15 = vadd.f32 %v2575_v3, %v2574_v16 }
 0x2af   : > { %v2578_v62 = vadd.f32 %v2577_v12, %v2576_v15 }
 0x2b1   : > { %v2580_v63 = vadd.f32 %v2579_v59, %v2578_v62 }
 0x2b3   : > { %v2581_v55 = vrot.slane %v2580_v63, 4 }
 0x2b5   : > { %v2582_v18 = vadd.f32 %v2581_v55, %v2580_v63 }
 0x2b7   : > { %v2583_v9 = vrot.slane %v2582_v18, 2 }
 0x2b9   : > { %v2584_v4 = vadd.f32 %v2583_v9, %v2582_v18 }
 0x2bb   : > { %v2585_v14 = vrot.slane %v2584_v4, 1 }
 0x2bd   : > { %v2586_v60 = vadd.f32 %v2585_v14, %v2584_v4 }
 0x2bf   : > { %v2587_v27 = vmul.f32 0.00390625, %v2586_v60 }
 0x2c1   : > { %v2588_v23 = vmax.f32 %v2587_v27, 0.0 }
 0x2c3   : > { %v2589_v54 = vadd.f32 1e-05, %v2588_v23 }
 0x2c5   : > { %7091 = vrsqrt.f32 %v2589_v54 }
 0x2d2   : > { %v7092_v33 = vpop.eup %7091 }
 0x2d3   : > { %v2619_v58 = vmul.f32 %v7092_v33, %v2482_v51  ;;  %v2620_v56 = vmul.f32 %v7092_v33, %v2483_v10  ;;  %v2591_v10 = vmul.f32 %v7092_v33, %v8780_v43  ;;  %v2592_v7 = vmul.f32 %v7092_v33, %v8784_v57 }
 0x2d4   : > { %v2593_v61 = vmul.f32 %v7092_v33, %v8788_v37  ;;  %v2594_v8 = vmul.f32 %v7092_v33, %v8792_v22  ;;  %v2595_v50 = vmul.f32 %v7092_v33, %v8800_v48  ;;  %v2596_v44 = vmul.f32 %v7092_v33, %v8806_v21 }
 0x2d5   : > { %v2656_v30 = vmul.f32 %v9008_v20, %v2619_v58  ;;  %v2657_v5 = vmul.f32 %v9008_v20, %v2620_v56  ;;  %v2597_v16 = vmul.f32 %v7092_v33, %v8814_v13  ;;  %v2616_v39 = vmul.f32 %v7092_v33, %v8960_v38 }
 0x2d6   : > { %v2618_v3 = vmul.f32 %v7092_v33, %v8975_v31  ;;  %v2598_v15 = vmul.f32 %v7092_v33, %v8821_v0  ;;  %v2599_v43 = vmul.f32 %v7092_v33, %v8828_v17  ;;  %v2600_v57 = vmul.f32 %v7092_v33, %v8835_v32 }
 0x2d7   : > { %v9018_v45 = vadd.f32 %v9013_v19, %v2656_v30  ;;  %v9021_v47 = vadd.f32 %v9013_v19, %v2657_v5  ;;  %v2622_v12 = vmul.f32 %v7092_v33, %v2485_v53  ;;  %v2601_v37 = vmul.f32 %v7092_v33, %v8842_v24 }
 0x2d8   : > { %v2602_v22 = vmul.f32 %v7092_v33, %v8851_v36  ;;  %v2603_v48 = vmul.f32 %v7092_v33, %v8856_v11  ;;  %v2604_v21 = vmul.f32 %v7092_v33, %v8863_v6  ;;  %v2605_v13 = vmul.f32 %v7092_v33, %v8868_v42 }
 0x2d9   : > { %v6060_v34 = vmul.f32 -1.442695, %v9018_v45  ;;  %v6061_v51 = vmul.f32 -1.442695, %v9021_v47  ;;  %v2606_v38 = vmul.f32 %v7092_v33, %v8883_v35  ;;  %v2607_v31 = vmul.f32 %v7092_v33, %v8892_v2 }
 0x2da   : > { %v2608_v0 = vmul.f32 %v7092_v33, %v8900_v49  ;;  %v2609_v17 = vmul.f32 %v7092_v33, %v8908_v52  ;;  %v2610_v32 = vmul.f32 %v7092_v33, %v8915_v1  ;;  %v2653_v24 = vmul.f32 %v9008_v20, %v2616_v39 }
 0x2db   : > { %7093 = vpow2.f32 %v6060_v34  ;;  %v2655_v36 = vmul.f32 %v9008_v20, %v2618_v3  ;;  %v2611_v11 = vmul.f32 %v7092_v33, %v8923_v41  ;;  %v9051_v6 = vmul.f32 %v7092_v33, %v8931_v26 }
 0x2dc   : > { %7095 = vpow2.f32 %v6061_v51  ;;  %v9054_v42 = vmul.f32 %v7092_v33, %v8938_v29  ;;  %v2659_v35 = vmul.f32 %v9008_v20, %v2622_v12  ;;  %v9058_v2 = vmul.f32 %v7092_v33, %v8945_v46 }
 0x2dd   : > { %v2628_v49 = vmul.f32 %v9008_v20, %v2591_v10  ;;  %v2629_v52 = vmul.f32 %v9008_v20, %v2592_v7  ;;  %v2630_v1 = vmul.f32 %v9008_v20, %v2593_v61  ;;  %v9064_v53 = vmul.f32 %v7092_v33, %v8952_v28 }
 0x2de   : > { %v9067_v41 = vmul.f32 %v7092_v33, %v8967_v25  ;;  %v9070_v26 = vmul.f32 %v7092_v33, %v8993_v40  ;;  %v2631_v29 = vmul.f32 %v9008_v20, %v2594_v8  ;;  %v2632_v46 = vmul.f32 %v9008_v20, %v2595_v50 }
 0x2df   : > { %v2633_v62 = vmul.f32 %v9008_v20, %v2596_v44  ;;  %v2634_v59 = vmul.f32 %v9008_v20, %v2597_v16  ;;  %v2635_v63 = vmul.f32 %v9008_v20, %v2598_v15  ;;  %v2636_v28 = vmul.f32 %v9008_v20, %v2599_v43 }
 0x2e0   : > { %v2637_v18 = vmul.f32 %v9008_v20, %v2600_v57  ;;  %v2638_v25 = vmul.f32 %v9008_v20, %v2601_v37  ;;  %v2639_v40 = vmul.f32 %v9008_v20, %v2602_v22  ;;  %v9082_v14 = vadd.f32 %v9013_v19, %v2628_v49 }
 0x2e1   : > { %v9085_v60 = vadd.f32 %v9013_v19, %v2629_v52  ;;  %v9088_v27 = vadd.f32 %v9013_v19, %v2630_v1  ;;  %v2640_v54 = vmul.f32 %v9008_v20, %v2603_v48  ;;  %v2641_v33 = vmul.f32 %v9008_v20, %v2604_v21 }
 0x2e2   : > { %v9093_v58 = vadd.f32 %v9013_v19, %v2631_v29  ;;  %v2642_v56 = vmul.f32 %v9008_v20, %v2605_v13  ;;  %v9097_v30 = vadd.f32 %v9013_v19, %v2632_v46  ;;  %v9100_v5 = vadd.f32 %v9013_v19, %v2653_v24 }
 0x2e3   : > { %v9103_v34 = vadd.f32 %v9013_v19, %v2633_v62  ;;  %v9106_v51 = vadd.f32 %v9013_v19, %v2655_v36  ;;  %v9109_v10 = vadd.f32 %v9013_v19, %v2659_v35  ;;  %v9112_v7 = vadd.f32 %v9013_v19, %v2634_v59 }
 0x2e4   : > { %v6032_v61 = vmul.f32 -1.442695, %v9082_v14  ;;  %v6033_v8 = vmul.f32 -1.442695, %v9085_v60  ;;  %v6034_v50 = vmul.f32 -1.442695, %v9088_v27  ;;  %v2643_v44 = vmul.f32 %v9008_v20, %v2606_v38 }
 0x2e5   : > { %10290 = vst [vmem:[#allocation6_spill] sm:$0xff] %v9109_v10  ;;  %v2644_v16 = vmul.f32 %v9008_v20, %v2607_v31  ;;  %v9120_v39 = vadd.f32 %v9013_v19, %v2635_v63  ;;  %v6035_v3 = vmul.f32 -1.442695, %v9093_v58  ;;  %v2645_v15 = vmul.f32 %v9008_v20, %v2608_v0 }
 0x2e6   : > { %v9125_v43 = vadd.f32 %v9013_v19, %v2636_v28  ;;  %v6036_v57 = vmul.f32 -1.442695, %v9097_v30  ;;  %v2646_v12 = vmul.f32 %v9008_v20, %v2609_v17  ;;  %v9130_v37 = vadd.f32 %v9013_v19, %v2637_v18 }
 0x2e7   : > { %v6037_v22 = vmul.f32 -1.442695, %v9103_v34  ;;  %v2647_v48 = vmul.f32 %v9008_v20, %v2610_v32  ;;  %v9135_v21 = vadd.f32 %v9013_v19, %v2638_v25  ;;  %v6038_v13 = vmul.f32 -1.442695, %v9112_v7 }
 0x2e8   : > { %v7094_v55 = vpop.eup %7093  ;;  %v2648_v38 = vmul.f32 %v9008_v20, %v2611_v11  ;;  %v9140_v31 = vadd.f32 %v9013_v19, %v2639_v40  ;;  %v6039_v0 = vmul.f32 -1.442695, %v9120_v39  ;;  %v2649_v17 = vmul.f32 %v9008_v20, %v9051_v6 }
 0x2e9   : > { %v7096_v9 = vpop.eup %7095  ;;  %v2821_v4 = vadd.f32 1.0, %v7094_v55  ;;  %v9146_v32 = vadd.f32 %v9013_v19, %v2640_v54  ;;  %v6040_v24 = vmul.f32 -1.442695, %v9125_v43  ;;  %v2650_v36 = vmul.f32 %v9008_v20, %v9054_v42 }
 0x2ea   : > { %v2822_v23 = vadd.f32 1.0, %v7096_v9  ;;  %v9152_v11 = vadd.f32 %v9013_v19, %v2641_v33  ;;  %v6041_v35 = vmul.f32 -1.442695, %v9130_v37  ;;  %v2651_v49 = vmul.f32 %v9008_v20, %v9058_v2 }
 0x2eb   : > { %7097 = vrcp.f32 %v2821_v4  ;;  %v9158_v6 = vadd.f32 %v9013_v19, %v2642_v56  ;;  %v6042_v52 = vmul.f32 -1.442695, %v9135_v21  ;;  %v2652_v1 = vmul.f32 %v9008_v20, %v9064_v53 }
 0x2ec   : > { %7099 = vrcp.f32 %v2822_v23  ;;  %v9164_v42 = vadd.f32 %v9013_v19, %v2643_v44  ;;  %v6043_v29 = vmul.f32 -1.442695, %v9140_v31  ;;  %v2654_v46 = vmul.f32 %v9008_v20, %v9067_v41 }
 0x2ed   : > { %7101 = vpow2.f32 %v6032_v61  ;;  %v9170_v2 = vadd.f32 %v9013_v19, %v2644_v16  ;;  %v6044_v62 = vmul.f32 -1.442695, %v9146_v32  ;;  %v2658_v53 = vmul.f32 %v9008_v20, %v9070_v26 }
 0x2ee   : > { %7103 = vpow2.f32 %v6033_v8  ;;  %v9176_v63 = vadd.f32 %v9013_v19, %v2645_v15  ;;  %v6045_v55 = vmul.f32 -1.442695, %v9152_v11  ;;  %v9181_v41 = vadd.f32 %v9013_v19, %v2646_v12 }
 0x2ef   : > { %7105 = vpow2.f32 %v6034_v50  ;;  %v6046_v25 = vmul.f32 -1.442695, %v9158_v6  ;;  %v9186_v9 = vadd.f32 %v9013_v19, %v2647_v48  ;;  %v6047_v20 = vmul.f32 -1.442695, %v9164_v42 }
 0x2f0   : > { %7107 = vpow2.f32 %v6035_v3  ;;  %v9190_v4 = vadd.f32 %v9013_v19, %v2648_v38  ;;  %v9194_v33 = vadd.f32 %v9013_v19, %v2649_v17  ;;  %v9198_v8 = vadd.f32 %v9013_v19, %v2650_v36 }
 0x2f1   : > { %7109 = vpow2.f32 %v6036_v57  ;;  %v6050_v50 = vmul.f32 -1.442695, %v9181_v41  ;;  %v9208_v15 = vadd.f32 %v9013_v19, %v2651_v49  ;;  %v6051_v57 = vmul.f32 -1.442695, %v9186_v9 }
 0x2f2   : > { %7111 = vpow2.f32 %v6037_v22  ;;  %v9213_v48 = vadd.f32 %v9013_v19, %v2652_v1  ;;  %v6053_v17 = vmul.f32 -1.442695, %v9194_v33  ;;  %v6054_v49 = vmul.f32 -1.442695, %v9198_v8 }
 0x2f3   : > { %7113 = vpow2.f32 %v6038_v13  ;;  %v6052_v13 = vmul.f32 -1.442695, %v9190_v4  ;;  %v6055_v1 = vmul.f32 -1.442695, %v9208_v15 }
 0x2f4   : > { %7115 = vpow2.f32 %v6039_v0 }
 0x2f5   : > { %7117 = vpow2.f32 %v6040_v24 }
 0x2f6   : > { %7119 = vpow2.f32 %v6041_v35  ;;  %v9220_v35 = vadd.f32 %v9013_v19, %v2654_v46 }
 0x2f7   : > { %7121 = vpow2.f32 %v6042_v52 }
 0x2f8   : > { %v7098_v59 = vpop.eup %7097  ;;  %7123 = vpow2.f32 %v6043_v29 }
 0x2f9   : > { %v7100_v28 = vpop.eup %7099  ;;  %v2917_v18 = vmul.f32 %v7098_v59, %v9018_v45  ;;  %v6048_v45 = vmul.f32 -1.442695, %v9170_v2  ;;  %7125 = vpow2.f32 %v6044_v62  ;;  %v9227_v62 = vadd.f32 %v9013_v19, %v2658_v53 }
 0x2fa   : > { %v2918_v40 = vmul.f32 %v7100_v28, %v9021_v47  ;;  %v7102_v23 = vpop.eup %7101  ;;  %v6049_v47 = vmul.f32 -1.442695, %v9176_v63  ;;  %7127 = vpow2.f32 %v6045_v55  ;;  %v6056_v59 = vmul.f32 -1.442695, %v9213_v48 }
 0x2fb   : > { %v6404_v26 = vpack.c.bf16 %v2917_v18, %v2917_v18  ;;  %v7104_v56 = vpop.eup %7103  ;;  %7129 = vpow2.f32 %v6046_v25  ;;  %v6057_v55 = vmul.f32 -1.442695, %v9100_v5  ;;  %v6058_v18 = vmul.f32 -1.442695, %v9220_v35 }
 0x2fc   : > { %v6405_v54 = vpack.c.bf16 %v2918_v40, %v2918_v40  ;;  %v7106_v44 = vpop.eup %7105  ;;  %7131 = vpow2.f32 %v6047_v20  ;;  %v6059_v40 = vmul.f32 -1.442695, %v9106_v51  ;;  %v6063_v53 = vmul.f32 -1.442695, %v9109_v10 }
 0x2fd   : > { %v3152_v61 = vrot.slane %v6404_v26, 7  ;;  %v7108_v12 = vpop.eup %7107  ;;  %7133 = vpow2.f32 %v6048_v45  ;;  %v6062_v26 = vmul.f32 -1.442695, %v9227_v62 }
 0x2fe   : > { %v3154_v3 = vrot.slane %v6405_v54, 7  ;;  %v7110_v38 = vpop.eup %7109  ;;  %7135 = vpow2.f32 %v6049_v47  ;;  %v2793_v54 = vadd.f32 1.0, %v7102_v23 }
 0x2ff   : > { %v3153_v22 = vrot.slane %v3152_v61, 4  ;;  %3255 = vst.msk [vmem:[#allocation2 + $0xc0] sm:$0xe] %vm3211_vm2, %v3152_v61  ;;  %v7112_v24 = vpop.eup %7111  ;;  %7137 = vpow2.f32 %v6050_v50  ;;  %v2794_v61 = vadd.f32 1.0, %v7104_v56 }
 0x300   : > { %v3156_v0 = vrot.slane %v3154_v3, 4  ;;  %v7114_v52 = vpop.eup %7113  ;;  %7139 = vpow2.f32 %v6051_v57 }
 0x301   : > { %v3155_v36 = vsel %vm9203_vm4, %v3153_v22, %v3154_v3  ;;  %v7116_v29 = vpop.eup %7115  ;;  %7141 = vpow2.f32 %v6052_v13  ;;  %v2795_v3 = vadd.f32 1.0, %v7106_v44  ;;  %v2796_v22 = vadd.f32 1.0, %v7108_v12 }
 0x302   : > { %3256 = vst.msk [vmem:[#allocation2 + $0xc4] sm:$0xf] %vm2921_vm12, %v3155_v36  ;;  %v7118_v46 = vpop.eup %7117  ;;  %7143 = vpow2.f32 %v6053_v17  ;;  %v2798_v36 = vadd.f32 1.0, %v7112_v24  ;;  %v2800_v23 = vadd.f32 1.0, %v7116_v29 }
 0x303   : > { %3257 = vst.msk [vmem:[#allocation2 + $0xc8] sm:$0x1] %vm3214_vm3, %v3156_v0  ;;  %v7120_v28 = vpop.eup %7119  ;;  %7145 = vpow2.f32 %v6054_v49  ;;  %v2797_v0 = vadd.f32 1.0, %v7110_v38  ;;  %v2801_v56 = vadd.f32 1.0, %v7118_v46 }
 0x304   : > { %v7122_v25 = vpop.eup %7121  ;;  %7147 = vpow2.f32 %v6055_v1  ;;  %v2799_v1 = vadd.f32 1.0, %v7114_v52  ;;  %v2802_v44 = vadd.f32 1.0, %v7120_v28 }
 0x305   : > { %v7124_v20 = vpop.eup %7123  ;;  %7149 = vpow2.f32 %v6056_v59  ;;  %v2803_v12 = vadd.f32 1.0, %v7122_v25 }
 0x306   : > { %v7126_v19 = vpop.eup %7125  ;;  %7151 = vpow2.f32 %v6057_v55 }
 0x307   : > { %v7128_v45 = vpop.eup %7127  ;;  %7153 = vpow2.f32 %v6058_v18 }
 0x308   : > { %v7130_v47 = vpop.eup %7129  ;;  %7155 = vpow2.f32 %v6059_v40 }
 0x309   : > { %v7132_v50 = vpop.eup %7131  ;;  %7157 = vpow2.f32 %v6062_v26  ;;  %v2804_v26 = vadd.f32 1.0, %v7124_v20 }
 0x30a   : > { %v7134_v57 = vpop.eup %7133  ;;  %7159 = vpow2.f32 %v6063_v53  ;;  %v2805_v53 = vadd.f32 1.0, %v7126_v19 }
 0x30b   : > { %v7136_v13 = vpop.eup %7135  ;;  %7161 = vrcp.f32 %v2793_v54  ;;  %v2806_v54 = vadd.f32 1.0, %v7128_v45 }
 0x30c   : > { %v7138_v17 = vpop.eup %7137  ;;  %7163 = vrcp.f32 %v2794_v61  ;;  %v2807_v61 = vadd.f32 1.0, %v7130_v47  ;;  %v2810_v28 = vadd.f32 1.0, %v7136_v13 }
 0x30d   : > { %v7140_v49 = vpop.eup %7139  ;;  %7165 = vrcp.f32 %v2795_v3  ;;  %v2808_v3 = vadd.f32 1.0, %v7132_v50  ;;  %v2811_v25 = vadd.f32 1.0, %v7138_v17 }
 0x30e   : > { %v7142_v59 = vpop.eup %7141  ;;  %7167 = vrcp.f32 %v2796_v22  ;;  %v2809_v22 = vadd.f32 1.0, %v7134_v57 }
 0x30f   : > { %v7144_v55 = vpop.eup %7143  ;;  %7169 = vrcp.f32 %v2797_v0 }
 0x310   : > { %v7146_v18 = vpop.eup %7145  ;;  %7171 = vrcp.f32 %v2798_v36  ;;  %v2812_v36 = vadd.f32 1.0, %v7140_v49 }
 0x311   : > { %v7148_v40 = vpop.eup %7147  ;;  %7173 = vrcp.f32 %v2799_v1  ;;  %v2813_v1 = vadd.f32 1.0, %v7142_v59  ;;  %v2815_v19 = vadd.f32 1.0, %v7146_v18 }
 0x312   : > { %v7150_v38 = vpop.eup %7149  ;;  %7175 = vrcp.f32 %v2800_v23  ;;  %v2814_v23 = vadd.f32 1.0, %v7144_v55 }
 0x313   : > { %v7152_v24 = vpop.eup %7151  ;;  %7177 = vrcp.f32 %v2801_v56  ;;  %v2816_v56 = vadd.f32 1.0, %v7148_v40 }
 0x314   : > { %v7154_v52 = vpop.eup %7153  ;;  %7179 = vrcp.f32 %v2802_v44  ;;  %v2817_v44 = vadd.f32 1.0, %v7150_v38  ;;  %v2818_v10 = vadd.f32 1.0, %v7152_v24 }
 0x315   : > { %v7156_v29 = vpop.eup %7155  ;;  %7181 = vrcp.f32 %v2803_v12  ;;  %v2819_v57 = vadd.f32 1.0, %v7154_v52 }
 0x316   : > { %v7158_v46 = vpop.eup %7157  ;;  %7183 = vrcp.f32 %v2804_v26  ;;  %v9236_v13 = vadd.f32 1.0, %v7156_v29 }
 0x317   : > { %v7160_v0 = vpop.eup %7159  ;;  %7185 = vrcp.f32 %v2805_v53  ;;  %v9239_v59 = vadd.f32 1.0, %v7158_v46 }
 0x318   : > { %v7162_v20 = vpop.eup %7161  ;;  %7187 = vrcp.f32 %v2806_v54  ;;  %v9242_v12 = vadd.f32 1.0, %v7160_v0 }
 0x319   : > { %v7164_v45 = vpop.eup %7163  ;;  %7189 = vrcp.f32 %v2807_v61  ;;  %v2889_v47 = vmul.f32 %v7162_v20, %v9082_v14 }
 0x31a   : > { %v7166_v50 = vpop.eup %7165  ;;  %7191 = vrcp.f32 %v2808_v3  ;;  %v2890_v17 = vmul.f32 %v7164_v45, %v9085_v60 }
 0x31b   : > { %v7168_v49 = vpop.eup %7167  ;;  %7193 = vrcp.f32 %v2809_v22  ;;  %v2891_v55 = vmul.f32 %v7166_v50, %v9088_v27  ;;  %v6376_v18 = vpack.c.bf16 %v2889_v47, %v2889_v47 }
 0x31c   : > { %v7170_v40 = vpop.eup %7169  ;;  %7195 = vrcp.f32 %v2810_v28  ;;  %v2892_v14 = vmul.f32 %v7168_v49, %v9093_v58  ;;  %v6377_v38 = vpack.c.bf16 %v2890_v17, %v2890_v17 }
 0x31d   : > { %v7172_v26 = vpop.eup %7171  ;;  %7197 = vrcp.f32 %v2811_v25  ;;  %v9246_v24 = vmul.f32 %v7170_v40, %v9097_v30  ;;  %v6378_v60 = vpack.c.bf16 %v2891_v55, %v2891_v55  ;;  %v9248_v53 = vrot.slane %v6376_v18, 7 }
 0x31e   : > { %v7174_v52 = vpop.eup %7173  ;;  %7199 = vrcp.f32 %v2812_v36  ;;  %v9251_v27 = vmul.f32 %v7172_v26, %v9103_v34  ;;  %v6379_v54 = vpack.c.bf16 %v2892_v14, %v2892_v14  ;;  %v9253_v29 = vrot.slane %v6377_v38, 7 }
 0x31f   : > { %v7176_v61 = vpop.eup %7175  ;;  %7201 = vrcp.f32 %v2813_v1  ;;  %v2895_v58 = vmul.f32 %v7174_v52, %v9112_v7  ;;  %v3087_v46 = vrot.slane %v6378_v60, 7  ;;  %v6380_v30 = vpack.c.bf16 %v9246_v24, %v9246_v24  ;;  %3212 = vst.msk [vmem:[#allocation2 + $0x18] sm:$0xe] %vm3211_vm2, %v9248_v53 }
 0x320   : > { %v7178_v3 = vpop.eup %7177  ;;  %7203 = vrcp.f32 %v2814_v23  ;;  %v2896_v22 = vmul.f32 %v7176_v61, %v9120_v39  ;;  %v3089_v34 = vrot.slane %v6379_v54, 7  ;;  %v6381_v28 = vpack.c.bf16 %v9251_v27, %v9251_v27 }
 0x321   : > { %v7180_v0 = vpop.eup %7179  ;;  %7205 = vrcp.f32 %v2815_v19  ;;  %v6382_v25 = vpack.c.bf16 %v2895_v58, %v2895_v58  ;;  %v2897_v7 = vmul.f32 %v7178_v3, %v9125_v43  ;;  %v3088_v36 = vrot.slane %v3087_v46, 4  ;;  %3216 = vst.msk [vmem:[#allocation2 + $0x24] sm:$0xe] %vm3211_vm2, %v3087_v46 }
 0x322   : > { %v7182_v1 = vpop.eup %7181  ;;  %7207 = vrcp.f32 %v2816_v56  ;;  %v6383_v20 = vpack.c.bf16 %v2896_v22, %v2896_v22  ;;  %v2898_v45 = vmul.f32 %v7180_v0, %v9130_v37  ;;  %v3091_v23 = vrot.slane %v3089_v34, 4 }
 0x323   : > { %v7184_v47 = vpop.eup %7183  ;;  %7209 = vrcp.f32 %v2817_v44  ;;  %v3097_v39 = vrot.slane %v6382_v25, 7  ;;  %v2899_v50 = vmul.f32 %v7182_v1, %v9135_v21  ;;  %v3090_v19 = vsel %vm9203_vm4, %v3088_v36, %v3089_v34 }
 0x324   : > { %v7186_v17 = vpop.eup %7185  ;;  %7211 = vrcp.f32 %v2818_v10  ;;  %v3099_v43 = vrot.slane %v6383_v20, 7  ;;  %v2900_v49 = vmul.f32 %v7184_v47, %v9140_v31  ;;  %3217 = vst.msk [vmem:[#allocation2 + $0x28] sm:$0xf] %vm2921_vm12, %v3090_v19  ;;  %v6384_v56 = vpack.c.bf16 %v2897_v7, %v2897_v7 }
 0x325   : > { %3218 = vst.msk [vmem:[#allocation2 + $0x2c] sm:$0x1] %vm3214_vm3, %v3091_v23  ;;  %v7188_v37 = vpop.eup %7187  ;;  %7213 = vrcp.f32 %v2819_v57  ;;  %v3098_v55 = vrot.slane %v3097_v39, 4  ;;  %v2901_v21 = vmul.f32 %v7186_v17, %v9146_v32  ;;  %v6385_v44 = vpack.c.bf16 %v2898_v45, %v2898_v45 }
 0x326   : > { %3222 = vst.msk [vmem:[#allocation2 + $0x3c] sm:$0xe] %vm3211_vm2, %v3097_v39  ;;  %v7190_v18 = vpop.eup %7189  ;;  %7215 = vrcp.f32 %v9236_v13  ;;  %v2902_v10 = vmul.f32 %v7188_v37, %v9152_v11  ;;  %v3101_v40 = vrot.slane %v3099_v43, 4  ;;  %v6386_v31 = vpack.c.bf16 %v2899_v50, %v2899_v50 }
 0x327   : > { %v7192_v14 = vpop.eup %7191  ;;  %7217 = vrcp.f32 %v9239_v59  ;;  %v3100_v38 = vsel %vm9203_vm4, %v3098_v55, %v3099_v43  ;;  %v2903_v57 = vmul.f32 %v7190_v18, %v9158_v6  ;;  %v6387_v26 = vpack.c.bf16 %v2900_v49, %v2900_v49 }
 0x328   : > { %v7194_v24 = vpop.eup %7193  ;;  %7219 = vrcp.f32 %v9242_v12  ;;  %3223 = vst.msk [vmem:[#allocation2 + $0x40] sm:$0xf] %vm2921_vm12, %v3100_v38  ;;  %v2904_v32 = vmul.f32 %v7192_v14, %v9164_v42  ;;  %v6388_v13 = vpack.c.bf16 %v2901_v21, %v2901_v21  ;;  %v6389_v11 = vpack.c.bf16 %v2902_v10, %v2902_v10  ;;  %v3359_v58 = vld [vmem:[#allocation2 + $0x24] sm:$0xf] }
 0x329   : > { %3224 = vst.msk [vmem:[#allocation2 + $0x44] sm:$0x1] %vm3214_vm3, %v3101_v40  ;;  %v7196_v60 = vpop.eup %7195  ;;  %v2905_v59 = vmul.f32 %v7194_v24, %v9170_v2  ;;  %v6390_v52 = vpack.c.bf16 %v2903_v57, %v2903_v57  ;;  %v3102_v27 = vrot.slane %v6384_v56, 7  ;;  %v3104_v54 = vrot.slane %v6385_v44, 7 }
 0x32a   : > { %v7198_v61 = vpop.eup %7197  ;;  %v2906_v6 = vmul.f32 %v7196_v60, %v9176_v63  ;;  %v6391_v46 = vpack.c.bf16 %v2904_v32, %v2904_v32  ;;  %v9286_v12 = vrot.slane %v6380_v30, 7  ;;  %v9288_v3 = vrot.slane %v6381_v28, 7 }
 0x32b   : > { %v7200_v42 = vpop.eup %7199  ;;  %v2907_v22 = vmul.f32 %v7198_v61, %v9181_v41  ;;  %v9291_v34 = vld [vmem:[#allocation2 + $0x28] sm:$0xf]  ;;  %v6392_v0 = vpack.c.bf16 %v2905_v59, %v2905_v59  ;;  %v3103_v25 = vrot.slane %v3102_v27, 4  ;;  %3225 = vst.msk [vmem:[#allocation2 + $0x48] sm:$0xe] %vm3211_vm2, %v3102_v27  ;;  %v3106_v2 = vrot.slane %v3104_v54, 4 }
 0x32c   : > { %v7202_v7 = vpop.eup %7201  ;;  %v2908_v36 = vmul.f32 %v7200_v42, %v9186_v9  ;;  %v6177_v63 = vcombine.low %v3359_v58, %v9291_v34  ;;  %v6393_v1 = vpack.c.bf16 %v2906_v6, %v2906_v6  ;;  %v9296_v30 = vrot.slane %v6386_v31, 7  ;;  %3219 = vst.msk [vmem:[#allocation2 + $0x30] sm:$0xe] %vm3211_vm2, %v9286_v12 }
 0x32d   : > { %v7204_v28 = vpop.eup %7203  ;;  %v2909_v41 = vmul.f32 %v7202_v7, %v9190_v4  ;;  %v6394_v20 = vpack.c.bf16 %v2907_v22, %v2907_v22  ;;  %v3105_v45 = vsel %vm9203_vm4, %v3103_v25, %v3104_v54  ;;  %v9303_v23 = vrot.slane %v6387_v26, 7  ;;  %3227 = vst.msk [vmem:[#allocation2 + $0x50] sm:$0x1] %vm3214_vm3, %v3106_v2  ;;  %v3456_v17 = vld [vmem:[#allocation2 + $0x3c] sm:$0xf] }
 0x32e   : > { %v7206_v9 = vpop.eup %7205  ;;  %v2910_v47 = vmul.f32 %v7204_v28, %v9194_v33  ;;  %4065 = vrot.lane.b32.xlu1 %v6177_v63, %s7334_s6  ;;  %v6395_v39 = vpack.c.bf16 %v2908_v36, %v2908_v36  ;;  %3226 = vst.msk [vmem:[#allocation2 + $0x4c] sm:$0xf] %vm2921_vm12, %v3105_v45  ;;  %v9309_v50 = vrot.slane %v6388_v13, 7  ;;  %v9311_v19 = vrot.slane %v6389_v11, 7 }
 0x32f   : > { %3228 = vst.msk [vmem:[#allocation2 + $0x54] sm:$0xe] %vm3211_vm2, %v9296_v30  ;;  %v7208_v4 = vpop.eup %7207  ;;  %v9315_v43 = vld [vmem:[#allocation2 + $0x40] sm:$0xf]  ;;  %v2911_v49 = vmul.f32 %v7206_v9, %v9198_v8  ;;  %v6396_v56 = vpack.c.bf16 %v2909_v41, %v2909_v41  ;;  %v9318_v33 = vrot.slane %v6390_v52, 7  ;;  %v9320_v37 = vrot.slane %v6391_v46, 7 }
 0x330   : > { %v7210_v55 = vpop.eup %7209  ;;  %v6257_v21 = vcombine.low %v3456_v17, %v9315_v43  ;;  %v2912_v44 = vmul.f32 %v7208_v4, %v9208_v15  ;;  %v6397_v18 = vpack.c.bf16 %v2910_v47, %v2910_v47  ;;  %v9324_v10 = vrot.slane %v6392_v0, 7  ;;  %3231 = vst.msk [vmem:[#allocation2 + $0x60] sm:$0xe] %vm3211_vm2, %v9309_v50 }
 0x331   : > { %v7212_v40 = vpop.eup %7211  ;;  %v2913_v31 = vmul.f32 %v7210_v55, %v9213_v48  ;;  %v6398_v8 = vpack.c.bf16 %v2911_v49, %v2911_v49  ;;  %v9329_v14 = vrot.slane %v6393_v1, 7  ;;  %v9331_v38 = vrot.slane %v6394_v20, 7  ;;  %3234 = vst.msk [vmem:[#allocation2 + $0x6c] sm:$0xe] %vm3211_vm2, %v9318_v33 }
 0x332   : > { %v7214_v57 = vpop.eup %7213  ;;  %4497 = vrot.lane.b32.xlu0 %v6257_v21, %s7333_s5  ;;  %v2914_v15 = vmul.f32 %v7212_v40, %v9100_v5  ;;  %v6399_v26 = vpack.c.bf16 %v2912_v44, %v2912_v44  ;;  %v9337_v24 = vrot.slane %v6395_v39, 7  ;;  %v9339_v32 = vrot.slane %v6396_v56, 7  ;;  %3237 = vst.msk [vmem:[#allocation2 + $0x78] sm:$0xe] %vm3211_vm2, %v9324_v10  ;;  %v3458_v46 = vld [vmem:[#allocation2 + $0x48] sm:$0xf] }
 0x333   : > { %v7216_v48 = vpop.eup %7215  ;;  %v2915_v13 = vmul.f32 %v7214_v57, %v9220_v35  ;;  %v6400_v11 = vpack.c.bf16 %v2913_v31, %v2913_v31  ;;  %v9344_v60 = vrot.slane %v6397_v18, 7  ;;  %v9346_v59 = vrot.slane %v6398_v8, 7  ;;  %3240 = vst.msk [vmem:[#allocation2 + $0x84] sm:$0xe] %vm3211_vm2, %v9331_v38 }
 0x334   : > { %v7218_v5 = vpop.eup %7217  ;;  %v2916_v52 = vmul.f32 %v7216_v48, %v9106_v51  ;;  %v6401_v27 = vpack.c.bf16 %v2914_v15, %v2914_v15  ;;  %v9351_v54 = vrot.slane %v6399_v26, 7  ;;  %v3093_v61 = vrot.slane %v9286_v12, 4  ;;  %3243 = vst.msk [vmem:[#allocation2 + $0x90] sm:$0xe] %vm3211_vm2, %v9339_v32  ;;  %v10293_v51 = vld [vmem:[#allocation6_spill] sm:$0xff] }
 0x335   : > { %v7220_v35 = vpop.eup %7219  ;;  %v2919_v6 = vmul.f32 %v7218_v5, %v9227_v62  ;;  %v6402_v58 = vpack.c.bf16 %v2915_v13, %v2915_v13  ;;  %v9357_v42 = vld [vmem:[#allocation2 + $0x4c] sm:$0xf]  ;;  %v9359_v22 = vrot.slane %v6400_v11, 7  ;;  %v3083_v0 = vrot.slane %v9248_v53, 4  ;;  %3246 = vst.msk [vmem:[#allocation2 + $0x9c] sm:$0xe] %vm3211_vm2, %v9346_v59 }
 0x336   : > { %v2920_v25 = vmul.f32 %v7220_v35, %v10293_v51  ;;  %v6403_v12 = vpack.c.bf16 %v2916_v52, %v2916_v52  ;;  %v6258_v2 = vcombine.low %v3458_v46, %v9357_v42  ;;  %v3144_v7 = vrot.slane %v6401_v27, 7  ;;  %v3363_v5 = vld [vmem:[#allocation2 + $0x3c] sm:$0xf]  ;;  %v9452_v27 = vld [vmem:[#allocation2 + $0x4c] sm:$0xf] }
 0x337   : > { %v6406_v36 = vpack.c.bf16 %v2919_v6, %v2919_v6  ;;  %v3147_v63 = vrot.slane %v6402_v58, 7  ;;  %v3095_v62 = vsel %vm9203_vm4, %v3093_v61, %v9288_v3  ;;  %v3086_v1 = vrot.slane %v9253_v29, 4  ;;  %3249 = vst.msk [vmem:[#allocation2 + $0xa8] sm:$0xe] %vm3211_vm2, %v9359_v22  ;;  %v3365_v35 = vld [vmem:[#allocation2 + $0x48] sm:$0xf] }
 0x338   : > { %v6407_v53 = vpack.c.bf16 %v2920_v25, %v2920_v25  ;;  %4499 = vrot.lane.b32.xlu0 %v6258_v2, %s7333_s5  ;;  %v3149_v28 = vrot.slane %v6403_v12, 7  ;;  %3220 = vst.msk [vmem:[#allocation2 + $0x34] sm:$0xf] %vm2921_vm12, %v3095_v62  ;;  %v3096_v41 = vrot.slane %v9288_v3, 4  ;;  %v3108_v20 = vrot.slane %v9296_v30, 4 }
 0x339   : > { %v3157_v45 = vrot.slane %v6406_v36, 7  ;;  %v3111_v9 = vrot.slane %v9303_v23, 4  ;;  %v3113_v47 = vrot.slane %v9309_v50, 4  ;;  %v3116_v39 = vrot.slane %v9311_v19, 4  ;;  %3252 = vst.msk [vmem:[#allocation2 + $0xb4] sm:$0xe] %vm3211_vm2, %v3147_v63 }
 0x33a   : > { %3215 = vst.msk [vmem:[#allocation2 + $0x20] sm:$0x1] %vm3214_vm3, %v3086_v1  ;;  %v3159_v4 = vrot.slane %v6407_v53, 7  ;;  %v3118_v17 = vrot.slane %v9318_v33, 4  ;;  %v3121_v49 = vrot.slane %v9320_v37, 4  ;;  %v3123_v3 = vrot.slane %v9324_v10, 4 }
 0x33b   : > { %3221 = vst.msk [vmem:[#allocation2 + $0x38] sm:$0x1] %vm3214_vm3, %v3096_v41  ;;  %v3126_v30 = vrot.slane %v9329_v14, 4  ;;  %v3128_v56 = vrot.slane %v9331_v38, 4  ;;  %v3131_v50 = vrot.slane %v9337_v24, 4  ;;  %v3133_v55 = vrot.slane %v9339_v32, 4 }
 0x33c   : > { %3258 = vst.msk [vmem:[#allocation2 + $0xcc] sm:$0xe] %vm3211_vm2, %v3157_v45  ;;  %v3136_v33 = vrot.slane %v9344_v60, 4  ;;  %v3138_v21 = vrot.slane %v9346_v59, 4  ;;  %v3141_v44 = vrot.slane %v9351_v54, 4  ;;  %v3143_v18 = vrot.slane %v9359_v22, 4 }
 0x33d   : > { %3230 = vst.msk [vmem:[#allocation2 + $0x5c] sm:$0x1] %vm3214_vm3, %v3111_v9  ;;  %3233 = vst.msk [vmem:[#allocation2 + $0x68] sm:$0x1] %vm3214_vm3, %v3116_v39  ;;  %v3146_v10 = vrot.slane %v3144_v7, 4  ;;  %v3148_v40 = vrot.slane %v3147_v63, 4  ;;  %v3110_v57 = vsel %vm9203_vm4, %v3108_v20, %v9303_v23  ;;  %v3085_v15 = vsel %vm9203_vm4, %v3083_v0, %v9253_v29  ;;  %v3777_v63 = vpop.permute.xlu1 %3776 }
 0x33e   : > { %3236 = vst.msk [vmem:[#allocation2 + $0x74] sm:$0x1] %vm3214_vm3, %v3121_v49  ;;  %v3151_v31 = vrot.slane %v3149_v28, 4  ;;  %v3158_v8 = vrot.slane %v3157_v45, 4  ;;  %3239 = vst.msk [vmem:[#allocation2 + $0x80] sm:$0x1] %vm3214_vm3, %v3126_v30  ;;  %v3115_v26 = vsel %vm9203_vm4, %v3113_v47, %v9311_v19  ;;  %v3120_v23 = vsel %vm9203_vm4, %v3118_v17, %v9320_v37 }
 0x33f   : > { %3242 = vst.msk [vmem:[#allocation2 + $0x8c] sm:$0x1] %vm3214_vm3, %v3131_v50  ;;  %v3161_v38 = vrot.slane %v3159_v4, 4  ;;  %3245 = vst.msk [vmem:[#allocation2 + $0x98] sm:$0x1] %vm3214_vm3, %v3136_v33  ;;  %v3125_v29 = vsel %vm9203_vm4, %v3123_v3, %v9329_v14  ;;  %v3130_v19 = vsel %vm9203_vm4, %v3128_v56, %v9337_v24  ;;  %v3135_v13 = vsel %vm9203_vm4, %v3133_v55, %v9344_v60  ;;  %v6972_v47 = vld [vmem:[%s10284_s2 + $0x78] sm:$0xff]  }
 0x340   : > { %3248 = vst.msk [vmem:[#allocation2 + $0xa4] sm:$0x1] %vm3214_vm3, %v3141_v44  ;;  %v3361_v32 = vld [vmem:[#allocation2 + $0x30] sm:$0xf]  ;;  %v9410_v48 = vld [vmem:[#allocation2 + $0x34] sm:$0xf]  ;;  %v3140_v14 = vsel %vm9203_vm4, %v3138_v21, %v9351_v54  ;;  %v3145_v24 = vsel %vm9203_vm4, %v3143_v18, %v3144_v7  ;;  %v3150_v11 = vsel %vm9203_vm4, %v3148_v40, %v3149_v28  ;;  %v3160_v60 = vsel %vm9203_vm4, %v3158_v8, %v3159_v4 }
 0x341   : > { %3229 = vst.msk [vmem:[#allocation2 + $0x58] sm:$0xf] %vm2921_vm12, %v3110_v57  ;;  %3213 = vst.msk [vmem:[#allocation2 + $0x1c] sm:$0xf] %vm2921_vm12, %v3085_v15  ;;  %v6178_v37 = vcombine.low %v3361_v32, %v9410_v48  ;;  %v9444_v59 = vld [vmem:[#allocation2 + $0x40] sm:$0xf]  ;;  %v6180_v58 = vcombine.low %v3365_v35, %v9452_v27  ;;  %v3954_v4 = vpop.permute.xlu1 %3953  ;;  %6632 = vmatprep.subr.bf16.mxu1 %v6972_v47  ;;  %6428 = vmatprep.subr.bf16.mxu0 %v6972_v47 }
 0x342   : > { %3251 = vst.msk [vmem:[#allocation2 + $0xb0] sm:$0x1] %vm3214_vm3, %v3146_v10  ;;  %3254 = vst.msk [vmem:[#allocation2 + $0xbc] sm:$0x1] %vm3214_vm3, %v3151_v31  ;;  %v6179_v52 = vcombine.low %v3363_v5, %v9444_v59  ;;  %v3460_v54 = vld [vmem:[#allocation2 + $0x54] sm:$0xf] }
 0x343   : > { %3232 = vst.msk [vmem:[#allocation2 + $0x64] sm:$0xf] %vm2921_vm12, %v3115_v26  ;;  %3235 = vst.msk [vmem:[#allocation2 + $0x70] sm:$0xf] %vm2921_vm12, %v3120_v23  ;;  %4067 = vrot.lane.b32.xlu1 %v6178_v37, %s7334_s6  ;;  %v3263_v22 = vld [vmem:[#allocation2 + $0xc] sm:$0xf] }
 0x344   : > { %3260 = vst.msk [vmem:[#allocation2 + $0xd4] sm:$0x1] %vm3214_vm3, %v3161_v38  ;;  %v3462_v0 = vld [vmem:[#allocation2 + $0x60] sm:$0xf]  ;;  %v3367_v25 = vld [vmem:[#allocation2 + $0x54] sm:$0xf] }
 0x345   : > { %3238 = vst.msk [vmem:[#allocation2 + $0x7c] sm:$0xf] %vm2921_vm12, %v3125_v29  ;;  %3241 = vst.msk [vmem:[#allocation2 + $0x88] sm:$0xf] %vm2921_vm12, %v3130_v19  ;;  %v7221_v7 = vld [vmem:[#allocation2 + $0x10] sm:$0xf] }
 0x346   : > { %3244 = vst.msk [vmem:[#allocation2 + $0x94] sm:$0xf] %vm2921_vm12, %v3135_v13  ;;  %3247 = vst.msk [vmem:[#allocation2 + $0xa0] sm:$0xf] %vm2921_vm12, %v3140_v14  ;;  %v6097_v36 = vcombine.low %v3263_v22, %v7221_v7  ;;  %v3464_v1 = vld [vmem:[#allocation2 + $0x6c] sm:$0xf] }
 0x347   : > { %3250 = vst.msk [vmem:[#allocation2 + $0xac] sm:$0xf] %vm2921_vm12, %v3145_v24  ;;  %3253 = vst.msk [vmem:[#allocation2 + $0xb8] sm:$0xf] %vm2921_vm12, %v3150_v11  ;;  %4069 = vrot.lane.b32.xlu1 %v6179_v52, %s7334_s6  ;;  %v3369_v28 = vld [vmem:[#allocation2 + $0x60] sm:$0xf] }
 0x348   : > { %3259 = vst.msk [vmem:[#allocation2 + $0xd0] sm:$0xf] %vm2921_vm12, %v3160_v60  ;;  %v9454_v16 = vld [vmem:[#allocation2 + $0x58] sm:$0xf]  ;;  %v4852_v45 = vsel %vm2128_vm10, %v6097_v36, %v3777_v63  ;;  %v3371_v49 = vld [vmem:[#allocation2 + $0x6c] sm:$0xf] }
 0x349   : > { %v6259_v61 = vcombine.low %v3460_v54, %v9454_v16  ;;  %v9462_v46 = vld [vmem:[#allocation2 + $0x58] sm:$0xf]  ;;  %v9487_v3 = vsel %vm4895_vm5, %v4852_v45, %v3954_v4  ;;  %v9496_v55 = vld [vmem:[#allocation2 + $0x1c] sm:$0xf]  ;;  %v3468_v33 = vld [vmem:[#allocation2 + $0x84] sm:$0xf] }
 0x34a   : > { %v9458_v6 = vld [vmem:[#allocation2 + $0x64] sm:$0xf]  ;;  %v9466_v12 = vld [vmem:[#allocation2 + $0x70] sm:$0xf]  ;;  %v6181_v2 = vcombine.low %v3367_v25, %v9462_v46  ;;  %v3466_v39 = vld [vmem:[#allocation2 + $0x78] sm:$0xf] }
 0x34b   : > { %4501 = vrot.lane.b32.xlu0 %v6259_v61, %s7333_s5  ;;  %4071 = vrot.lane.b32.xlu1 %v6180_v58, %s7334_s6  ;;  %v6260_v51 = vcombine.low %v3462_v0, %v9458_v6  ;;  %v9470_v62 = vld [vmem:[#allocation2 + $0x64] sm:$0xf]  ;;  %v6261_v53 = vcombine.low %v3464_v1, %v9466_v12  ;;  %v9479_v9 = vld [vmem:[#allocation2 + $0x70] sm:$0xf]  ;;  %v6973_v50 = vld [vmem:[%s10284_s2 + $0x38] sm:$0xff]  }
 0x34c   : > { %v9474_v41 = vld [vmem:[#allocation2 + $0x7c] sm:$0xf]  ;;  %v6182_v20 = vcombine.low %v3369_v28, %v9470_v62  ;;  %v9489_v30 = vld [vmem:[#allocation2 + $0x88] sm:$0xf]  ;;  %v6183_v56 = vcombine.low %v3371_v49, %v9479_v9  ;;  %6640 = vmatpush3.bf16.msra.mxu1 %v6973_v50  ;;  %v3357_v44 = vld [vmem:[#allocation2 + $0x18] sm:$0xf]  ;;  %6429 = vmatpush3.bf16.msra.mxu0 %v6973_v50 }
 0x34d   : > { %v6262_v17 = vcombine.low %v3466_v39, %v9474_v41  ;;  %v6263_v21 = vcombine.low %v3468_v33, %v9489_v30  ;;  %v9500_v18 = vld [vmem:[#allocation2 + $0x34] sm:$0xf]  ;;  %v6176_v10 = vcombine.low %v3357_v44, %v9496_v55  ;;  %v9507_v31 = vld [vmem:[#allocation2 + $0x7c] sm:$0xf]  ;;  %v3454_v8 = vld [vmem:[#allocation2 + $0x30] sm:$0xf] }
 0x34e   : > { %v6978_v40 = vld [vmem:[%s10284_s2 + $0x70] sm:$0xff]   ;;  %v6256_v38 = vcombine.low %v3454_v8, %v9500_v18  ;;  %v3373_v57 = vld [vmem:[#allocation2 + $0x78] sm:$0xf]  ;;  %v9515_v32 = vld [vmem:[#allocation2 + $0x88] sm:$0xf] }
 0x34f   : > { %4503 = vrot.lane.b32.xlu0 %v6260_v51, %s7333_s5  ;;  %4073 = vrot.lane.b32.xlu1 %v6181_v2, %s7334_s6  ;;  %v9511_v15 = vld [vmem:[#allocation2 + $0x94] sm:$0xf]  ;;  %v6184_v26 = vcombine.low %v3373_v57, %v9507_v31  ;;  %v3470_v23 = vld [vmem:[#allocation2 + $0x90] sm:$0xf]  ;;  %v3375_v13 = vld [vmem:[#allocation2 + $0x84] sm:$0xf] }
 0x350   : > { %6633 = vmatprep.subr.bf16.mxu1 %v6978_v40  ;;  %6430 = vmatprep.subr.bf16.mxu0 %v6978_v40  ;;  %v6979_v29 = vld [vmem:[%s10284_s2 + $0x30] sm:$0xff]   ;;  %v6264_v19 = vcombine.low %v3470_v23, %v9511_v15  ;;  %v9522_v37 = vld [vmem:[#allocation2 + $0xa0] sm:$0xf]  ;;  %v6185_v14 = vcombine.low %v3375_v13, %v9515_v32  ;;  %v6984_v24 = vld [vmem:[%s10284_s2 + $0x68] sm:$0xff]  }
 0x351   : > { %6641 = vmatpush3.bf16.msra.mxu1 %v6979_v29  ;;  %6431 = vmatpush3.bf16.msra.mxu0 %v6979_v29  ;;  %v9529_v11 = vld [vmem:[#allocation2 + $0x94] sm:$0xf]  ;;  %v3472_v60 = vld [vmem:[#allocation2 + $0x9c] sm:$0xf]  ;;  %v6985_v5 = vld [vmem:[%s10284_s2 + $0x28] sm:$0xff]  }
 0x352   : > { %6634 = vmatprep.subr.bf16.mxu1 %v6984_v24  ;;  %v6265_v52 = vcombine.low %v3472_v60, %v9522_v37  ;;  %v3377_v54 = vld [vmem:[#allocation2 + $0x90] sm:$0xf]  ;;  %v6990_v61 = vld [vmem:[%s10284_s2 + $0x60] sm:$0xff]   ;;  %6432 = vmatprep.subr.bf16.mxu0 %v6984_v24  ;;  %v9539_v35 = vld [vmem:[#allocation2 + $0xac] sm:$0xf] }
 0x353   : > { %4505 = vrot.lane.b32.xlu0 %v6261_v53, %s7333_s5  ;;  %4075 = vrot.lane.b32.xlu1 %v6182_v20, %s7334_s6  ;;  %v6186_v58 = vcombine.low %v3377_v54, %v9529_v11  ;;  %v9543_v22 = vld [vmem:[#allocation2 + $0xa0] sm:$0xf]  ;;  %v3474_v51 = vld [vmem:[#allocation2 + $0xa8] sm:$0xf]  ;;  %v3379_v2 = vld [vmem:[#allocation2 + $0x9c] sm:$0xf] }
 0x354   : > { %v6991_v0 = vld [vmem:[%s10284_s2 + $0x20] sm:$0xff]   ;;  %v6266_v25 = vcombine.low %v3474_v51, %v9539_v35  ;;  %v6996_v7 = vld [vmem:[%s10284_s2 + $0x58] sm:$0xff]   ;;  %v6187_v63 = vcombine.low %v3379_v2, %v9543_v22  ;;  %v9557_v1 = vld [vmem:[#allocation2 + $0xac] sm:$0xf] }
 0x355   : > { %6642 = vmatpush3.bf16.msra.mxu1 %v6985_v5  ;;  %6433 = vmatpush3.bf16.msra.mxu0 %v6985_v5  ;;  %v9553_v36 = vld [vmem:[#allocation2 + $0xb8] sm:$0xf]  ;;  %v3476_v28 = vld [vmem:[#allocation2 + $0xb4] sm:$0xf]  ;;  %v3381_v47 = vld [vmem:[#allocation2 + $0xa8] sm:$0xf] }
 0x356   : > { %6635 = vmatprep.subr.bf16.mxu1 %v6990_v61  ;;  %6434 = vmatprep.subr.bf16.mxu0 %v6990_v61  ;;  %v6997_v53 = vld [vmem:[%s10284_s2 + $0x18] sm:$0xff]   ;;  %v7002_v20 = vld [vmem:[%s10284_s2 + $0x50] sm:$0xff]   ;;  %v6267_v45 = vcombine.low %v3476_v28, %v9553_v36  ;;  %v9567_v39 = vld [vmem:[#allocation2 + $0xc4] sm:$0xf]  ;;  %v6188_v4 = vcombine.low %v3381_v47, %v9557_v1 }
 0x357   : > { %4507 = vrot.lane.b32.xlu0 %v6262_v17, %s7333_s5  ;;  %4077 = vrot.lane.b32.xlu1 %v6183_v56, %s7334_s6  ;;  %v7003_v17 = vld [vmem:[%s10284_s2 + $0x10] sm:$0xff]   ;;  %v3478_v49 = vld [vmem:[#allocation2 + $0xc0] sm:$0xf]  ;;  %v9574_v56 = vld [vmem:[#allocation2 + $0xb8] sm:$0xf] }
 0x358   : > { %v3423_v50 = vld [vmem:[#allocation2 + $0x24] sm:$0xc]  ;;  %v3266_v33 = vld [vmem:[#allocation2 + $0x1c] sm:$0xf]  ;;  %v6268_v44 = vcombine.low %v3478_v49, %v9567_v39  ;;  %v9581_v40 = vld [vmem:[#allocation2 + $0xd0] sm:$0xf] }
 0x359   : > { %6643 = vmatpush3.bf16.msra.mxu1 %v6991_v0  ;;  %6435 = vmatpush3.bf16.msra.mxu0 %v6991_v0  ;;  %v3297_v57 = vld [vmem:[#allocation2 + $0x18] sm:$0xe]  ;;  %v6887_v23 = vld [vmem:[#allocation2 + $0x2c] ss:$0 sps:$4 sm:$0x33]  }
 0x35a   : > { %6636 = vmatprep.subr.bf16.mxu1 %v6996_v7  ;;  %6436 = vmatprep.subr.bf16.mxu0 %v6996_v7  ;;  %v3385_v29 = vld [vmem:[#allocation2 + $0xc0] sm:$0xf]  ;;  %v6116_v13 = vcombine.low %v3297_v57, %v3266_v33  ;;  %v3488_v24 = vld [vmem:[#allocation2 + $0x3c] sm:$0xe]  ;;  %v3329_v61 = vld [vmem:[#allocation2 + $0x18] sm:$0xc] }
 0x35b   : > { %4509 = vrot.lane.b32.xlu0 %v6263_v21, %s7333_s5  ;;  %4063 = vrot.lane.b32.xlu1 %v6176_v10, %s7334_s6  ;;  %v7008_v21 = vld [vmem:[%s10284_s2 + $0x48] sm:$0xff]   ;;  %v3383_v10 = vld [vmem:[#allocation2 + $0xb4] sm:$0xf]  ;;  %v6891_v60 = vld [vmem:[#allocation2 + $0x20] ss:$0 sps:$4 sm:$0x11]   ;;  %v6274_v54 = vcombine.low %v3488_v24, %v9315_v43  ;;  %v6148_v0 = vcombine.low %v3329_v61, %v3266_v33 }
 0x35c   : > { %v6189_v8 = vcombine.low %v3383_v10, %v9574_v56  ;;  %v3268_v51 = vld [vmem:[#allocation2 + $0x28] sm:$0xf]  ;;  %v6889_v2 = vld [vmem:[#allocation2 + $0x44] ss:$0 sps:$4 sm:$0x11]  }
 0x35d   : > { %6644 = vmatpush3.bf16.msra.mxu1 %v6997_v53  ;;  %6437 = vmatpush3.bf16.msra.mxu0 %v6997_v53  ;;  %v3425_v7 = vld [vmem:[#allocation2 + $0x30] sm:$0xc]  ;;  %v6894_v53 = vld [vmem:[#allocation2 + $0x20] ss:$0 sps:$4 sm:$0x33]   ;;  %v4627_v33 = vrot.slane %v6889_v2, 1 }
 0x35e   : > { %6637 = vmatprep.subr.bf16.mxu1 %v7002_v20  ;;  %6438 = vmatprep.subr.bf16.mxu0 %v7002_v20  ;;  %v4626_v20 = vrot.slane %v6274_v54, 1  ;;  %v6228_v43 = vcombine.low %v3425_v7, %v9410_v48  ;;  %v3490_v10 = vld [vmem:[#allocation2 + $0x48] sm:$0xe]  ;;  %v7014_v48 = vld [vmem:[%s10284_s2] sm:$0xff]  }
 0x35f   : > { %4495 = vrot.lane.b32.xlu0 %v6256_v38, %s7333_s5  ;;  %4079 = vrot.lane.b32.xlu1 %v6184_v26, %s7334_s6  ;;  %v6226_v38 = vcombine.low %v3423_v50, %v9291_v34  ;;  %v7009_v26 = vld [vmem:[%s10284_s2 + $0x8] sm:$0xff]   ;;  %v7013_v50 = vld [vmem:[%s10284_s2 + $0x40] sm:$0xff]   ;;  %v6276_v57 = vcombine.low %v3490_v10, %v9357_v42  ;;  %v6907_v10 = vld [vmem:[#allocation2 + $0x38] ss:$0 sps:$4 sm:$0x33]  }
 0x360   : > { %v6898_v7 = vld [vmem:[#allocation2 + $0x44] ss:$0 sps:$4 sm:$0x33]  }
 0x361   : > { %6645 = vmatpush3.bf16.msra.mxu1 %v7003_v17  ;;  %6439 = vmatpush3.bf16.msra.mxu0 %v7003_v17  ;;  %v4338_v5 = vrot.slane %v6226_v38, 2  ;;  %v3909_v17 = vrot.slane %v6148_v0, 2  ;;  %v4341_v38 = vrot.slane %v6228_v43, 2  ;;  %v4629_v42 = vrot.slane %v6276_v57, 1 }
 0x362   : > { %6638 = vmatprep.subr.bf16.mxu1 %v7008_v21  ;;  %6440 = vmatprep.subr.bf16.mxu0 %v7008_v21  ;;  %v6897_v21 = vld [vmem:[#allocation2 + $0x2c] ss:$0 sps:$4 sm:$0x11]  }
 0x363   : > { %4511 = vrot.lane.b32.xlu0 %v6264_v19, %s7333_s5  ;;  %4081 = vrot.lane.b32.xlu1 %v6185_v14, %s7334_s6  ;;  %v9589_v19 = vld [vmem:[#allocation2 + $0xc4] sm:$0xf]  ;;  %v3480_v14 = vld [vmem:[#allocation2 + $0xcc] sm:$0xf] }
 0x364   : > { %v6269_v34 = vcombine.low %v3480_v14, %v9581_v40 }
 0x365   : > { %6646 = vmatpush3.bf16.msra.mxu1 %v7009_v26  ;;  %6441 = vmatpush3.bf16.msra.mxu0 %v7009_v26  ;;  %v3331_v26 = vld [vmem:[#allocation2 + $0x24] sm:$0xc] }
 0x366   : > { %6639 = vmatprep.subr.bf16.mxu1 %v7013_v50  ;;  %6442 = vmatprep.subr.bf16.mxu0 %v7013_v50  ;;  %v6150_v24 = vcombine.low %v3331_v26, %v3268_v51  ;;  %v4345_v50 = vrot.slane %v6898_v7, 2  ;;  %v6915_v7 = vld [vmem:[#allocation2 + $0x44] ss:$0 sps:$4 sm:$0x33]  }
 0x367   : > { %4513 = vrot.lane.b32.xlu0 %v6265_v52, %s7333_s5  ;;  %4083 = vrot.lane.b32.xlu1 %v6186_v58, %s7334_s6  ;;  %v6190_v52 = vcombine.low %v3385_v29, %v9589_v19  ;;  %v3732_v58 = vrot.slane %v6116_v13, 1  ;;  %v6895_v13 = vld [vmem:[#allocation2 + $0x50] ss:$0 sps:$4 sm:$0x11]  }
 0x368   : > { %v4630_v2 = vrot.slane %v6895_v13, 1  ;;  %v6905_v13 = vld [vmem:[#allocation2 + $0x50] ss:$0 sps:$4 sm:$0x33]  }
 0x369   : > { %6647 = vmatpush3.bf16.msra.mxu1 %v7014_v48  ;;  %6443 = vmatpush3.bf16.msra.mxu0 %v7014_v48 }
 0x36b   : > { %4515 = vrot.lane.b32.xlu0 %v6266_v25, %s7333_s5  ;;  %4085 = vrot.lane.b32.xlu1 %v6187_v63, %s7334_s6  ;;  %v4339_v25 = vrot.slane %v6887_v23, 2  ;;  %v3733_v63 = vrot.slane %v6891_v60, 1  ;;  %v3270_v60 = vld [vmem:[#allocation2 + $0x34] sm:$0xf] }
 0x36d   : > { %v4340_v28 = vsel %vm3902_vm14, %v4338_v5, %v4339_v25  ;;  %v3734_v47 = vsel %vm792_vm0, %v3732_v58, %v3733_v63  ;;  %v3736_v5 = vrot.slane %v6897_v21, 1  ;;  %v3301_v58 = vld [vmem:[#allocation2 + $0x30] sm:$0xe]  ;;  %v3912_v25 = vrot.slane %v6150_v24, 2  ;;  %v3492_v63 = vld [vmem:[#allocation2 + $0x54] sm:$0xe] }
 0x36e   : > { %v3494_v24 = vld [vmem:[#allocation2 + $0x60] sm:$0xe] }
 0x36f   : > { %4517 = vrot.lane.b32.xlu0 %v6267_v45, %s7333_s5  ;;  %4087 = vrot.lane.b32.xlu1 %v6188_v4, %s7334_s6  ;;  %v3299_v45 = vld [vmem:[#allocation2 + $0x24] sm:$0xe]  ;;  %v6892_v4 = vld [vmem:[#allocation2 + $0x38] ss:$0 sps:$4 sm:$0x33]  }
 0x370   : > { %v6118_v49 = vcombine.low %v3299_v45, %v3268_v51  ;;  %v4342_v23 = vrot.slane %v6892_v4, 2  ;;  %v6120_v51 = vcombine.low %v3301_v58, %v3270_v60  ;;  %v6278_v45 = vcombine.low %v3492_v63, %v9454_v16  ;;  %v6901_v4 = vld [vmem:[#allocation2 + $0x5c] ss:$0 sps:$4 sm:$0x11]  }
 0x372   : > { %v3735_v14 = vrot.slane %v6118_v49, 1  ;;  %v4343_v54 = vsel %vm3902_vm14, %v4341_v38, %v4342_v23  ;;  %v3303_v38 = vld [vmem:[#allocation2 + $0x3c] sm:$0xe] }
 0x373   : > { %4519 = vrot.lane.b32.xlu0 %v6268_v44, %s7333_s5  ;;  %4089 = vrot.lane.b32.xlu1 %v6189_v8, %s7334_s6  ;;  %v3910_v44 = vrot.slane %v6894_v53, 2  ;;  %v4628_v8 = vsel %vm792_vm0, %v4626_v20, %v4627_v33  ;;  %v4631_v20 = vsel %vm792_vm0, %v4629_v42, %v4630_v2  ;;  %v3272_v33 = vld [vmem:[#allocation2 + $0x40] sm:$0xf]  ;;  %v6909_v42 = vld [vmem:[#allocation2 + $0x68] ss:$0 sps:$4 sm:$0x11]  }
 0x374   : > { %v3737_v0 = vsel %vm792_vm0, %v3735_v14, %v3736_v5  ;;  %v6122_v23 = vcombine.low %v3303_v38, %v3272_v33  ;;  %v3916_v14 = vrot.slane %v6907_v10, 2  ;;  %v6917_v10 = vld [vmem:[#allocation2 + $0x74] ss:$0 sps:$4 sm:$0x11]   ;;  %v9643_v38 = vld [vmem:[#allocation2 + $0x58] sm:$0xf] }
 0x375   : > { %v3911_v29 = vsel %vm3902_vm14, %v3909_v17, %v3910_v44  ;;  %v3738_v17 = vrot.slane %v6120_v51, 1  ;;  %v3429_v44 = vld [vmem:[#allocation2 + $0x48] sm:$0xc]  ;;  %v3274_v51 = vld [vmem:[#allocation2 + $0x4c] sm:$0xf] }
 0x376   : > { %v6232_v16 = vcombine.low %v3429_v44, %v9452_v27  ;;  %v3335_v27 = vld [vmem:[#allocation2 + $0x3c] sm:$0xc] }
 0x377   : > { %4521 = vrot.lane.b32.xlu0 %v6269_v34, %s7333_s5  ;;  %4091 = vrot.lane.b32.xlu1 %v6190_v52, %s7334_s6  ;;  %v3427_v34 = vld [vmem:[#allocation2 + $0x3c] sm:$0xc]  ;;  %v6900_v52 = vld [vmem:[#allocation2 + $0x2c] ss:$0 sps:$4 sm:$0x33]   ;;  %v6154_v58 = vcombine.low %v3335_v27, %v3272_v33 }
 0x378   : > { %v6230_v61 = vcombine.low %v3427_v34, %v9444_v59  ;;  %v3913_v53 = vrot.slane %v6900_v52, 2  ;;  %v3333_v59 = vld [vmem:[#allocation2 + $0x30] sm:$0xc]  ;;  %v6911_v34 = vld [vmem:[#allocation2 + $0x44] ss:$0 sps:$4 sm:$0x11]   ;;  %v6280_v52 = vcombine.low %v3494_v24, %v9458_v6 }
 0x379   : > { %v6152_v49 = vcombine.low %v3333_v59, %v3270_v60  ;;  %v4347_v5 = vrot.slane %v6232_v16, 2  ;;  %v3742_v2 = vrot.slane %v6911_v34, 1  ;;  %v4636_v59 = vrot.slane %v6909_v42, 1  ;;  %v6921_v34 = vld [vmem:[#allocation2 + $0x68] ss:$0 sps:$4 sm:$0x33]  }
 0x37a   : > { %v4344_v43 = vrot.slane %v6230_v61, 2  ;;  %v3741_v61 = vrot.slane %v6122_v23, 1  ;;  %v6923_v23 = vld [vmem:[#allocation2 + $0x50] ss:$0 sps:$4 sm:$0x33]  }
 0x37b   : > { %4385 = vrot.lane.b32.xlu0 %v4340_v28, %s7331_s13  ;;  %3778 = vrot.lane.b32.xlu1 %v3734_v47, %s7331_s13  ;;  %v6903_v28 = vld [vmem:[#allocation2 + $0x38] ss:$0 sps:$4 sm:$0x11]   ;;  %v3914_v47 = vsel %vm3902_vm14, %v3912_v25, %v3913_v53  ;;  %v3915_v26 = vrot.slane %v6152_v49, 2  ;;  %v3431_v25 = vld [vmem:[#allocation2 + $0x54] sm:$0xc] }
 0x37c   : > { %v3739_v21 = vrot.slane %v6903_v28, 1  ;;  %v4346_v48 = vsel %vm3902_vm14, %v4344_v43, %v4345_v50  ;;  %v4635_v53 = vrot.slane %v6280_v52, 1  ;;  %v6234_v6 = vcombine.low %v3431_v25, %v9462_v46  ;;  %v3305_v28 = vld [vmem:[#allocation2 + $0x48] sm:$0xe]  ;;  %v3498_v27 = vld [vmem:[#allocation2 + $0x78] sm:$0xe] }
 0x37d   : > { %v3918_v43 = vrot.slane %v6154_v58, 2  ;;  %v6919_v49 = vld [vmem:[#allocation2 + $0x50] ss:$0 sps:$4 sm:$0x11]   ;;  %v3337_v46 = vld [vmem:[#allocation2 + $0x48] sm:$0xc] }
 0x37e   : > { %v3740_v57 = vsel %vm792_vm0, %v3738_v17, %v3739_v21  ;;  %v3919_v17 = vrot.slane %v6915_v7, 2  ;;  %v4637_v50 = vsel %vm792_vm0, %v4635_v53, %v4636_v59  ;;  %v4350_v33 = vrot.slane %v6234_v6, 2  ;;  %v6927_v42 = vld [vmem:[#allocation2 + $0x5c] ss:$0 sps:$4 sm:$0x11]  }
 0x37f   : > { %4673 = vrot.lane.b32.xlu0 %v4628_v8, %s7334_s6  ;;  %3955 = vrot.lane.b32.xlu1 %v3911_v29, %s7333_s5  ;;  %v4632_v8 = vrot.slane %v6278_v45, 1  ;;  %v4633_v29 = vrot.slane %v6901_v4, 1  ;;  %v6124_v45 = vcombine.low %v3305_v28, %v3274_v51  ;;  %v3496_v4 = vld [vmem:[#allocation2 + $0x6c] sm:$0xe]  ;;  %v4639_v52 = vrot.slane %v6917_v10, 1 }
 0x380   : > { %v6282_v21 = vcombine.low %v3496_v4, %v9466_v12  ;;  %v3920_v44 = vsel %vm3902_vm14, %v3918_v43, %v3919_v17  ;;  %v3339_v25 = vld [vmem:[#allocation2 + $0x54] sm:$0xc]  ;;  %v3435_v7 = vld [vmem:[#allocation2 + $0x6c] sm:$0xc]  ;;  %v4354_v53 = vrot.slane %v6921_v34, 2 }
 0x381   : > { %v4634_v60 = vsel %vm792_vm0, %v4632_v8, %v4633_v29  ;;  %v6156_v8 = vcombine.low %v3337_v46, %v3274_v51  ;;  %v6931_v6 = vld [vmem:[#allocation2 + $0x5c] ss:$0 sps:$4 sm:$0x33]   ;;  %v3278_v28 = vld [vmem:[#allocation2 + $0x64] sm:$0xf]  ;;  %v9664_v46 = vpop.permute.xlu0 %4523 }
 0x382   : > { %v3309_v59 = vld [vmem:[#allocation2 + $0x60] sm:$0xe]  ;;  %v6935_v10 = vld [vmem:[#allocation2 + $0x68] ss:$0 sps:$4 sm:$0x11]  }
 0x383   : > { %4387 = vrot.lane.b32.xlu0 %v4343_v54, %s7331_s13  ;;  %3780 = vrot.lane.b32.xlu1 %v3737_v0, %s7331_s13  ;;  %v3917_v54 = vsel %vm3902_vm14, %v3915_v26, %v3916_v14  ;;  %v4348_v0 = vrot.slane %v6905_v13, 2  ;;  %v3433_v26 = vld [vmem:[#allocation2 + $0x60] sm:$0xc]  ;;  %v4638_v13 = vrot.slane %v6282_v21, 1  ;;  %v3307_v14 = vld [vmem:[#allocation2 + $0x54] sm:$0xe]  ;;  %v6128_v17 = vcombine.low %v3309_v59, %v3278_v28 }
 0x384   : > { %v6236_v12 = vcombine.low %v3433_v26, %v9470_v62  ;;  %v6284_v62 = vcombine.low %v3498_v27, %v9474_v41  ;;  %v6238_v41 = vcombine.low %v3435_v7, %v9479_v9  ;;  %v3925_v21 = vrot.slane %v6931_v6, 2  ;;  %v6939_v34 = vld [vmem:[#allocation2 + $0x68] ss:$0 sps:$4 sm:$0x33]   ;;  %v3311_v27 = vld [vmem:[#allocation2 + $0x6c] sm:$0xe] }
 0x385   : > { %v4349_v63 = vsel %vm3902_vm14, %v4347_v5, %v4348_v0  ;;  %v6126_v5 = vcombine.low %v3307_v14, %v9643_v38  ;;  %v6925_v0 = vld [vmem:[#allocation2 + $0x80] ss:$0 sps:$4 sm:$0x11]   ;;  %v3750_v26 = vrot.slane %v6128_v17, 1  ;;  %v3751_v14 = vrot.slane %v6935_v10, 1 }
 0x386   : > { %v4353_v58 = vrot.slane %v6236_v12, 2  ;;  %v3280_v12 = vld [vmem:[#allocation2 + $0x70] sm:$0xf]  ;;  %v3343_v6 = vld [vmem:[#allocation2 + $0x6c] sm:$0xc] }
 0x387   : > { %4675 = vrot.lane.b32.xlu0 %v4631_v20, %s7334_s6  ;;  %3957 = vrot.lane.b32.xlu1 %v3914_v47, %s7333_s5  ;;  %v3743_v20 = vsel %vm792_vm0, %v3741_v61, %v3742_v2  ;;  %v6913_v47 = vld [vmem:[#allocation2 + $0x5c] ss:$0 sps:$4 sm:$0x33]   ;;  %v4640_v61 = vsel %vm792_vm0, %v4638_v13, %v4639_v52  ;;  %v3747_v2 = vrot.slane %v6126_v5, 1  ;;  %v3313_v10 = vld [vmem:[#allocation2 + $0x78] sm:$0xe] }
 0x388   : > { %v4351_v16 = vrot.slane %v6913_v47, 2  ;;  %v4355_v43 = vsel %vm3902_vm14, %v4353_v58, %v4354_v53  ;;  %v6933_v13 = vld [vmem:[#allocation2 + $0x8c] ss:$0 sps:$4 sm:$0x11]  }
 0x38a   : > { %v4352_v29 = vsel %vm3902_vm14, %v4350_v33, %v4351_v16  ;;  %v9662_v33 = vpop.permute.xlu1 %3774  ;;  %v3341_v16 = vld [vmem:[#allocation2 + $0x60] sm:$0xc] }
 0x38b   : > { %4389 = vrot.lane.b32.xlu0 %v4346_v48, %s7331_s13  ;;  %3782 = vrot.lane.b32.xlu1 %v3740_v57, %s7331_s13  ;;  %v3744_v48 = vrot.slane %v6124_v45, 1  ;;  %v3745_v57 = vrot.slane %v6919_v49, 1  ;;  %v4641_v45 = vrot.slane %v6284_v62, 1  ;;  %v4642_v49 = vrot.slane %v6925_v0, 1 }
 0x38c   : > { %v6130_v62 = vcombine.low %v3311_v27, %v3280_v12  ;;  %v4645_v0 = vrot.slane %v6933_v13, 1 }
 0x38d   : > { %v3746_v24 = vsel %vm792_vm0, %v3744_v48, %v3745_v57  ;;  %v4643_v9 = vsel %vm792_vm0, %v4641_v45, %v4642_v49  ;;  %v4356_v48 = vrot.slane %v6238_v41, 2  ;;  %v6162_v45 = vcombine.low %v3343_v6, %v3280_v12  ;;  %v6947_v49 = vld [vmem:[#allocation2 + $0x74] ss:$0 sps:$4 sm:$0x33]  }
 0x38e   : > { %v9672_v52 = vpop.permute.xlu1 %3951 }
 0x38f   : > { %4677 = vrot.lane.b32.xlu0 %v4634_v60, %s7334_s6  ;;  %3959 = vrot.lane.b32.xlu1 %v3917_v54, %s7333_s5  ;;  %v3921_v60 = vrot.slane %v6156_v8, 2  ;;  %v3922_v54 = vrot.slane %v6923_v23, 2  ;;  %v6160_v23 = vcombine.low %v3341_v16, %v3278_v28 }
 0x391   : > { %v3923_v51 = vsel %vm3902_vm14, %v3921_v60, %v3922_v54  ;;  %v3752_v54 = vsel %vm792_vm0, %v3750_v26, %v3751_v14  ;;  %v3927_v58 = vrot.slane %v6160_v23, 2  ;;  %v3931_v26 = vrot.slane %v6947_v49, 2  ;;  %v3502_v23 = vld [vmem:[#allocation2 + $0x90] sm:$0xe] }
 0x393   : > { %4391 = vrot.lane.b32.xlu0 %v4349_v63, %s7331_s13  ;;  %3784 = vrot.lane.b32.xlu1 %v3743_v20, %s7331_s13  ;;  %v6158_v63 = vcombine.low %v3339_v25, %v9643_v38  ;;  %v3748_v20 = vrot.slane %v6927_v42, 1  ;;  %v9677_v42 = vpop.permute.xlu0 %4699  ;;  %v3486_v25 = vld [vmem:[#allocation2 + $0x30] sm:$0xe] }
 0x394   : > { %v6272_v53 = vcombine.low %v3486_v25, %v9500_v18  ;;  %v3437_v18 = vld [vmem:[#allocation2 + $0x78] sm:$0xc] }
 0x395   : > { %v3749_v47 = vsel %vm792_vm0, %v3747_v2, %v3748_v20  ;;  %v3924_v4 = vrot.slane %v6158_v63, 2  ;;  %v6943_v2 = vld [vmem:[#allocation2 + $0x74] ss:$0 sps:$4 sm:$0x11]  }
 0x396   : > { %v6941_v20 = vld [vmem:[#allocation2 + $0x38] ss:$0 sps:$4 sm:$0x11]   ;;  %v3754_v17 = vrot.slane %v6943_v2, 1 }
 0x397   : > { %4679 = vrot.lane.b32.xlu0 %v4637_v50, %s7334_s6  ;;  %3961 = vrot.lane.b32.xlu1 %v3920_v44, %s7333_s5  ;;  %v6929_v50 = vld [vmem:[#allocation2 + $0x74] ss:$0 sps:$4 sm:$0x33]   ;;  %v3500_v44 = vld [vmem:[#allocation2 + $0x84] sm:$0xe]  ;;  %v3926_v57 = vsel %vm3902_vm14, %v3924_v4, %v3925_v21  ;;  %v4623_v21 = vrot.slane %v6272_v53, 1 }
 0x398   : > { %v6286_v8 = vcombine.low %v3500_v44, %v9489_v30  ;;  %v6240_v44 = vcombine.low %v3437_v18, %v9507_v31  ;;  %v4624_v16 = vrot.slane %v6941_v20, 1  ;;  %v6288_v31 = vcombine.low %v3502_v23, %v9511_v15  ;;  %v6953_v20 = vld [vmem:[#allocation2 + $0x8c] ss:$0 sps:$4 sm:$0x33]  }
 0x399   : > { %v6963_v23 = vld [vmem:[#allocation2 + $0x8c] ss:$0 sps:$4 sm:$0x33]  }
 0x39a   : > { %v4644_v5 = vrot.slane %v6286_v8, 1  ;;  %v4625_v13 = vsel %vm792_vm0, %v4623_v21, %v4624_v16  ;;  %v4359_v14 = vrot.slane %v6240_v44, 2  ;;  %v6957_v44 = vld [vmem:[#allocation2 + $0xa4] ss:$0 sps:$4 sm:$0x11]  }
 0x39b   : > { %4393 = vrot.lane.b32.xlu0 %v4352_v29, %s7331_s13  ;;  %3786 = vrot.lane.b32.xlu1 %v3746_v24, %s7331_s13  ;;  %v4357_v29 = vrot.slane %v6929_v50, 2  ;;  %v3421_v24 = vld [vmem:[#allocation2 + $0x18] sm:$0xc] }
 0x39c   : > { %v6224_v30 = vcombine.low %v3421_v24, %v9496_v55  ;;  %v9683_v55 = vld [vmem:[%s10284_s2 + $0x88] sm:$0xff]   ;;  %v4646_v7 = vsel %vm792_vm0, %v4644_v5, %v4645_v0  ;;  %v3345_v24 = vld [vmem:[#allocation2 + $0x78] sm:$0xc]  ;;  %v6949_v5 = vld [vmem:[#allocation2 + $0x98] ss:$0 sps:$4 sm:$0x11]  }
 0x39d   : > { %v4358_v60 = vsel %vm3902_vm14, %v4356_v48, %v4357_v29  ;;  %6596 = vmatprep.subr.bf16.mxu0 %v9683_v55  ;;  %v3930_v48 = vrot.slane %v6162_v45, 2  ;;  %v6951_v29 = vld [vmem:[#allocation2 + $0x80] ss:$0 sps:$4 sm:$0x11]  }
 0x39e   : > { %v4335_v63 = vrot.slane %v6224_v30, 2  ;;  %v6955_v0 = vld [vmem:[#allocation2 + $0x80] ss:$0 sps:$4 sm:$0x33]  }
 0x39f   : > { %4681 = vrot.lane.b32.xlu0 %v4640_v61, %s7334_s6  ;;  %3963 = vrot.lane.b32.xlu1 %v3923_v51, %s7333_s5  ;;  %v6937_v61 = vld [vmem:[#allocation2 + $0x20] ss:$0 sps:$4 sm:$0x33]   ;;  %v3928_v51 = vrot.slane %v6939_v34, 2 }
 0x3a0   : > { %v4336_v41 = vrot.slane %v6937_v61, 2  ;;  %v9691_v59 = vpop.permute.xlu1 %4065  ;;  %v3284_v61 = vld [vmem:[#allocation2 + $0x88] sm:$0xf] }
 0x3a1   : > { %v3929_v28 = vsel %vm3902_vm14, %v3927_v58, %v3928_v51  ;;  %v3757_v58 = vrot.slane %v6951_v29, 1  ;;  %v4647_v51 = vrot.slane %v6288_v31, 1  ;;  %v3317_v31 = vld [vmem:[#allocation2 + $0x90] sm:$0xe] }
 0x3a2   : > { %v4337_v50 = vsel %vm3902_vm14, %v4335_v63, %v4336_v41  ;;  %v3934_v41 = vrot.slane %v6955_v0, 2  ;;  %v6967_v0 = vld [vmem:[#allocation2 + $0x98] ss:$0 sps:$4 sm:$0x11]  }
 0x3a3   : > { %4395 = vrot.lane.b32.xlu0 %v4355_v43, %s7331_s13  ;;  %3788 = vrot.lane.b32.xlu1 %v3749_v47, %s7331_s13  ;;  %v3753_v43 = vrot.slane %v6130_v62, 1  ;;  %v3282_v47 = vld [vmem:[#allocation2 + $0x7c] sm:$0xf]  ;;  %v3439_v62 = vld [vmem:[#allocation2 + $0x84] sm:$0xc] }
 0x3a4   : > { %v9693_v4 = vpop.permute.xlu0 %4497  ;;  %v6132_v8 = vcombine.low %v3313_v10, %v3282_v47  ;;  %v6164_v27 = vcombine.low %v3345_v24, %v3282_v47  ;;  %v6242_v2 = vcombine.low %v3439_v62, %v9515_v32  ;;  %v6959_v47 = vld [vmem:[#allocation2 + $0x8c] ss:$0 sps:$4 sm:$0x11]   ;;  %v3261_v24 = vld [vmem:[#allocation2] sm:$0xf] }
 0x3a5   : > { %v3506_v62 = vld [vmem:[#allocation2 + $0xa8] sm:$0xe] }
 0x3a6   : > { %v3756_v30 = vrot.slane %v6132_v8, 1  ;;  %v3933_v53 = vrot.slane %v6164_v27, 2  ;;  %v4362_v32 = vrot.slane %v6242_v2, 2  ;;  %v9725_v8 = vld [vmem:[#allocation2 + $0x94] sm:$0xf]  ;;  %v4651_v27 = vrot.slane %v6957_v44, 1 }
 0x3a7   : > { %4683 = vrot.lane.b32.xlu0 %v4643_v9, %s7334_s6  ;;  %3965 = vrot.lane.b32.xlu1 %v3926_v57, %s7333_s5  ;;  %v3755_v9 = vsel %vm792_vm0, %v3753_v43, %v3754_v17  ;;  %v6945_v57 = vld [vmem:[#allocation2 + $0x80] ss:$0 sps:$4 sm:$0x33]   ;;  %v3504_v43 = vld [vmem:[#allocation2 + $0x9c] sm:$0xe] }
 0x3a8   : > { %v3758_v63 = vsel %vm792_vm0, %v3756_v30, %v3757_v58  ;;  %v6290_v49 = vcombine.low %v3504_v43, %v9522_v37  ;;  %v3935_v21 = vsel %vm3902_vm14, %v3933_v53, %v3934_v41  ;;  %v6136_v30 = vcombine.low %v3317_v31, %v9725_v8  ;;  %v3349_v53 = vld [vmem:[#allocation2 + $0x90] sm:$0xc] }
 0x3a9   : > { %v3937_v58 = vrot.slane %v6963_v23, 2  ;;  %v6168_v43 = vcombine.low %v3349_v53, %v9725_v8  ;;  %v6983_v53 = vld [vmem:[#allocation2 + $0xa4] ss:$0 sps:$4 sm:$0x33]  }
 0x3aa   : > { %v9705_v34 = vpop.permute.xlu0 %4499 }
 0x3ab   : > { %4397 = vrot.lane.b32.xlu0 %v4358_v60, %s7331_s13  ;;  %3790 = vrot.lane.b32.xlu1 %v3752_v54, %s7331_s13  ;;  %v3932_v60 = vsel %vm3902_vm14, %v3930_v48, %v3931_v26  ;;  %v4360_v54 = vrot.slane %v6945_v57, 2  ;;  %v4363_v48 = vrot.slane %v6953_v20, 2  ;;  %v3760_v57 = vrot.slane %v6959_v47, 1  ;;  %v3441_v26 = vld [vmem:[#allocation2 + $0x90] sm:$0xc] }
 0x3ac   : > { %v3762_v20 = vrot.slane %v6136_v30, 1  ;;  %v3443_v47 = vld [vmem:[#allocation2 + $0x9c] sm:$0xc] }
 0x3ad   : > { %v4361_v25 = vsel %vm3902_vm14, %v4359_v14, %v4360_v54  ;;  %v4364_v37 = vsel %vm3902_vm14, %v4362_v32, %v4363_v48  ;;  %v6244_v14 = vcombine.low %v3441_v26, %v9529_v11  ;;  %v6961_v54 = vld [vmem:[#allocation2 + $0x98] ss:$0 sps:$4 sm:$0x33]   ;;  %v3319_v48 = vld [vmem:[#allocation2 + $0x9c] sm:$0xe]  ;;  %v3939_v26 = vrot.slane %v6168_v43, 2 }
 0x3ae   : > { %v4366_v41 = vrot.slane %v6961_v54, 2  ;;  %v3351_v54 = vld [vmem:[#allocation2 + $0x9c] sm:$0xc] }
 0x3af   : > { %4685 = vrot.lane.b32.xlu0 %v4646_v7, %s7334_s6  ;;  %3967 = vrot.lane.b32.xlu1 %v3929_v28, %s7333_s5  ;;  %v3315_v7 = vld [vmem:[#allocation2 + $0x84] sm:$0xe]  ;;  %v4648_v28 = vrot.slane %v6949_v5, 1 }
 0x3b0   : > { %v6134_v6 = vcombine.low %v3315_v7, %v3284_v61  ;;  %v4365_v7 = vrot.slane %v6244_v14, 2 }
 0x3b1   : > { %v4649_v17 = vsel %vm792_vm0, %v4647_v51, %v4648_v28  ;;  %v6965_v28 = vld [vmem:[#allocation2 + $0xb0] ss:$0 sps:$4 sm:$0x11]  }
 0x3b2   : > { %v3759_v10 = vrot.slane %v6134_v6, 1 }
 0x3b3   : > { %4383 = vrot.lane.b32.xlu0 %v4337_v50, %s7331_s13  ;;  %3792 = vrot.lane.b32.xlu1 %v3755_v9, %s7331_s13  ;;  %v3347_v50 = vld [vmem:[#allocation2 + $0x84] sm:$0xc] }
 0x3b4   : > { %v6166_v9 = vcombine.low %v3347_v50, %v3284_v61  ;;  %v6971_v50 = vld [vmem:[#allocation2 + $0x98] ss:$0 sps:$4 sm:$0x33]  }
 0x3b5   : > { %v9701_v12 = vpop.permute.xlu1 %4067  ;;  %v3940_v31 = vrot.slane %v6971_v50, 2 }
 0x3b6   : > { %v3936_v5 = vrot.slane %v6166_v9, 2  ;;  %v6246_v9 = vcombine.low %v3443_v47, %v9543_v22  ;;  %v6977_v22 = vld [vmem:[#allocation2 + $0xa4] ss:$0 sps:$4 sm:$0x11]  }
 0x3b7   : > { %4671 = vrot.lane.b32.xlu0 %v4625_v13, %s7334_s6  ;;  %3969 = vrot.lane.b32.xlu1 %v3932_v60, %s7333_s5  ;;  %v4650_v13 = vrot.slane %v6290_v49, 1  ;;  %v3761_v60 = vsel %vm792_vm0, %v3759_v10, %v3760_v57  ;;  %v3763_v49 = vrot.slane %v6967_v0, 1 }
 0x3b8   : > { %v3938_v6 = vsel %vm3902_vm14, %v3936_v5, %v3937_v58  ;;  %v4368_v30 = vrot.slane %v6246_v9, 2  ;;  %v3943_v9 = vrot.slane %v6983_v53, 2 }
 0x3b9   : > { %v9710_v15 = vpop.permute.xlu1 %4069  ;;  %v4652_v51 = vsel %vm792_vm0, %v4650_v13, %v4651_v27  ;;  %v3764_v57 = vsel %vm792_vm0, %v3762_v20, %v3763_v49  ;;  %v6969_v13 = vld [vmem:[#allocation2 + $0xa4] ss:$0 sps:$4 sm:$0x33]   ;;  %v6981_v49 = vld [vmem:[#allocation2 + $0xb0] ss:$0 sps:$4 sm:$0x33]  }
 0x3bb   : > { %4399 = vrot.lane.b32.xlu0 %v4361_v25, %s7331_s13  ;;  %3794 = vrot.lane.b32.xlu1 %v3758_v63, %s7331_s13  ;;  %v7222_v25 = vld [vmem:[#allocation2 + $0x4] sm:$0xf]  ;;  %v6292_v63 = vcombine.low %v3506_v62, %v9539_v35  ;;  %v6975_v62 = vld [vmem:[#allocation2 + $0xbc] ss:$0 sps:$4 sm:$0x11]  }
 0x3bc   : > { %v6096_v11 = vcombine.low %v3261_v24, %v7222_v25  ;;  %v3508_v24 = vld [vmem:[#allocation2 + $0xb4] sm:$0xe] }
 0x3bd   : > { %v9716_v45 = vpop.permute.xlu0 %4501  ;;  %v9719_v18 = vpop.permute.xlu1 %4071  ;;  %v4653_v10 = vrot.slane %v6292_v63, 1  ;;  %v6294_v27 = vcombine.low %v3508_v24, %v9553_v36  ;;  %v3766_v36 = vrot.slane %v6977_v22, 1  ;;  %v3445_v63 = vld [vmem:[#allocation2 + $0xa8] sm:$0xc] }
 0x3be   : > { %v4849_v35 = vsel %vm2128_vm10, %v6096_v11, %v9662_v33  ;;  %v4369_v11 = vrot.slane %v6969_v13, 2  ;;  %v6248_v43 = vcombine.low %v3445_v63, %v9557_v1  ;;  %v3353_v13 = vld [vmem:[#allocation2 + $0xa8] sm:$0xc]  ;;  %v6987_v24 = vld [vmem:[#allocation2 + $0xc8] ss:$0 sps:$4 sm:$0x11]  }
 0x3bf   : > { %4687 = vrot.lane.b32.xlu0 %v4649_v17, %s7334_s6  ;;  %3971 = vrot.lane.b32.xlu1 %v3935_v21, %s7333_s5  ;;  %v9747_v17 = vld [vmem:[#allocation2 + $0xa0] sm:$0xf]  ;;  %v4367_v21 = vsel %vm3902_vm14, %v4365_v7, %v4366_v41  ;;  %v4897_v33 = vsel %vm4895_vm5, %v4849_v35, %v9672_v52  ;;  %v3941_v52 = vsel %vm3902_vm14, %v3939_v26, %v3940_v31  ;;  %v4656_v20 = vrot.slane %v6294_v27, 1  ;;  %v3321_v41 = vld [vmem:[#allocation2 + $0xa8] sm:$0xe] }
 0x3c0   : > { %v6138_v23 = vcombine.low %v3319_v48, %v9747_v17  ;;  %v6170_v25 = vcombine.low %v3351_v54, %v9747_v17  ;;  %v3510_v48 = vld [vmem:[#allocation2 + $0xc0] sm:$0xe] }
 0x3c1   : > { %v9727_v16 = vpop.permute.xlu0 %4503  ;;  %v9730_v29 = vpop.permute.xlu1 %4073 }
 0x3c2   : > { %v3765_v0 = vrot.slane %v6138_v23, 1  ;;  %v3942_v50 = vrot.slane %v6170_v25, 2  ;;  %v4371_v23 = vrot.slane %v6248_v43, 2 }
 0x3c3   : > { %4401 = vrot.lane.b32.xlu0 %v4364_v37, %s7331_s13  ;;  %3796 = vrot.lane.b32.xlu1 %v3761_v60, %s7331_s13  ;;  %v4654_v37 = vrot.slane %v6965_v28, 1 }
 0x3c4   : > { %v3767_v47 = vsel %vm792_vm0, %v3765_v0, %v3766_v36  ;;  %v3944_v31 = vsel %vm3902_vm14, %v3942_v50, %v3943_v9  ;;  %v3355_v9 = vld [vmem:[#allocation2 + $0xb4] sm:$0xc] }
 0x3c5   : > { %v9737_v61 = vpop.permute.xlu0 %4505  ;;  %v9740_v2 = vpop.permute.xlu1 %4075  ;;  %v4655_v60 = vsel %vm792_vm0, %v4653_v10, %v4654_v37  ;;  %v6296_v37 = vcombine.low %v3510_v48, %v9567_v39 }
 0x3c7   : > { %4689 = vrot.lane.b32.xlu0 %v4652_v51, %s7334_s6  ;;  %3973 = vrot.lane.b32.xlu1 %v3938_v6, %s7333_s5  ;;  %v9774_v51 = vld [vmem:[#allocation2 + $0xac] sm:$0xf]  ;;  %v4370_v6 = vsel %vm3902_vm14, %v4368_v30, %v4369_v11  ;;  %v9796_v30 = vld [vmem:[#allocation2 + $0xb8] sm:$0xf]  ;;  %v4659_v0 = vrot.slane %v6296_v37, 1 }
 0x3c8   : > { %v6140_v35 = vcombine.low %v3321_v41, %v9774_v51  ;;  %v3323_v11 = vld [vmem:[#allocation2 + $0xb4] sm:$0xe]  ;;  %v6999_v37 = vld [vmem:[#allocation2 + $0xd4] ss:$0 sps:$4 sm:$0x11]  }
 0x3c9   : > { %v9749_v32 = vpop.permute.xlu0 %4507  ;;  %v9754_v44 = vpop.permute.xlu1 %4077  ;;  %v6142_v53 = vcombine.low %v3323_v11, %v9796_v30  ;;  %v7223_v11 = vld [vmem:[#allocation2 + $0x28] sm:$0xf] }
 0x3ca   : > { %v3768_v22 = vrot.slane %v6140_v35, 1 }
 0x3cb   : > { %4403 = vrot.lane.b32.xlu0 %v4367_v21, %s7331_s13  ;;  %3798 = vrot.lane.b32.xlu1 %v3764_v57, %s7331_s13  ;;  %v4657_v21 = vrot.slane %v6975_v62, 1  ;;  %v6989_v57 = vld [vmem:[#allocation2 + $0xb0] ss:$0 sps:$4 sm:$0x11]  }
 0x3cc   : > { %v3769_v54 = vrot.slane %v6989_v57, 1  ;;  %v3771_v57 = vrot.slane %v6142_v53, 1 }
 0x3cd   : > { %v9763_v14 = vpop.permute.xlu0 %4509  ;;  %v4064_v5 = vpop.permute.xlu1 %4063  ;;  %v4658_v26 = vsel %vm792_vm0, %v4656_v20, %v4657_v21  ;;  %v6993_v20 = vld [vmem:[#allocation2 + $0xbc] ss:$0 sps:$4 sm:$0x33]  }
 0x3ce   : > { %v9769_v58 = vsel %vm4928_vm6, %v4897_v33, %v4064_v5  ;;  %v4372_v33 = vrot.slane %v6981_v49, 2  ;;  %v3447_v5 = vld [vmem:[#allocation2 + $0xb4] sm:$0xc]  ;;  %v3770_v36 = vsel %vm792_vm0, %v3768_v22, %v3769_v54  ;;  %v7001_v49 = vld [vmem:[#allocation2 + $0xbc] ss:$0 sps:$4 sm:$0x11]  }
 0x3cf   : > { %4691 = vrot.lane.b32.xlu0 %v4655_v60, %s7334_s6  ;;  %3975 = vrot.lane.b32.xlu1 %v3941_v52, %s7333_s5  ;;  %v6172_v60 = vcombine.low %v3353_v13, %v9774_v51  ;;  %v6995_v52 = vld [vmem:[#allocation2 + $0xb0] ss:$0 sps:$4 sm:$0x33]   ;;  %v6250_v25 = vcombine.low %v3447_v5, %v9574_v56 }
 0x3d0   : > { %v4373_v39 = vsel %vm3902_vm14, %v4371_v23, %v4372_v33  ;;  %v3946_v41 = vrot.slane %v6995_v52, 2  ;;  %v4375_v23 = vrot.slane %v6993_v20, 2  ;;  %v3772_v33 = vrot.slane %v7001_v49, 1  ;;  %v9834_v49 = vld [vmem:[#allocation2 + $0xd0] sm:$0xf] }
 0x3d1   : > { %v9776_v7 = vpop.permute.xlu0 %4495  ;;  %v9779_v28 = vpop.permute.xlu1 %4079  ;;  %v3945_v63 = vrot.slane %v6172_v60, 2  ;;  %v4374_v35 = vrot.slane %v6250_v25, 2  ;;  %v7005_v25 = vld [vmem:[#allocation2 + $0xc8] ss:$0 sps:$4 sm:$0x33]  }
 0x3d2   : > { %v3773_v54 = vsel %vm792_vm0, %v3771_v57, %v3772_v33  ;;  %v3387_v57 = vld [vmem:[#allocation2 + $0xcc] sm:$0xf] }
 0x3d3   : > { %4405 = vrot.lane.b32.xlu0 %v4370_v6, %s7331_s13  ;;  %3800 = vrot.lane.b32.xlu1 %v3767_v47, %s7331_s13  ;;  %v4660_v6 = vrot.slane %v6987_v24, 1  ;;  %v3512_v47 = vld [vmem:[#allocation2 + $0xcc] sm:$0xe]  ;;  %v3947_v48 = vsel %vm3902_vm14, %v3945_v63, %v3946_v41  ;;  %v7007_v24 = vld [vmem:[#allocation2 + $0xbc] ss:$0 sps:$4 sm:$0x33]   ;;  %v4376_v22 = vsel %vm3902_vm14, %v4374_v35, %v4375_v23 }
 0x3d4   : > { %v6298_v21 = vcombine.low %v3512_v47, %v9581_v40  ;;  %v3949_v53 = vrot.slane %v7007_v24, 2  ;;  %v7010_v47 = vld [vmem:[#allocation2 + $0x2c] ss:$0 sps:$4 sm:$0x11]   ;;  %v3516_v23 = vld [vmem:[#allocation2 + $0xe4] sm:$0xe] }
 0x3d5   : > { %v9786_v10 = vpop.permute.xlu0 %4511  ;;  %v9789_v1 = vpop.permute.xlu1 %4081  ;;  %v4661_v50 = vsel %vm792_vm0, %v4659_v0, %v4660_v6  ;;  %v4663_v0 = vrot.slane %v6999_v37, 1 }
 0x3d6   : > { %v4662_v60 = vrot.slane %v6298_v21, 1  ;;  %v3484_v21 = vld [vmem:[#allocation2 + $0xe4] sm:$0xf] }
 0x3d7   : > { %4693 = vrot.lane.b32.xlu0 %v4658_v26, %s7334_s6  ;;  %3977 = vrot.lane.b32.xlu1 %v3944_v31, %s7333_s5  ;;  %v6174_v26 = vcombine.low %v3355_v9, %v9796_v30  ;;  %v3449_v31 = vld [vmem:[#allocation2 + $0xc0] sm:$0xc]  ;;  %v9837_v9 = vld [vmem:[#allocation2 + $0xe8] sm:$0xf] }
 0x3d8   : > { %v6252_v5 = vcombine.low %v3449_v31, %v9589_v19  ;;  %v4664_v6 = vsel %vm792_vm0, %v4662_v60, %v4663_v0  ;;  %v6191_v31 = vcombine.low %v3387_v57, %v9834_v49  ;;  %v6271_v60 = vcombine.low %v3484_v21, %v9837_v9 }
 0x3d9   : > { %v9798_v27 = vpop.permute.xlu0 %4513  ;;  %v9801_v62 = vpop.permute.xlu1 %4083  ;;  %v3948_v52 = vrot.slane %v6174_v26, 2  ;;  %v3451_v26 = vld [vmem:[#allocation2 + $0xcc] sm:$0xc] }
 0x3da   : > { %v4377_v19 = vrot.slane %v6252_v5, 2  ;;  %v6254_v24 = vcombine.low %v3451_v26, %v9834_v49  ;;  %v7017_v5 = vld [vmem:[#allocation2 + $0xd4] ss:$0 sps:$4 sm:$0x33]  }
 0x3db   : > { %4407 = vrot.lane.b32.xlu0 %v4373_v39, %s7331_s13  ;;  %3802 = vrot.lane.b32.xlu1 %v3770_v36, %s7331_s13  ;;  %v3391_v39 = vld [vmem:[#allocation2 + $0x24] sm:$0xe]  ;;  %v3950_v41 = vsel %vm3902_vm14, %v3948_v52, %v3949_v53  ;;  %v6302_v52 = vcombine.low %v3516_v23, %v9837_v9 }
 0x3dc   : > { %v6194_v36 = vcombine.low %v3391_v39, %v7223_v11  ;;  %v7020_v39 = vld [vmem:[#allocation2 + $0xec] ss:$0 sps:$4 sm:$0x11]   ;;  %v7224_v11 = vld [vmem:[#allocation2 + $0x34] sm:$0xf] }
 0x3dd   : > { %v9808_v43 = vpop.permute.xlu0 %4515  ;;  %v9811_v56 = vpop.permute.xlu1 %4085  ;;  %v4669_v21 = vrot.slane %v7020_v39, 1 }
 0x3de   : > { %v4194_v35 = vrot.slane %v6194_v36, 1 }
 0x3df   : > { %4695 = vrot.lane.b32.xlu0 %v4661_v50, %s7334_s6  ;;  %3979 = vrot.lane.b32.xlu1 %v3947_v48, %s7333_s5  ;;  %v4378_v50 = vrot.slane %v7005_v25, 2 }
 0x3e1   : > { %v9818_v13 = vpop.permute.xlu0 %4517  ;;  %v9821_v40 = vpop.permute.xlu1 %4087  ;;  %v4379_v37 = vsel %vm3902_vm14, %v4377_v19, %v4378_v50  ;;  %v4380_v19 = vrot.slane %v6254_v24, 2  ;;  %v4668_v50 = vrot.slane %v6302_v52, 1  ;;  %v4933_v24 = vsel %vm4928_vm6, %v9487_v3, %v9691_v59  ;;  %v3267_v3 = vld [vmem:[#allocation2 + $0x24] sm:$0xf] }
 0x3e2   : > { %v7022_v59 = vld [vmem:[#allocation2 + $0x44] ss:$0 sps:$4 sm:$0x11]  }
 0x3e3   : > { %4409 = vrot.lane.b32.xlu0 %v4376_v22, %s7331_s13  ;;  %3804 = vrot.lane.b32.xlu1 %v3773_v54, %s7331_s13  ;;  %v4195_v22 = vrot.slane %v7010_v47, 1  ;;  %v3393_v54 = vld [vmem:[#allocation2 + $0x30] sm:$0xe]  ;;  %v4381_v47 = vrot.slane %v7017_v5, 2  ;;  %v4670_v5 = vsel %vm792_vm0, %v4668_v50, %v4669_v21 }
 0x3e4   : > { %v6196_v36 = vcombine.low %v3393_v54, %v7224_v11  ;;  %v3395_v54 = vld [vmem:[#allocation2 + $0x3c] sm:$0xe] }
 0x3e5   : > { %v9827_v63 = vpop.permute.xlu0 %4519  ;;  %v9830_v20 = vpop.permute.xlu1 %4089  ;;  %v4196_v0 = vsel %vm792_vm0, %v4194_v35, %v4195_v22  ;;  %v4382_v35 = vsel %vm3902_vm14, %v4380_v19, %v4381_v47  ;;  %v7227_v47 = vld [vmem:[#allocation2 + $0x28] sm:$0xf] }
 0x3e6   : > { %v4197_v23 = vrot.slane %v6196_v36, 1  ;;  %v6099_v50 = vcombine.low %v3267_v3, %v7227_v47  ;;  %v3399_v3 = vld [vmem:[#allocation2 + $0x54] sm:$0xe] }
 0x3e7   : > { %4697 = vrot.lane.b32.xlu0 %v4664_v6, %s7334_s6  ;;  %3981 = vrot.lane.b32.xlu1 %v3950_v41, %s7333_s5  ;;  %v7018_v41 = vld [vmem:[#allocation2 + $0x38] ss:$0 sps:$4 sm:$0x11]  }
 0x3e8   : > { %v4198_v22 = vrot.slane %v7018_v41, 1 }
 0x3e9   : > { %v9839_v48 = vpop.permute.xlu0 %4521  ;;  %v9842_v33 = vpop.permute.xlu1 %4091 }
 0x3ea   : > { %v4199_v39 = vsel %vm792_vm0, %v4197_v23, %v4198_v22  ;;  %v4201_v22 = vrot.slane %v7022_v59, 1  ;;  %v7229_v59 = vld [vmem:[#allocation2 + $0x34] sm:$0xf] }
 0x3eb   : > { %4411 = vrot.lane.b32.xlu0 %v4379_v37, %s7331_s13  ;;  %4093 = vrot.lane.b32.xlu1 %v6191_v31, %s7334_s6 }
 0x3ed   : > { %v4386_v25 = vpop.permute.xlu0 %4385  ;;  %v3779_v6 = vpop.permute.xlu1 %3778 }
 0x3ee   : > { %v4982_v53 = vsel %vm2128_vm10, %v4196_v0, %v4386_v25  ;;  %v7226_v25 = vld [vmem:[#allocation2 + $0x40] sm:$0xf] }
 0x3ef   : > { %4525 = vrot.lane.b32.xlu0 %v6271_v60, %s7333_s5  ;;  %v5028_v26 = vsel %vm4895_vm5, %v4982_v53, %v9693_v4  ;;  %v3265_v60 = vld [vmem:[#allocation2 + $0x18] sm:$0xf]  ;;  %v7225_v4 = vld [vmem:[#allocation2 + $0x1c] sm:$0xf]  ;;  %v6198_v11 = vcombine.low %v3395_v54, %v7226_v25  ;;  %v7228_v54 = vld [vmem:[#allocation2 + $0x4c] sm:$0xf] }
 0x3f0   : > { %v6098_v52 = vcombine.low %v3265_v60, %v7225_v4  ;;  %v3397_v60 = vld [vmem:[#allocation2 + $0x48] sm:$0xe] }
 0x3f1   : > { %v4674_v57 = vpop.permute.xlu0 %4673  ;;  %v3956_v31 = vpop.permute.xlu1 %3955  ;;  %v6200_v4 = vcombine.low %v3397_v60, %v7228_v54  ;;  %v3271_v54 = vld [vmem:[#allocation2 + $0x3c] sm:$0xf] }
 0x3f2   : > { %v5061_v37 = vsel %vm4928_vm6, %v5028_v26, %v4674_v57  ;;  %v4855_v19 = vsel %vm2128_vm10, %v6098_v52, %v3779_v6  ;;  %v4200_v26 = vrot.slane %v6198_v11, 1 }
 0x3f3   : > { %4413 = vrot.lane.b32.xlu0 %v4382_v35, %s7331_s13  ;;  %5342 = vmatprep.mubr.bf16.mxu1 %v5061_v37  ;;  %v4901_v41 = vsel %vm4895_vm5, %v4855_v19, %v3956_v31  ;;  %v4203_v11 = vrot.slane %v6200_v4, 1  ;;  %v3269_v19 = vld [vmem:[#allocation2 + $0x30] sm:$0xf]  ;;  %v3401_v4 = vld [vmem:[#allocation2 + $0x60] sm:$0xe] }
 0x3f4   : > { %5343 = vmatmul.mubr.bf16.vlgmr.msra.gmra.mxu1 %v4933_v24  ;;  %v4936_v6 = vsel %vm4928_vm6, %v4901_v41, %v9701_v12  ;;  %v6100_v41 = vcombine.low %v3269_v19, %v7229_v59 }
 0x3f5   : > { %v4388_v0 = vpop.permute.xlu0 %4387  ;;  %v3781_v53 = vpop.permute.xlu1 %3780 }
 0x3f6   : > { %v4985_v36 = vsel %vm2128_vm10, %v4199_v39, %v4388_v0  ;;  %v4858_v23 = vsel %vm2128_vm10, %v6099_v50, %v3781_v53  ;;  %v7025_v0 = vld [vmem:[#allocation2 + $0x50] ss:$0 sps:$4 sm:$0x11]  }
 0x3f7   : > { %4701 = vrot.lane.b32.xlu0 %v4670_v5, %s7334_s6  ;;  %v5030_v57 = vsel %vm4895_vm5, %v4985_v36, %v9705_v34  ;;  %v4202_v34 = vsel %vm792_vm0, %v4200_v26, %v4201_v22  ;;  %s188_s6 = sand.u32 1, %s7314_s16  }
 0x3f8   : > { %s5736_s9 = sshll.u32 %s188_s6, 8  ;;  %s10241_s19 = scalar_lea.sflag [#allocation4], %s188_s6 }
 0x3f9   : > { %v4676_v21 = vpop.permute.xlu0 %4675  ;;  %v3958_v37 = vpop.permute.xlu1 %3957  ;;  %s10112_s10 = scalar_lea.vmem [#allocation3], %s5736_s9 }
 0x3fa   : > { %v5064_v35 = vsel %vm4928_vm6, %v5030_v57, %v4676_v21  ;;  %v4903_v24 = vsel %vm4895_vm5, %v4858_v23, %v3958_v37  ;;  %v7230_v21 = vld [vmem:[#allocation2 + $0x58] sm:$0xf]  ;;  %s5670_s12 = sshll.u32 %s10112_s10, 4  ;;  %s10235_s12 = int_to_ptr.vmem [resolvable:$true] %s5670_s12 }
 0x3fb   : > { %5350 = vmatprep.mubr.bf16.mxu1 %v5064_v35  ;;  %v4939_v31 = vsel %vm4928_vm6, %v4903_v24, %v9710_v15  ;;  %v4204_v15 = vrot.slane %v7025_v0, 1  ;;  %v6202_v57 = vcombine.low %v3399_v3, %v7230_v21  ;;  %v7028_v35 = vld [vmem:[#allocation2 + $0x5c] ss:$0 sps:$4 sm:$0x11]   ;;  %s7262_s23 = scalar_lea.vmem %s10235_s12, 4096  ;;  %p7269_p0 = scmp.lt.s32.totalorder %s10235_s12, %s7267_s28 }
 0x3fc   : > { %5351 = vmatmul.mubr.bf16.gmra.mxu1 %v4936_v6  ;;  %p7263_p11 = scmp.ne.s32.totalorder %s10235_s12, %s7262_s23  ;;  %p7270_p1 = scmp.lt.s32.totalorder %s7268_s29, %s7262_s23 }
 0x3fd   : > { %v4390_v5 = vpop.permute.xlu0 %4389  ;;  %v3783_v39 = vpop.permute.xlu1 %3782  ;;  %v4205_v47 = vsel %vm792_vm0, %v4203_v11, %v4204_v15  ;;  %v4206_v22 = vrot.slane %v6202_v57, 1  ;;  %v7031_v15 = vld [vmem:[#allocation2 + $0x68] ss:$0 sps:$4 sm:$0x11]  }
 0x3fe   : > { %v4988_v52 = vsel %vm2128_vm10, %v4202_v34, %v4390_v5  ;;  %v4207_v5 = vrot.slane %v7028_v35, 1  ;;  %v4210_v21 = vrot.slane %v7031_v15, 1  ;;  %v3273_v57 = vld [vmem:[#allocation2 + $0x48] sm:$0xf]  ;;  %p7264_p12 = pnand %p7263_p11, %p7400_p5  ;;  %p7271_p2 = por %p7270_p1, %p7269_p0 }
 0x3ff   : > { %v5032_v12 = vsel %vm4895_vm5, %v4988_v52, %v9716_v45  ;;  %v4861_v45 = vsel %vm2128_vm10, %v6100_v41, %v3783_v39  ;;  %v7231_v52 = vld [vmem:[#allocation2 + $0x40] sm:$0xf] }
 0x400   : > { %v6101_v39 = vcombine.low %v3271_v54, %v7231_v52  ;;  %v4208_v0 = vsel %vm792_vm0, %v4206_v22, %v4207_v5  ;;  %p7265_p13 = pneg %p7264_p12 }
 0x401   : > { %v4678_v25 = vpop.permute.xlu0 %4677  ;;  %v3960_v53 = vpop.permute.xlu1 %3959 }
 0x402   : > { %v5067_v36 = vsel %vm4928_vm6, %v5032_v12, %v4678_v25  ;;  %v4905_v37 = vsel %vm4895_vm5, %v4861_v45, %v3960_v53  ;;  %v7232_v12 = vld [vmem:[#allocation2 + $0x64] sm:$0xf]  ;;  %p7272_p3 = pnand %p7271_p2, %p7265_p13 }
 0x403   : > { %5358 = vmatprep.mubr.bf16.mxu1 %v5067_v36  ;;  %v4942_v34 = vsel %vm4928_vm6, %v4905_v37, %v9719_v18  ;;  %v6204_v11 = vcombine.low %v3401_v4, %v7232_v12  ;;  %v3389_v12 = vld [vmem:[#allocation2 + $0x18] sm:$0xe] }
 0x404   : > { %5359 = vmatmul.mubr.bf16.gmra.mxu1 %v4939_v31 }
 0x405   : > { %v4392_v50 = vpop.permute.xlu0 %4391  ;;  %v3785_v23 = vpop.permute.xlu1 %3784  ;;  %v4209_v59 = vrot.slane %v6204_v11, 1 }
 0x406   : > { %v4991_v26 = vsel %vm2128_vm10, %v4205_v47, %v4392_v50  ;;  %v4864_v53 = vsel %vm2128_vm10, %v6101_v39, %v3785_v23  ;;  %v7233_v23 = vld [vmem:[#allocation2 + $0x4c] sm:$0xf] }
 0x407   : > { %v5034_v24 = vsel %vm4895_vm5, %v4991_v26, %v9727_v16  ;;  %v3403_v26 = vld [vmem:[#allocation2 + $0x6c] sm:$0xe]  ;;  %v6102_v45 = vcombine.low %v3273_v57, %v7233_v23  ;;  %v4211_v35 = vsel %vm792_vm0, %v4209_v59, %v4210_v21  ;;  %v7236_v23 = vld [vmem:[#allocation2 + $0x34] sm:$0xf] }
 0x409   : > { %v4680_v6 = vpop.permute.xlu0 %4679  ;;  %v3962_v60 = vpop.permute.xlu1 %3961 }
 0x40a   : > { %v5070_v31 = vsel %vm4928_vm6, %v5034_v24, %v4680_v6  ;;  %v4907_v19 = vsel %vm4895_vm5, %v4864_v53, %v3962_v60  ;;  %v7234_v6 = vld [vmem:[#allocation2 + $0x70] sm:$0xf]  ;;  %v7034_v60 = vld [vmem:[#allocation2 + $0x74] ss:$0 sps:$4 sm:$0x11]  }
 0x40b   : > { %5366 = vmatprep.mubr.bf16.mxu1 %v5070_v31  ;;  %v4945_v50 = vsel %vm4928_vm6, %v4907_v19, %v9730_v29  ;;  %v6206_v24 = vcombine.low %v3403_v26, %v7234_v6  ;;  %v7235_v53 = vld [vmem:[#allocation2 + $0x1c] sm:$0xf]  ;;  %v3518_v26 = vld [vmem:[#allocation2 + $0x30] sm:$0xc] }
 0x40c   : > { %5367 = vmatmul.mubr.bf16.gmra.mxu1 %v4942_v34  ;;  %v6192_v15 = vcombine.low %v3389_v12, %v7235_v53  ;;  %v7238_v12 = vld [vmem:[#allocation2 + $0x40] sm:$0xf]  ;;  %v7239_v53 = vld [vmem:[#allocation2 + $0x4c] sm:$0xf] }
 0x40d   : > { %v4394_v25 = vpop.permute.xlu0 %4393  ;;  %v3787_v36 = vpop.permute.xlu1 %3786  ;;  %v4212_v54 = vrot.slane %v6206_v24, 1  ;;  %v7237_v24 = vld [vmem:[#allocation2 + $0x7c] sm:$0xf] }
 0x40e   : > { %v4994_v16 = vsel %vm2128_vm10, %v4208_v0, %v4394_v25  ;;  %v4867_v31 = vsel %vm2128_vm10, %v6102_v45, %v3787_v36  ;;  %v4213_v0 = vrot.slane %v7034_v60, 1  ;;  %v3275_v25 = vld [vmem:[#allocation2 + $0x54] sm:$0xf]  ;;  %v6304_v45 = vcombine.low %v3518_v26, %v7236_v23  ;;  %v7043_v60 = vld [vmem:[#allocation2 + $0x80] ss:$0 sps:$4 sm:$0x11]  }
 0x40f   : > { %v5036_v3 = vsel %vm4895_vm5, %v4994_v16, %v9737_v61  ;;  %v6103_v11 = vcombine.low %v3275_v25, %v9643_v38  ;;  %v4216_v25 = vrot.slane %v7043_v60, 1 }
 0x410   : > { %v4214_v16 = vsel %vm792_vm0, %v4212_v54, %v4213_v0  ;;  %v3520_v0 = vld [vmem:[#allocation2 + $0x3c] sm:$0xc] }
 0x411   : > { %v4682_v18 = vpop.permute.xlu0 %4681  ;;  %v3964_v47 = vpop.permute.xlu1 %3963 }
 0x412   : > { %v5073_v41 = vsel %vm4928_vm6, %v5036_v3, %v4682_v18  ;;  %v4909_v34 = vsel %vm4895_vm5, %v4867_v31, %v3964_v47  ;;  %v7037_v3 = vld [vmem:[#allocation2 + $0x20] ss:$0 sps:$4 sm:$0x11]   ;;  %v4191_v47 = vrot.slane %v6192_v15, 1 }
 0x413   : > { %5374 = vmatprep.mubr.bf16.mxu1 %v5073_v41  ;;  %v4948_v39 = vsel %vm4928_vm6, %v4909_v34, %v9740_v2  ;;  %v4192_v57 = vrot.slane %v7037_v3, 1  ;;  %v7041_v31 = vld [vmem:[#allocation2 + $0x38] ss:$0 sps:$4 sm:$0x33]   ;;  %v4799_v34 = vrot.slane %v6304_v45, 2 }
 0x414   : > { %5375 = vmatmul.mubr.bf16.gmra.mxu1 %v4945_v50  ;;  %v7049_v45 = vld [vmem:[#allocation2 + $0x8c] ss:$0 sps:$4 sm:$0x11]  }
 0x415   : > { %v4396_v37 = vpop.permute.xlu0 %4395  ;;  %v3789_v22 = vpop.permute.xlu1 %3788 }
 0x416   : > { %v4997_v61 = vsel %vm2128_vm10, %v4211_v35, %v4396_v37  ;;  %v4870_v18 = vsel %vm2128_vm10, %v6103_v11, %v3789_v22  ;;  %v3405_v35 = vld [vmem:[#allocation2 + $0x78] sm:$0xe]  ;;  %v4193_v37 = vsel %vm792_vm0, %v4191_v47, %v4192_v57  ;;  %v6306_v11 = vcombine.low %v3520_v0, %v7238_v12  ;;  %v7241_v47 = vld [vmem:[#allocation2 + $0x88] sm:$0xf]  ;;  %v7244_v12 = vld [vmem:[#allocation2 + $0x70] sm:$0xf] }
 0x417   : > { %v5038_v5 = vsel %vm4895_vm5, %v4997_v61, %v9749_v32  ;;  %v6208_v61 = vcombine.low %v3405_v35, %v7237_v24  ;;  %v7047_v57 = vld [vmem:[#allocation2 + $0x50] ss:$0 sps:$4 sm:$0x33]  }
 0x418   : > { %v4802_v23 = vrot.slane %v6306_v11, 2  ;;  %v4806_v60 = vrot.slane %v7047_v57, 2 }
 0x419   : > { %v4684_v29 = vpop.permute.xlu0 %4683  ;;  %v3966_v52 = vpop.permute.xlu1 %3965 }
 0x41a   : > { %v5076_v4 = vsel %vm4928_vm6, %v5038_v5, %v4684_v29  ;;  %v4911_v59 = vsel %vm4895_vm5, %v4870_v18, %v3966_v52  ;;  %v4215_v5 = vrot.slane %v6208_v61, 1  ;;  %v4800_v52 = vrot.slane %v7041_v31, 2  ;;  %v7240_v18 = vld [vmem:[#allocation2 + $0x64] sm:$0xf] }
 0x41b   : > { %5382 = vmatprep.mubr.bf16.mxu1 %v5076_v4  ;;  %v4951_v21 = vsel %vm4928_vm6, %v4911_v59, %v9754_v44 }
 0x41c   : > { %5383 = vmatmul.mubr.bf16.gmra.mxu1 %v4948_v39  ;;  %v7044_v39 = vld [vmem:[%s10284_s2 + $0x80] sm:$0xff]   ;;  %v4217_v59 = vsel %vm792_vm0, %v4215_v5, %v4216_v25  ;;  %v3409_v25 = vld [vmem:[#allocation2 + $0x90] sm:$0xe] }
 0x41d   : > { %v4398_v36 = vpop.permute.xlu0 %4397  ;;  %v3791_v19 = vpop.permute.xlu1 %3790 }
 0x41e   : > { %v5000_v32 = vsel %vm2128_vm10, %v4214_v16, %v4398_v36  ;;  %v3522_v16 = vld [vmem:[#allocation2 + $0x48] sm:$0xc]  ;;  %v3277_v36 = vld [vmem:[#allocation2 + $0x60] sm:$0xf] }
 0x41f   : > { %v5040_v41 = vsel %vm4895_vm5, %v5000_v32, %v9763_v14  ;;  %v6308_v15 = vcombine.low %v3522_v16, %v7239_v53  ;;  %v3407_v32 = vld [vmem:[#allocation2 + $0x84] sm:$0xe]  ;;  %v6104_v3 = vcombine.low %v3277_v36, %v7240_v18  ;;  %v7051_v36 = vld [vmem:[#allocation2 + $0x5c] ss:$0 sps:$4 sm:$0x33]  }
 0x420   : > { %v7053_v18 = vld [vmem:[#allocation2 + $0x68] ss:$0 sps:$4 sm:$0x33]   ;;  %v4809_v57 = vrot.slane %v7051_v36, 2 }
 0x421   : > { %v4686_v2 = vpop.permute.xlu0 %4685  ;;  %v3968_v50 = vpop.permute.xlu1 %3967  ;;  %v4873_v26 = vsel %vm2128_vm10, %v6104_v3, %v3791_v19  ;;  %v4805_v35 = vrot.slane %v6308_v15, 2 }
 0x422   : > { %v5079_v38 = vsel %vm4928_vm6, %v5040_v41, %v4686_v2  ;;  %v7046_v41 = vld [vmem:[#allocation2 + $0x44] ss:$0 sps:$4 sm:$0x33]  }
 0x423   : > { %5390 = vmatprep.mubr.bf16.mxu1 %v5079_v38  ;;  %v6210_v38 = vcombine.low %v3407_v32, %v7241_v47  ;;  %v4803_v24 = vrot.slane %v7046_v41, 2 }
 0x424   : > { %5391 = vmatmul.mubr.bf16.gmra.mxu1 %v4951_v21 }
 0x425   : > { %v4384_v6 = vpop.permute.xlu0 %4383  ;;  %v9920_v22 = vpop.permute.xlu1 %3792  ;;  %v4218_v61 = vrot.slane %v6210_v38, 1 }
 0x426   : > { %v4979_v14 = vsel %vm2128_vm10, %v4193_v37, %v4384_v6 }
 0x427   : > { %v5026_v44 = vsel %vm4895_vm5, %v4979_v14, %v9776_v7  ;;  %v4801_v7 = vsel %vm3902_vm14, %v4799_v34, %v4800_v52  ;;  %v3524_v34 = vld [vmem:[#allocation2 + $0x54] sm:$0xc]  ;;  %v3279_v52 = vld [vmem:[#allocation2 + $0x6c] sm:$0xf] }
 0x428   : > { %v6105_v11 = vcombine.low %v3279_v52, %v7244_v12 }
 0x429   : > { %v4672_v29 = vpop.permute.xlu0 %4671  ;;  %v9925_v4 = vpop.permute.xlu1 %3969 }
 0x42a   : > { %v5058_v54 = vsel %vm4928_vm6, %v5026_v44, %v4672_v29  ;;  %v4219_v29 = vrot.slane %v7049_v45, 1  ;;  %v7242_v44 = vld [vmem:[#allocation2 + $0x58] sm:$0xf]  ;;  %v4876_v3 = vsel %vm2128_vm10, %v6105_v11, %v9920_v22  ;;  %v7062_v11 = vld [vmem:[#allocation2 + $0xa4] ss:$0 sps:$4 sm:$0x11]  }
 0x42b   : > { %5334 = vmatprep.mubr.bf16.mxu0 %v5058_v54  ;;  %v6310_v5 = vcombine.low %v3524_v34, %v7242_v44  ;;  %v3526_v54 = vld [vmem:[#allocation2 + $0x60] sm:$0xc]  ;;  %v4915_v41 = vsel %vm4895_vm5, %v4876_v3, %v9925_v4 }
 0x42c   : > { %5335 = vmatmul.mubr.bf16.vlgmr.msra.gmra.mxu0 %v9769_v58  ;;  %v4957_v22 = vsel %vm4928_vm6, %v4915_v41, %v9789_v1 }
 0x42d   : > { %6597 = vmatpush3.bf16.msra.mxu0 %v9683_v55  ;;  %6600 = vmatprep.mubr.msk.bf16.mxu0 %vm2128_vm10, %v4801_v7  ;;  %v4400_v2 = vpop.permute.xlu0 %4399  ;;  %v9936_v58 = vpop.permute.xlu1 %3794  ;;  %v4913_v55 = vsel %vm4895_vm5, %v4873_v26, %v3968_v50  ;;  %v4804_v50 = vsel %vm3902_vm14, %v4802_v23, %v4803_v24  ;;  %v7245_v7 = vld [vmem:[#allocation2 + $0x94] sm:$0xf] }
 0x42e   : > { %v5003_v21 = vsel %vm2128_vm10, %v4217_v59, %v4400_v2  ;;  %6598 = vmatprep.subr.bf16.mxu0 %v7044_v39  ;;  %v4954_v19 = vsel %vm4928_vm6, %v4913_v55, %v9779_v28  ;;  %v4220_v28 = vsel %vm792_vm0, %v4218_v61, %v4219_v29  ;;  %v6212_v53 = vcombine.low %v3409_v25, %v7245_v7  ;;  %v7055_v2 = vld [vmem:[#allocation2 + $0x98] ss:$0 sps:$4 sm:$0x11]   ;;  %v3530_v61 = vld [vmem:[#allocation2 + $0x78] sm:$0xc] }
 0x42f   : > { %v5042_v6 = vsel %vm4895_vm5, %v5003_v21, %v9786_v10  ;;  %v4807_v10 = vsel %vm3902_vm14, %v4805_v35, %v4806_v60  ;;  %v4808_v59 = vrot.slane %v6310_v5, 2  ;;  %v4812_v55 = vrot.slane %v7053_v18, 2  ;;  %v3528_v35 = vld [vmem:[#allocation2 + $0x6c] sm:$0xc]  ;;  %v7247_v60 = vld [vmem:[#allocation2 + $0x7c] sm:$0xf] }
 0x430   : > { %v4221_v26 = vrot.slane %v6212_v53, 1  ;;  %v4222_v4 = vrot.slane %v7055_v2, 1  ;;  %v6316_v34 = vcombine.low %v3530_v61, %v7247_v60  ;;  %v7058_v5 = vld [vmem:[#allocation2 + $0x74] ss:$0 sps:$4 sm:$0x33]  }
 0x431   : > { %6599 = vmatpush3.bf16.msra.mxu0 %v7044_v39  ;;  %v4688_v37 = vpop.permute.xlu0 %4687  ;;  %v9943_v31 = vpop.permute.xlu1 %3971  ;;  %v7243_v39 = vld [vmem:[#allocation2 + $0x64] sm:$0xf]  ;;  %v4815_v53 = vrot.slane %v7058_v5, 2 }
 0x432   : > { %v5082_v14 = vsel %vm4928_vm6, %v5042_v6, %v4688_v37  ;;  %v6312_v0 = vcombine.low %v3526_v54, %v7243_v39  ;;  %v4810_v37 = vsel %vm3902_vm14, %v4808_v59, %v4809_v57  ;;  %v7246_v6 = vld [vmem:[#allocation2 + $0x70] sm:$0xf]  ;;  %v4223_v1 = vsel %vm792_vm0, %v4221_v26, %v4222_v4  ;;  %v7249_v54 = vld [vmem:[#allocation2 + $0xa0] sm:$0xf]  ;;  %v3532_v2 = vld [vmem:[#allocation2 + $0x84] sm:$0xc] }
 0x433   : > { %5398 = vmatprep.mubr.bf16.mxu1 %v5082_v14  ;;  %v6314_v24 = vcombine.low %v3528_v35, %v7246_v6  ;;  %v3281_v14 = vld [vmem:[#allocation2 + $0x78] sm:$0xf]  ;;  %v3283_v57 = vld [vmem:[#allocation2 + $0x84] sm:$0xf]  ;;  %v7251_v26 = vld [vmem:[#allocation2 + $0x94] sm:$0xf] }
 0x434   : > { %5399 = vmatmul.mubr.bf16.gmra.mxu1 %v4954_v19  ;;  %6601 = vmatmul.mubr.msk.bf16.vlgmr.msra.gmra.mxu0 %vm2128_vm10, %v4804_v50  ;;  %v4811_v47 = vrot.slane %v6312_v0, 2  ;;  %v3411_v19 = vld [vmem:[#allocation2 + $0x9c] sm:$0xe]  ;;  %v7060_v0 = vld [vmem:[#allocation2 + $0x80] ss:$0 sps:$4 sm:$0x33]  }
 0x435   : > { %6604 = vmatprep.mubr.msk.bf16.mxu0 %vm2128_vm10, %v4807_v10  ;;  %v4402_v16 = vpop.permute.xlu0 %4401  ;;  %v9953_v32 = vpop.permute.xlu1 %3796  ;;  %v7248_v50 = vld [vmem:[#allocation2 + $0x7c] sm:$0xf]  ;;  %v6214_v52 = vcombine.low %v3411_v19, %v7249_v54  ;;  %v4814_v12 = vrot.slane %v6314_v24, 2  ;;  %v4818_v59 = vrot.slane %v7060_v0, 2  ;;  %v7252_v35 = vld [vmem:[#allocation2 + $0x88] sm:$0xf] }
 0x436   : > { %v5006_v15 = vsel %vm2128_vm10, %v4220_v28, %v4402_v16  ;;  %v6106_v29 = vcombine.low %v3281_v14, %v7248_v50  ;;  %v4817_v16 = vrot.slane %v6316_v34, 2  ;;  %v7065_v4 = vld [vmem:[#allocation2 + $0x8c] ss:$0 sps:$4 sm:$0x33]  }
 0x437   : > { %v5044_v21 = vsel %vm4895_vm5, %v5006_v15, %v9798_v27  ;;  %v4813_v27 = vsel %vm3902_vm14, %v4811_v47, %v4812_v55  ;;  %v4224_v15 = vrot.slane %v6214_v52, 1  ;;  %v4816_v41 = vsel %vm3902_vm14, %v4814_v12, %v4815_v53  ;;  %v7250_v47 = vld [vmem:[#allocation2 + $0x88] sm:$0xf]  ;;  %v7253_v6 = vld [vmem:[#allocation2 + $0xac] sm:$0xf] }
 0x438   : > { %v4879_v25 = vsel %vm2128_vm10, %v6106_v29, %v9936_v58  ;;  %v3413_v55 = vld [vmem:[#allocation2 + $0xa8] sm:$0xe]  ;;  %v7069_v19 = vld [vmem:[#allocation2 + $0xb0] ss:$0 sps:$4 sm:$0x11]   ;;  %v4821_v5 = vrot.slane %v7065_v4, 2 }
 0x439   : > { %v4690_v38 = vpop.permute.xlu0 %4689  ;;  %v9962_v45 = vpop.permute.xlu1 %3973  ;;  %v4917_v28 = vsel %vm4895_vm5, %v4879_v25, %v9943_v31  ;;  %v4225_v31 = vrot.slane %v7062_v11, 1  ;;  %v6216_v24 = vcombine.low %v3413_v55, %v7253_v6  ;;  %v3536_v25 = vld [vmem:[#allocation2 + $0x9c] sm:$0xc]  ;;  %v7254_v11 = vld [vmem:[#allocation2 + $0xa0] sm:$0xf] }
 0x43a   : > { %v5085_v23 = vsel %vm4928_vm6, %v5044_v21, %v4690_v38  ;;  %v4960_v58 = vsel %vm4928_vm6, %v4917_v28, %v9801_v62  ;;  %v6318_v38 = vcombine.low %v3532_v2, %v7250_v47  ;;  %v3534_v21 = vld [vmem:[#allocation2 + $0x90] sm:$0xc]  ;;  %v6322_v28 = vcombine.low %v3536_v25, %v7254_v11  ;;  %v7072_v2 = vld [vmem:[#allocation2 + $0xa4] ss:$0 sps:$4 sm:$0x33]  }
 0x43b   : > { %5406 = vmatprep.mubr.bf16.mxu1 %v5085_v23  ;;  %v6320_v23 = vcombine.low %v3534_v21, %v7251_v26  ;;  %v4226_v62 = vsel %vm792_vm0, %v4224_v15, %v4225_v31  ;;  %v4227_v54 = vrot.slane %v6216_v24, 1  ;;  %v3415_v15 = vld [vmem:[#allocation2 + $0xb4] sm:$0xe]  ;;  %v7074_v47 = vld [vmem:[#allocation2 + $0xb0] ss:$0 sps:$4 sm:$0x33]  }
 0x43c   : > { %5407 = vmatmul.mubr.bf16.gmra.mxu1 %v4957_v22  ;;  %6605 = vmatmul.mubr.msk.bf16.gmra.mxu0 %vm2128_vm10, %v4810_v37  ;;  %v6107_v22 = vcombine.low %v3283_v57, %v7252_v35  ;;  %v4820_v34 = vrot.slane %v6318_v38, 2  ;;  %v4826_v21 = vrot.slane %v6322_v28, 2  ;;  %v7076_v57 = vld [vmem:[#allocation2 + $0xbc] ss:$0 sps:$4 sm:$0x11]   ;;  %v4827_v35 = vrot.slane %v7072_v2, 2 }
 0x43d   : > { %6608 = vmatprep.mubr.msk.bf16.mxu0 %vm2128_vm10, %v4813_v27  ;;  %v4404_v44 = vpop.permute.xlu0 %4403  ;;  %v9972_v39 = vpop.permute.xlu1 %3798  ;;  %v7067_v27 = vld [vmem:[#allocation2 + $0x98] ss:$0 sps:$4 sm:$0x33]   ;;  %v4823_v29 = vrot.slane %v6320_v23, 2  ;;  %v3540_v4 = vld [vmem:[#allocation2 + $0xb4] sm:$0xc] }
 0x43e   : > { %v5009_v10 = vsel %vm2128_vm10, %v4223_v1, %v4404_v44  ;;  %v4882_v60 = vsel %vm2128_vm10, %v6107_v22, %v9953_v32  ;;  %v4824_v0 = vrot.slane %v7067_v27, 2  ;;  %v4822_v12 = vsel %vm3902_vm14, %v4820_v34, %v4821_v5  ;;  %v7257_v24 = vld [vmem:[#allocation2 + $0xb8] sm:$0xf]  ;;  %v3542_v27 = vld [vmem:[#allocation2 + $0xc0] sm:$0xc] }
 0x43f   : > { %v5046_v7 = vsel %vm4895_vm5, %v5009_v10, %v9808_v43  ;;  %v4819_v43 = vsel %vm3902_vm14, %v4817_v16, %v4818_v59  ;;  %v4919_v50 = vsel %vm4895_vm5, %v4882_v60, %v9962_v45  ;;  %v4228_v45 = vrot.slane %v7069_v19, 1  ;;  %v3538_v16 = vld [vmem:[#allocation2 + $0xa8] sm:$0xc]  ;;  %v3287_v60 = vld [vmem:[#allocation2 + $0x9c] sm:$0xf] }
 0x440   : > { %v4963_v32 = vsel %vm4928_vm6, %v4919_v50, %v9811_v56  ;;  %v4828_v6 = vsel %vm3902_vm14, %v4826_v21, %v4827_v35  ;;  %v7258_v34 = vld [vmem:[#allocation2 + $0xc4] sm:$0xf]  ;;  %v3417_v50 = vld [vmem:[#allocation2 + $0xc0] sm:$0xe]  ;;  %v3546_v11 = vld [vmem:[#allocation2 + $0xd8] sm:$0xc] }
 0x441   : > { %v4692_v36 = vpop.permute.xlu0 %4691  ;;  %v9981_v3 = vpop.permute.xlu1 %3975  ;;  %v4229_v56 = vsel %vm792_vm0, %v4227_v54, %v4228_v45  ;;  %v6328_v19 = vcombine.low %v3542_v27, %v7258_v34  ;;  %v7259_v5 = vld [vmem:[#allocation2 + $0xc4] sm:$0xf]  ;;  %v7081_v25 = vld [vmem:[#allocation2 + $0xc8] ss:$0 sps:$4 sm:$0x33]  }
 0x442   : > { %v5088_v18 = vsel %vm4928_vm6, %v5046_v7, %v4692_v36  ;;  %v3285_v36 = vld [vmem:[#allocation2 + $0x90] sm:$0xf]  ;;  %v7255_v7 = vld [vmem:[#allocation2 + $0xac] sm:$0xf]  ;;  %v6220_v54 = vcombine.low %v3417_v50, %v7259_v5 }
 0x443   : > { %5414 = vmatprep.mubr.bf16.mxu1 %v5088_v18  ;;  %v6324_v53 = vcombine.low %v3538_v16, %v7255_v7  ;;  %v6108_v18 = vcombine.low %v3285_v36, %v9725_v8  ;;  %v7083_v45 = vld [vmem:[#allocation2 + $0xc8] ss:$0 sps:$4 sm:$0x11]   ;;  %v4835_v28 = vrot.slane %v6328_v19, 2  ;;  %v3419_v21 = vld [vmem:[#allocation2 + $0xcc] sm:$0xe] }
 0x444   : > { %5415 = vmatmul.mubr.bf16.gmra.mxu1 %v4960_v58  ;;  %6609 = vmatmul.mubr.msk.bf16.gmra.mxu0 %vm2128_vm10, %v4816_v41  ;;  %v7256_v58 = vld [vmem:[#allocation2 + $0xb8] sm:$0xf]  ;;  %v4233_v7 = vrot.slane %v6220_v54, 1 }
 0x445   : > { %6612 = vmatprep.mubr.msk.bf16.mxu0 %vm2128_vm10, %v4819_v43  ;;  %v4406_v37 = vpop.permute.xlu0 %4405  ;;  %v9991_v14 = vpop.permute.xlu1 %3800  ;;  %v6218_v41 = vcombine.low %v3415_v15, %v7256_v58  ;;  %v4885_v38 = vsel %vm2128_vm10, %v6108_v18, %v9972_v39  ;;  %v4829_v26 = vrot.slane %v6324_v53, 2  ;;  %v4836_v15 = vrot.slane %v7081_v25, 2  ;;  %v3544_v18 = vld [vmem:[#allocation2 + $0xcc] sm:$0xc] }
 0x446   : > { %v5012_v61 = vsel %vm2128_vm10, %v4226_v62, %v4406_v37  ;;  %v4921_v43 = vsel %vm4895_vm5, %v4885_v38, %v9981_v3  ;;  %v4830_v37 = vrot.slane %v7074_v47, 2  ;;  %v4231_v3 = vrot.slane %v7076_v57, 1  ;;  %v3289_v47 = vld [vmem:[#allocation2 + $0xa8] sm:$0xf] }
 0x447   : > { %v5048_v44 = vsel %vm4895_vm5, %v5012_v61, %v9818_v13  ;;  %v4825_v13 = vsel %vm3902_vm14, %v4823_v29, %v4824_v0  ;;  %v4230_v22 = vrot.slane %v6218_v41, 1  ;;  %v4966_v39 = vsel %vm4928_vm6, %v4921_v43, %v9821_v40  ;;  %v7261_v41 = vld [vmem:[#allocation2 + $0xd0] sm:$0xf] }
 0x448   : > { %v6326_v61 = vcombine.low %v3540_v4, %v7257_v24  ;;  %v6109_v29 = vcombine.low %v3287_v60, %v9747_v17  ;;  %v4234_v58 = vrot.slane %v7083_v45, 1  ;;  %v4837_v38 = vsel %vm3902_vm14, %v4835_v28, %v4836_v15  ;;  %v7090_v60 = vld [vmem:[#allocation2 + $0xec] ss:$0 sps:$4 sm:$0x33]  }
 0x449   : > { %v4694_v1 = vpop.permute.xlu0 %4693  ;;  %v10000_v10 = vpop.permute.xlu1 %3977  ;;  %v4232_v40 = vsel %vm792_vm0, %v4230_v22, %v4231_v3  ;;  %v6110_v57 = vcombine.low %v3289_v47, %v9774_v51 }
 0x44a   : > { %v5091_v52 = vsel %vm4928_vm6, %v5048_v44, %v4694_v1  ;;  %v7079_v44 = vld [vmem:[#allocation2 + $0xbc] ss:$0 sps:$4 sm:$0x33]   ;;  %v4235_v43 = vsel %vm792_vm0, %v4233_v7, %v4234_v58 }
 0x44b   : > { %5422 = vmatprep.mubr.bf16.mxu1 %v5091_v52 }
 0x44c   : > { %5423 = vmatmul.mubr.bf16.gmra.mxu1 %v4963_v32  ;;  %6613 = vmatmul.mubr.msk.bf16.gmra.mxu0 %vm2128_vm10, %v4822_v12  ;;  %v4888_v32 = vsel %vm2128_vm10, %v6109_v29, %v9991_v14  ;;  %v4832_v12 = vrot.slane %v6326_v61, 2  ;;  %v7088_v14 = vld [vmem:[#allocation2 + $0xe0] ss:$0 sps:$4 sm:$0x33]  }
 0x44d   : > { %6616 = vmatprep.mubr.msk.bf16.mxu0 %vm2128_vm10, %v4825_v13  ;;  %v4408_v59 = vpop.permute.xlu0 %4407  ;;  %v10015_v8 = vpop.permute.xlu1 %3802  ;;  %v4923_v17 = vsel %vm4895_vm5, %v4888_v32, %v10000_v10  ;;  %v4833_v13 = vrot.slane %v7079_v44, 2  ;;  %v4842_v22 = vrot.slane %v7088_v14, 2 }
 0x44e   : > { %v5015_v31 = vsel %vm2128_vm10, %v4229_v56, %v4408_v59  ;;  %v7260_v56 = vld [vmem:[#allocation2 + $0xdc] sm:$0xf]  ;;  %v4969_v2 = vsel %vm4928_vm6, %v4923_v17, %v9830_v20 }
 0x44f   : > { %v5050_v55 = vsel %vm4895_vm5, %v5015_v31, %v9827_v63  ;;  %v4831_v63 = vsel %vm3902_vm14, %v4829_v26, %v4830_v37  ;;  %v6332_v59 = vcombine.low %v3546_v11, %v7260_v56  ;;  %v4834_v10 = vsel %vm3902_vm14, %v4832_v12, %v4833_v13  ;;  %v7085_v26 = vld [vmem:[#allocation2 + $0xd4] ss:$0 sps:$4 sm:$0x33]  }
 0x450   : > { %v6330_v31 = vcombine.low %v3544_v18, %v7261_v41  ;;  %v4891_v37 = vsel %vm2128_vm10, %v6110_v57, %v10015_v8  ;;  %v4839_v24 = vrot.slane %v7085_v26, 2 }
 0x451   : > { %v4696_v23 = vpop.permute.xlu0 %4695  ;;  %v3980_v52 = vpop.permute.xlu1 %3979  ;;  %v4841_v35 = vrot.slane %v6332_v59, 2 }
 0x452   : > { %v5094_v62 = vsel %vm4928_vm6, %v5050_v55, %v4696_v23  ;;  %v6222_v23 = vcombine.low %v3419_v21, %v9834_v49  ;;  %v4838_v51 = vrot.slane %v6330_v31, 2 }
 0x453   : > { %5430 = vmatprep.mubr.bf16.mxu1 %v5094_v62  ;;  %v3548_v62 = vld [vmem:[#allocation2 + $0xe4] sm:$0xc]  ;;  %v4843_v8 = vsel %vm3902_vm14, %v4841_v35, %v4842_v22  ;;  %v10100_v22 = vld [vmem:[%s10285_s3 + $0x3] ss:$0 sm:$0xff] }
 0x454   : > { %5431 = vmatmul.mubr.bf16.gmra.mxu1 %v4966_v39  ;;  %6617 = vmatmul.mubr.msk.bf16.gmra.mxu0 %vm2128_vm10, %v4828_v6  ;;  %v7087_v39 = vld [vmem:[#allocation2 + $0xd4] ss:$0 sps:$4 sm:$0x11]   ;;  %v4925_v6 = vsel %vm4895_vm5, %v4891_v37, %v3980_v52  ;;  %v4236_v61 = vrot.slane %v6222_v23, 1  ;;  %v6334_v27 = vcombine.low %v3548_v62, %v9837_v9  ;;  %v4840_v34 = vsel %vm3902_vm14, %v4838_v51, %v4839_v24 }
 0x455   : > { %6620 = vmatprep.mubr.msk.bf16.mxu0 %vm2128_vm10, %v4831_v63  ;;  %v4410_v1 = vpop.permute.xlu0 %4409  ;;  %v4237_v19 = vrot.slane %v7087_v39, 1  ;;  %v4845_v9 = vrot.slane %v7090_v60, 2 }
 0x456   : > { %v5018_v0 = vsel %vm2128_vm10, %v4232_v40, %v4410_v1  ;;  %v4844_v29 = vrot.slane %v6334_v27, 2  ;;  %v3291_v40 = vld [vmem:[#allocation2 + $0xb4] sm:$0xf] }
 0x457   : > { %v5052_v36 = vsel %vm4895_vm5, %v5018_v0, %v9839_v48  ;;  %v3805_v48 = vpop.permute.xlu1 %3804  ;;  %v6111_v44 = vcombine.low %v3291_v40, %v9796_v30 }
 0x458   : > { %v4846_v0 = vsel %vm3902_vm14, %v4844_v29, %v4845_v9 }
 0x459   : > { %v4698_v16 = vpop.permute.xlu0 %4697 }
 0x45a   : > { %v5097_v53 = vsel %vm4928_vm6, %v5052_v36, %v4698_v16 }
 0x45b   : > { %5438 = vmatprep.mubr.bf16.mxu1 %v5097_v53  ;;  %v3982_v63 = vpop.permute.xlu1 %3981 }
 0x45c   : > { %5439 = vmatmul.mubr.bf16.gmra.mxu1 %v4969_v2  ;;  %6621 = vmatmul.mubr.msk.bf16.gmra.mxu0 %vm2128_vm10, %v4834_v10 }
 0x45d   : > { %6624 = vmatprep.mubr.msk.bf16.mxu0 %vm2128_vm10, %v4837_v38  ;;  %v4412_v20 = vpop.permute.xlu0 %4411 }
 0x45e   : > { %v5021_v55 = vsel %vm2128_vm10, %v4235_v43, %v4412_v20 }
 0x45f   : > { %v5054_v4 = vsel %vm4895_vm5, %v5021_v55, %v9664_v46  ;;  %v4972_v46 = vsel %vm4928_vm6, %v4925_v6, %v9842_v33  ;;  %v4094_v5 = vpop.permute.xlu1 %4093  ;;  %v4894_v33 = vsel %vm2128_vm10, %v6111_v44, %v3805_v48 }
 0x460   : > { %v5100_v3 = vsel %vm4928_vm6, %v5054_v4, %v9677_v42  ;;  %v4238_v42 = vsel %vm792_vm0, %v4236_v61, %v4237_v19  ;;  %v4927_v25 = vsel %vm4895_vm5, %v4894_v33, %v3982_v63 }
 0x461   : > { %5446 = vmatprep.mubr.bf16.mxu1 %v5100_v3  ;;  %v4526_v49 = vpop.permute.xlu0 %4525  ;;  %v4975_v12 = vsel %vm4928_vm6, %v4927_v25, %v4094_v5 }
 0x464   : > { %5447 = vmatmul.mubr.bf16.gmra.mxu1 %v4972_v46  ;;  %6625 = vmatmul.mubr.msk.bf16.gmra.mxu0 %vm2128_vm10, %v4840_v34 }
 0x465   : > { %v4414_v50 = vpop.permute.xlu0 %4413  ;;  %6628 = vmatprep.mubr.msk.bf16.mxu0 %vm2128_vm10, %v4843_v8 }
 0x466   : > { %v5024_v1 = vsel %vm2128_vm10, %v4238_v42, %v4414_v50 }
 0x467   : > { %v5056_v52 = vsel %vm4895_vm5, %v5024_v1, %v4526_v49 }
 0x469   : > { %v4702_v54 = vpop.permute.xlu0 %4701 }
 0x46a   : > { %v5103_v32 = vsel %vm4928_vm6, %v5056_v52, %v4702_v54 }
 0x46b   : > { %5454 = vmatprep.mubr.bf16.mxu1 %v5103_v32 }
 0x46c   : > { %5455 = vmatmul.mubr.bf16.gmra.mxu1 %v4975_v12  ;;  %6629 = vmatmul.mubr.msk.bf16.gmra.mxu0 %vm2128_vm10, %v4846_v0 }
 0x4b4   : > { %v6450_v45 = vpop.f32.mrf.mxu1 }
 0x4b6   : > { %v6451_v30 = vpop.f32.mrf.mxu1 }
 0x4b7   : > { %v6452_v55 = vadd.f32 %v6451_v30, %v6450_v45 }
 0x4b8   : > { %v6453_v11 = vpop.f32.mrf.mxu1 }
 0x4b9   : > { %v5345_v39 = vadd.f32 %v6452_v55, %v10100_v22 }
 0x4ba   : > { %v6454_v17 = vpop.f32.mrf.mxu1 }
 0x4bb   : > { %v6455_v51 = vadd.f32 %v6454_v17, %v6453_v11 }
 0x4bc   : > { %v6456_v28 = vpop.f32.mrf.mxu1 }
 0x4bd   : > { %v5348_v46 = vadd.f32 %v6455_v51, %v10100_v22 }
 0x4be   : > { %v6457_v16 = vpop.f32.mrf.mxu1 }
 0x4bf   : > { %v6458_v42 = vadd.f32 %v6457_v16, %v6456_v28 }
 0x4c0   : > { %v6459_v36 = vpop.f32.mrf.mxu1 }
 0x4c1   : > { %v5353_v25 = vadd.f32 %v6458_v42, %v10100_v22 }
 0x4c2   : > { %v6460_v13 = vpop.f32.mrf.mxu1 }
 0x4c3   : > { %v6461_v52 = vadd.f32 %v6460_v13, %v6459_v36 }
 0x4c4   : > { %v6462_v7 = vpop.f32.mrf.mxu1 }
 0x4c5   : > { %v5356_v13 = vadd.f32 %v6461_v52, %v10100_v22 }
 0x4c6   : > { %v6463_v53 = vpop.f32.mrf.mxu1 }
 0x4c7   : > { %v6464_v63 = vadd.f32 %v6463_v53, %v6462_v7 }
 0x4c8   : > { %v6465_v15 = vpop.f32.mrf.mxu1 }
 0x4c9   : > { %v5361_v5 = vadd.f32 %v6464_v63, %v10100_v22 }
 0x4ca   : > { %v6466_v18 = vpop.f32.mrf.mxu1 }
 0x4cb   : > { %v6467_v1 = vadd.f32 %v6466_v18, %v6465_v15 }
 0x4cc   : > { %v10070_v56 = vpop.f32.mrf.mxu1 }
 0x4cd   : > { %v5364_v11 = vadd.f32 %v6467_v1, %v10100_v22 }
 0x4ce   : > { %v10072_v59 = vpop.f32.mrf.mxu1 }
 0x4cf   : > { %v6470_v16 = vadd.f32 %v10072_v59, %v10070_v56 }
 0x4d0   : > { %v10074_v14 = vpop.f32.mrf.mxu1 }
 0x4d2   : > { %v10076_v2 = vpop.f32.mrf.mxu1 }
 0x4d3   : > { %v6473_v56 = vadd.f32 %v10076_v2, %v10074_v14 }
 0x4d4   : > { %v6474_v10 = vpop.f32.mrf.mxu1 }
 0x4d6   : > { %v6475_v58 = vpop.f32.mrf.mxu1 }
 0x4d7   : > { %v6476_v45 = vadd.f32 %v6475_v58, %v6474_v10 }
 0x4d8   : > { %v10078_v41 = vpop.f32.mrf.mxu1 }
 0x4d9   : > { %v5377_v10 = vadd.f32 %v6476_v45, %v10100_v22 }
 0x4da   : > { %v10080_v31 = vpop.f32.mrf.mxu1 }
 0x4db   : > { %v6479_v15 = vadd.f32 %v10080_v31, %v10078_v41 }
 0x4dc   : > { %v10082_v47 = vpop.f32.mrf.mxu1 }
 0x4de   : > { %v10084_v48 = vpop.f32.mrf.mxu1 }
 0x4df   : > { %v6482_v14 = vadd.f32 %v10084_v48, %v10082_v47 }
 0x4e0   : > { %v10086_v38 = vpop.f32.mrf.mxu1 }
 0x4e1   : > { %v5385_v63 = vadd.f32 %v6482_v14, %v10100_v22 }
 0x4e2   : > { %v10088_v21 = vpop.f32.mrf.mxu1 }
 0x4e3   : > { %v6485_v47 = vadd.f32 %v10088_v21, %v10086_v38 }
 0x4e4   : > { %v10090_v57 = vpop.f32.mrf.mxu1 }
 0x4e6   : > { %v10092_v43 = vpop.f32.mrf.mxu1 }
 0x4e7   : > { %v6488_v41 = vadd.f32 %v10092_v43, %v10090_v57 }
 0x4e8   : > { %v10094_v26 = vpop.f32.mrf.mxu1 }
 0x4ea   : > { %v10104_v37 = vpop.f32.mrf.mxu1 }
 0x4eb   : > { %v6491_v57 = vadd.f32 %v10104_v37, %v10094_v26 }
 0x4ec   : > { %v6444_v20 = vpop.f32.mrf.mxu0 }
 0x4ee   : > { %v6445_v23 = vpop.f32.mrf.mxu0 }
 0x4ef   : > { %v6446_v62 = vadd.f32 %v6445_v23, %v6444_v20  ;;  %v5369_v23 = vadd.f32 %v6470_v16, %v10100_v22 }
 0x4f0   : > { %v6447_v35 = vpop.f32.mrf.mxu0 }
 0x4f1   : > { %v5337_v61 = vadd.f32 %v6446_v62, %v10100_v22  ;;  %v5380_v62 = vadd.f32 %v6479_v15, %v10100_v22 }
 0x4f2   : > { %v6448_v4 = vpop.f32.mrf.mxu0 }
 0x4f3   : > { %v6449_v49 = vadd.f32 %v6448_v4, %v6447_v35 }
 0x4f4   : > { %v10107_v6 = vpop.f32.mrf.mxu1  ;;  %v6602_v3 = vpop.f32.mrf.mxu0 }
 0x4f5   : > { %v5506_v24 = vadd.f32 %v6602_v3, %v5345_v39  ;;  %v5340_v29 = vadd.f32 %v6449_v49, %v10100_v22  ;;  %v5372_v39 = vadd.f32 %v6473_v56, %v10100_v22 }
 0x4f6   : > { %v10110_v27 = vpop.f32.mrf.mxu1  ;;  %v5497_v60 = vpop.f32.mrf.mxu0 }
 0x4f7   : > { %5626 = vst.msk [vmem:[%s10112_s10 + $0x10] sm:$0xff] %vm2128_vm10, %v5506_v24  ;;  %v5498_v8 = vadd.f32 %v5497_v60, %v5337_v61  ;;  %v5393_v24 = vadd.f32 %v6488_v41, %v10100_v22  ;;  %v6494_v38 = vadd.f32 %v10110_v27, %v10107_v6 }
 0x4f8   : > { %v10117_v34 = vpop.f32.mrf.mxu1  ;;  %v6603_v19 = vpop.f32.mrf.mxu0 }
 0x4f9   : > { %5624 = vst.msk [vmem:[%s10112_s10] sm:$0xff] %vm2128_vm10, %v5498_v8  ;;  %v5509_v50 = vadd.f32 %v6603_v19, %v5348_v46  ;;  %v5396_v19 = vadd.f32 %v6491_v57, %v10100_v22 }
 0x4fa   : > { %v10122_v9 = vpop.f32.mrf.mxu1  ;;  %v5500_v40 = vpop.f32.mrf.mxu0 }
 0x4fb   : > { %5627 = vst.msk [vmem:[%s10112_s10 + $0x18] sm:$0xff] %vm2128_vm10, %v5509_v50  ;;  %v5501_v44 = vadd.f32 %v5500_v40, %v5340_v29  ;;  %v5388_v29 = vadd.f32 %v6485_v47, %v10100_v22  ;;  %v6497_v6 = vadd.f32 %v10122_v9, %v10117_v34 }
 0x4fc   : > { %v6498_v33 = vpop.f32.mrf.mxu1  ;;  %v6606_v54 = vpop.f32.mrf.mxu0 }
 0x4fd   : > { %5625 = vst.msk [vmem:[%s10112_s10 + $0x8] sm:$0xff] %vm2128_vm10, %v5501_v44  ;;  %v5522_v0 = vadd.f32 %v6606_v54, %v5361_v5  ;;  %v5404_v9 = vadd.f32 %v6497_v6, %v10100_v22 }
 0x4fe   : > { %v6499_v32 = vpop.f32.mrf.mxu1  ;;  %v5513_v12 = vpop.f32.mrf.mxu0 }
 0x4ff   : > { %5630 = vst.msk [vmem:[%s10112_s10 + $0x30] sm:$0xff] %vm2128_vm10, %v5522_v0  ;;  %v5514_v30 = vadd.f32 %v5513_v12, %v5353_v25  ;;  %v6500_v26 = vadd.f32 %v6499_v32, %v6498_v33  ;;  %v5401_v0 = vadd.f32 %v6494_v38, %v10100_v22 }
 0x500   : > { %v6501_v17 = vpop.f32.mrf.mxu1  ;;  %v6607_v28 = vpop.f32.mrf.mxu0 }
 0x501   : > { %5628 = vst.msk [vmem:[%s10112_s10 + $0x20] sm:$0xff] %vm2128_vm10, %v5514_v30  ;;  %v5525_v36 = vadd.f32 %v6607_v28, %v5364_v11  ;;  %v5409_v33 = vadd.f32 %v6500_v26, %v10100_v22 }
 0x502   : > { %v6502_v7 = vpop.f32.mrf.mxu1  ;;  %v5516_v53 = vpop.f32.mrf.mxu0 }
 0x503   : > { %5631 = vst.msk [vmem:[%s10112_s10 + $0x38] sm:$0xff] %vm2128_vm10, %v5525_v36  ;;  %v5517_v18 = vadd.f32 %v5516_v53, %v5356_v13  ;;  %v6503_v44 = vadd.f32 %v6502_v7, %v6501_v17 }
 0x504   : > { %v6504_v58 = vpop.f32.mrf.mxu1  ;;  %v6610_v20 = vpop.f32.mrf.mxu0 }
 0x505   : > { %5629 = vst.msk [vmem:[%s10112_s10 + $0x28] sm:$0xff] %vm2128_vm10, %v5517_v18  ;;  %v5538_v59 = vadd.f32 %v6610_v20, %v5377_v10  ;;  %v5412_v30 = vadd.f32 %v6503_v44, %v10100_v22 }
 0x506   : > { %v6505_v55 = vpop.f32.mrf.mxu1  ;;  %v5529_v35 = vpop.f32.mrf.mxu0 }
 0x507   : > { %5634 = vst.msk [vmem:[%s10112_s10 + $0x50] sm:$0xff] %vm2128_vm10, %v5538_v59  ;;  %v5530_v31 = vadd.f32 %v5529_v35, %v5369_v23  ;;  %v6506_v28 = vadd.f32 %v6505_v55, %v6504_v58 }
 0x508   : > { %v6507_v4 = vpop.f32.mrf.mxu1  ;;  %v6611_v51 = vpop.f32.mrf.mxu0 }
 0x509   : > { %5632 = vst.msk [vmem:[%s10112_s10 + $0x40] sm:$0xff] %vm2128_vm10, %v5530_v31  ;;  %v5541_v2 = vadd.f32 %v6611_v51, %v5380_v62  ;;  %v5417_v20 = vadd.f32 %v6506_v28, %v10100_v22 }
 0x50a   : > { %v6508_v3 = vpop.f32.mrf.mxu1  ;;  %v5532_v49 = vpop.f32.mrf.mxu0 }
 0x50b   : > { %5635 = vst.msk [vmem:[%s10112_s10 + $0x58] sm:$0xff] %vm2128_vm10, %v5541_v2  ;;  %v5533_v43 = vadd.f32 %v5532_v49, %v5372_v39  ;;  %v6509_v10 = vadd.f32 %v6508_v3, %v6507_v4 }
 0x50c   : > { %v6510_v61 = vpop.f32.mrf.mxu1  ;;  %v6614_v60 = vpop.f32.mrf.mxu0 }
 0x50d   : > { %5633 = vst.msk [vmem:[%s10112_s10 + $0x48] sm:$0xff] %vm2128_vm10, %v5533_v43  ;;  %v5554_v48 = vadd.f32 %v6614_v60, %v5393_v24  ;;  %v5420_v51 = vadd.f32 %v6509_v10, %v10100_v22 }
 0x50e   : > { %v6511_v8 = vpop.f32.mrf.mxu1  ;;  %v5545_v46 = vpop.f32.mrf.mxu0 }
 0x50f   : > { %5638 = vst.msk [vmem:[%s10112_s10 + $0x70] sm:$0xff] %vm2128_vm10, %v5554_v48  ;;  %v5546_v37 = vadd.f32 %v5545_v46, %v5385_v63  ;;  %v6512_v12 = vadd.f32 %v6511_v8, %v6510_v61 }
 0x510   : > { %v6513_v42 = vpop.f32.mrf.mxu1  ;;  %v6615_v50 = vpop.f32.mrf.mxu0 }
 0x511   : > { %5636 = vst.msk [vmem:[%s10112_s10 + $0x60] sm:$0xff] %vm2128_vm10, %v5546_v37  ;;  %v5557_v21 = vadd.f32 %v6615_v50, %v5396_v19  ;;  %v5425_v53 = vadd.f32 %v6512_v12, %v10100_v22 }
 0x512   : > { %v6514_v40 = vpop.f32.mrf.mxu1  ;;  %v5548_v1 = vpop.f32.mrf.mxu0 }
 0x513   : > { %5639 = vst.msk [vmem:[%s10112_s10 + $0x78] sm:$0xff] %vm2128_vm10, %v5557_v21  ;;  %v5549_v5 = vadd.f32 %v5548_v1, %v5388_v29  ;;  %v6515_v13 = vadd.f32 %v6514_v40, %v6513_v42 }
 0x514   : > { %v6516_v54 = vpop.f32.mrf.mxu1  ;;  %v6618_v52 = vpop.f32.mrf.mxu0 }
 0x515   : > { %5637 = vst.msk [vmem:[%s10112_s10 + $0x68] sm:$0xff] %vm2128_vm10, %v5549_v5  ;;  %v5570_v27 = vadd.f32 %v6618_v52, %v5409_v33  ;;  %v5428_v35 = vadd.f32 %v6515_v13, %v10100_v22 }
 0x516   : > { %v6517_v25 = vpop.f32.mrf.mxu1  ;;  %v5561_v32 = vpop.f32.mrf.mxu0 }
 0x517   : > { %5642 = vst.msk [vmem:[%s10112_s10 + $0x90] sm:$0xff] %vm2128_vm10, %v5570_v27  ;;  %v5562_v45 = vadd.f32 %v5561_v32, %v5401_v0  ;;  %v6518_v62 = vadd.f32 %v6517_v25, %v6516_v54 }
 0x518   : > { %v6519_v11 = vpop.f32.mrf.mxu1  ;;  %v6619_v17 = vpop.f32.mrf.mxu0 }
 0x519   : > { %5640 = vst.msk [vmem:[%s10112_s10 + $0x80] sm:$0xff] %vm2128_vm10, %v5562_v45  ;;  %v5573_v34 = vadd.f32 %v6619_v17, %v5412_v30  ;;  %v5433_v60 = vadd.f32 %v6518_v62, %v10100_v22 }
 0x51a   : > { %v6520_v16 = vpop.f32.mrf.mxu1  ;;  %v5564_v36 = vpop.f32.mrf.mxu0 }
 0x51b   : > { %5643 = vst.msk [vmem:[%s10112_s10 + $0x98] sm:$0xff] %vm2128_vm10, %v5573_v34  ;;  %v5565_v7 = vadd.f32 %v5564_v36, %v5404_v9  ;;  %v6521_v24 = vadd.f32 %v6520_v16, %v6519_v11 }
 0x51c   : > { %v6522_v15 = vpop.f32.mrf.mxu1  ;;  %v6622_v18 = vpop.f32.mrf.mxu0 }
 0x51d   : > { %5641 = vst.msk [vmem:[%s10112_s10 + $0x88] sm:$0xff] %vm2128_vm10, %v5565_v7  ;;  %v5586_v58 = vadd.f32 %v6622_v18, %v5425_v53  ;;  %v5436_v42 = vadd.f32 %v6521_v24, %v10100_v22 }
 0x51e   : > { %v6523_v56 = vpop.f32.mrf.mxu1  ;;  %v5577_v59 = vpop.f32.mrf.mxu0 }
 0x51f   : > { %5646 = vst.msk [vmem:[%s10112_s10 + $0xb0] sm:$0xff] %vm2128_vm10, %v5586_v58  ;;  %v6524_v23 = vadd.f32 %v6523_v56, %v6522_v15  ;;  %v5578_v55 = vadd.f32 %v5577_v59, %v5417_v20 }
 0x520   : > { %v6525_v41 = vpop.f32.mrf.mxu1  ;;  %v6623_v31 = vpop.f32.mrf.mxu0 }
 0x521   : > { %5644 = vst.msk [vmem:[%s10112_s10 + $0xa0] sm:$0xff] %vm2128_vm10, %v5578_v55  ;;  %v5589_v4 = vadd.f32 %v6623_v31, %v5428_v35  ;;  %v5441_v49 = vadd.f32 %v6524_v23, %v10100_v22 }
 0x522   : > { %v6526_v14 = vpop.f32.mrf.mxu1  ;;  %v5580_v2 = vpop.f32.mrf.mxu0 }
 0x523   : > { %5647 = vst.msk [vmem:[%s10112_s10 + $0xb8] sm:$0xff] %vm2128_vm10, %v5589_v4  ;;  %v6527_v39 = vadd.f32 %v6526_v14, %v6525_v41  ;;  %v5581_v3 = vadd.f32 %v5580_v2, %v5420_v51 }
 0x524   : > { %v6528_v57 = vpop.f32.mrf.mxu1  ;;  %v6626_v43 = vpop.f32.mrf.mxu0 }
 0x525   : > { %5645 = vst.msk [vmem:[%s10112_s10 + $0xa8] sm:$0xff] %vm2128_vm10, %v5581_v3  ;;  %v5602_v61 = vadd.f32 %v6626_v43, %v5441_v49  ;;  %v5444_v8 = vadd.f32 %v6527_v39, %v10100_v22 }
 0x526   : > { %v6529_v47 = vpop.f32.mrf.mxu1  ;;  %v5593_v48 = vpop.f32.mrf.mxu0 }
 0x527   : > { %5650 = vst.msk [vmem:[%s10112_s10 + $0xd0] sm:$0xff] %vm2128_vm10, %v5602_v61  ;;  %v5594_v63 = vadd.f32 %v5593_v48, %v5433_v60  ;;  %v6530_v37 = vadd.f32 %v6529_v47, %v6528_v57 }
 0x528   : > { %v6531_v46 = vpop.f32.mrf.mxu1  ;;  %v6627_v26 = vpop.f32.mrf.mxu0 }
 0x529   : > { %5648 = vst.msk [vmem:[%s10112_s10 + $0xc0] sm:$0xff] %vm2128_vm10, %v5594_v63  ;;  %v5605_v19 = vadd.f32 %v6627_v26, %v5444_v8  ;;  %v5449_v44 = vadd.f32 %v6530_v37, %v10100_v22 }
 0x52a   : > { %v6532_v50 = vpop.f32.mrf.mxu1  ;;  %v5596_v38 = vpop.f32.mrf.mxu0 }
 0x52b   : > { %5651 = vst.msk [vmem:[%s10112_s10 + $0xd8] sm:$0xff] %vm2128_vm10, %v5605_v19  ;;  %v5597_v21 = vadd.f32 %v5596_v38, %v5436_v42  ;;  %v6533_v1 = vadd.f32 %v6532_v50, %v6531_v46 }
 0x52c   : > { %v6534_v29 = vpop.f32.mrf.mxu1  ;;  %v6630_v40 = vpop.f32.mrf.mxu0 }
 0x52d   : > { %5649 = vst.msk [vmem:[%s10112_s10 + $0xc8] sm:$0xff] %vm2128_vm10, %v5597_v21  ;;  %v5452_v25 = vadd.f32 %v6533_v1, %v10100_v22 }
 0x52e   : > { %v6535_v5 = vpop.f32.mrf.mxu1  ;;  %v5609_v33 = vpop.f32.mrf.mxu0 }
 0x52f   : > { %v6536_v54 = vadd.f32 %v6535_v5, %v6534_v29  ;;  %v5610_v52 = vadd.f32 %v5609_v33, %v5449_v44 }
 0x530   : > { %v6537_v6 = vpop.f32.mrf.mxu1  ;;  %v6631_v27 = vpop.f32.mrf.mxu0 }
 0x531   : > { %v5457_v0 = vadd.f32 %v6536_v54, %v10100_v22  ;;  %5652 = vst.msk [vmem:[%s10112_s10 + $0xe0] sm:$0xff] %vm2128_vm10, %v5610_v52 }
 0x532   : > { %v6538_v32 = vpop.f32.mrf.mxu1  ;;  %v5612_v12 = vpop.f32.mrf.mxu0 }
 0x533   : > { %v5618_v45 = vadd.f32 %v6630_v40, %v5457_v0  ;;  %v6539_v30 = vadd.f32 %v6538_v32, %v6537_v6  ;;  %v5613_v11 = vadd.f32 %v5612_v12, %v5452_v25 }
 0x535   : > { %5654 = vst.msk [vmem:[%s10112_s10 + $0xf0] sm:$0xff] %vm2128_vm10, %v5618_v45  ;;  %v5460_v17 = vadd.f32 %v6539_v30, %v10100_v22  ;;  %5653 = vst.msk [vmem:[%s10112_s10 + $0xe8] sm:$0xff] %vm2128_vm10, %v5613_v11 }
 0x537   : > { %v5621_v28 = vadd.f32 %v6631_v27, %v5460_v17 }
 0x539   : > { %5655 = vst.msk [vmem:[%s10112_s10 + $0xf8] sm:$0xff] %vm2128_vm10, %v5621_v28 }
 0x53a   : > { %7275 = shalt.err (!%p7272_p3)
}
 0x53b   : > { %s7276_s13 = scalar_lea.hbm %s10233_s22, 4096  ;;  %s7280_s30 = scalar_lea.hbm %s10286_s4, 8192 }
 0x53c   : > { %p7277_p4 = scmp.ne.s32.totalorder %s10233_s22, %s7276_s13  ;;  %p7281_p9 = scmp.lt.s32.totalorder %s10233_s22, %s10286_s4 }
 0x53d   : > { %p7282_p10 = scmp.lt.s32.totalorder %s7280_s30, %s7276_s13 }
 0x53e   : > { %p7278_p7 = pnand %p7277_p4, %p7400_p5 }
 0x53f   : > { %p7283_p11 = por %p7282_p10, %p7281_p9 }
 0x540   : > { %p7279_p8 = pneg %p7278_p7 }
 0x542   : > { %p7284_p12 = pnand %p7283_p11, %p7279_p8 }
 0x544   : > { %7287 = shalt.err (!%p7284_p12)
}
 0x545   : > { %s7336_s10 = smov 128  }
 0x546   : > { %6650 = dma.vmem_to_hbm [thread:$0]  (%p7400_p5), %s10235_s12, 4096, %s10233_s22, %s10241_s19, %s7336_s10, %s7336_s10, %s7326_s8  }
 0x547 PF: > { %p6656_p13 = scmp.ge.s32.totalorder %s7322_s18, 2  ;;  %s5685_s11 = sand.u32 1, %s7310_s15  }
 0x548   : > { %s5686_s14 = scalar_lea.sflag [#allocation4], %s5685_s11 }
 0x549   : > { %p6653_p0 = pnand %p6656_p13, %p7404_p6 }
 0x54b   : > { %p6654_p1 = pneg %p6653_p0 }
 0x54d   : > { %7305 = dma.done.wait (%p6654_p1), %s5686_s14, 4096  }
 0x54e   : > { %7307 = vsyncadd (%p6654_p1), %s5686_s14, 4294963200  ;;  %p14_p2 = scmp.ge.s32.totalorder %s7387_s21, 4   ;;  %s10294_s15 = smov %s7314_s16 }
 0x54f   : > { %s10295_s16 = smov %s7318_s17  ;;  %s10296_s17 = smov %s7398_s24 }
 0x550   : > { %s10297_s18 = smov %s7387_s21  ;;  %16 = sbr.rel (!%p14_p2) target bundleno = 3 (0x3), region = 75 }
 0x555   :  { %5691 = vsyncpa [#allocation4], 1 }
 0x556   :  { %5693 = vsyncpa [#allocation4 + $0x1], 1 }

</bundles_post_ra>
